<compile_context>
chip_gen: v7x
topology: tpu7x:2x2x1
jax: 0.10.0
libtpu: 0.0.40
codegen_flags: <defaults>
</compile_context>

<pallas_src>
import jax
import jax.numpy as jnp
from jax import lax
from jax.experimental import pallas as pl
from jax.experimental.pallas import tpu as pltpu

EPS = 1e-5  # nn.BatchNorm1d default eps


def _skip_indices(num_layers):
    return [i for i in range(num_layers) if (i + 1) % 4 == 0 or i + 1 == num_layers]


def _round_up(x, m):
    return ((x + m - 1) // m) * m


def _layer_groups(K, DIL, skip_idx):
    """Maximal runs of same-(k, dil) layers, broken so skip layers end groups."""
    groups = []
    start = 0
    for i in range(1, len(K) + 1):
        boundary = (i == len(K) or K[i] != K[start] or DIL[i] != DIL[start]
                    or (i - 1) in skip_idx)
        if boundary:
            groups.append((start, i - start, K[start], DIL[start], (i - 1) in skip_idx))
            start = i
    return groups


def spliceai_forward(x, params, K, DIL):
    """SpliceAI forward pass as a single Pallas TPU kernel invocation."""
    K = [int(k) for k in K]
    DIL = [int(d) for d in DIL]
    B, L, _ = x.shape
    ch = params['pre_conv_w'].shape[0]
    nl = len(K)
    pads = [d * (k - 1) // 2 for k, d in zip(K, DIL)]
    pad_max = max(pads)
    CL = 2 * sum(d * (k - 1) for k, d in zip(K, DIL))
    cr = CL // 2
    skip_idx = _skip_indices(nl)
    groups = _layer_groups(K, DIL, skip_idx)
    n_groups = len(groups)

    # Lane-dense packed layout: each sequence gets a zero halo (>= pad_max on both
    # sides) and S is rounded to a multiple of 128, so every packed tile / matmul
    # N dim / the output slab is lane-dense (no masked partial stores).
    S = _round_up(L + 2 * pad_max, 128)
    BW = B * S

    bf16 = jnp.bfloat16

    # ---------------- wrapper-side layout plumbing (plain JAX glue) --------------
    x_ncl = jnp.transpose(x, (0, 2, 1)).astype(jnp.float32)               # (B, 4, L)
    x_pad = jnp.pad(x_ncl, ((0, 0), (0, 0), (pad_max, S - L - pad_max)))  # (B, 4, S)
    x_packed = jnp.transpose(x_pad, (1, 0, 2)).reshape(4, BW).astype(bf16)

    pos = jnp.arange(S, dtype=jnp.int32)
    valid = ((pos >= pad_max) & (pos < pad_max + L)).astype(jnp.float32)
    mask = jnp.tile(valid, (B,))[None, :]                                 # (1, BW)

    # Per-group tap-stacked dilated-conv weights: rows [j*ch:(j+1)*ch] of
    # W_cat[(layer, conv)] hold tap j's (co, ci) matrix, so a single
    # (k*ch, ch) @ (ch, BW) matmul yields every per-tap partial product.
    group_w = []
    for (start, cnt, k, dil, _) in groups:
        w = params['res_w'][start:start + cnt, :, :k]        # (cnt, 2, k, ch, ch)
        group_w.append(w.reshape(cnt * 2, k * ch, ch).astype(bf16))

    args = (x_packed, mask,
            params['pre_conv_w'].astype(bf16), params['pre_conv_b'],
            params['pre_skip_w'].astype(bf16), params['pre_skip_b'],
            params['bn_gamma'], params['bn_beta'],
            params['res_b'],
            params['skip_w'].astype(bf16), params['skip_b'],
            params['out_w'].astype(bf16), params['out_b'],
            *group_w)
    n_fixed = 13

    # ------------------------------- kernel --------------------------------------
    def kernel(*refs):
        (x_ref, mask_ref, pcw_ref, pcb_ref, psw_ref, psb_ref,
         bng_ref, bnb_ref, rcb_ref, skw_ref, skb_ref,
         ow_ref, ob_ref) = refs[:n_fixed]
        gw_refs = refs[n_fixed:n_fixed + n_groups]
        out_ref = refs[n_fixed + n_groups]

        # Hoisted once: (ch, BW) validity mask (1 on real columns, 0 on halos).
        mask_c = jnp.broadcast_to(mask_ref[...], (ch, BW))
        inv_n = 1.0 / float(B * L)

        def mm(a, b):
            # bf16 MXU matmul with f32 accumulation.
            return jnp.dot(a.astype(bf16), b.astype(bf16),
                           preferred_element_type=jnp.float32)

        def bn_relu(h, gamma, beta):
            # Training-mode BatchNorm1d (biased stats over batch x length) + ReLU.
            # Halo columns of h are exactly zero, so lane sums over the packed tile
            # equal the batch+length sums; variance is two-pass (masked) so it
            # cannot cancel catastrophically and is >= 0 by construction.
            mean = jnp.sum(h, axis=1, keepdims=True) * inv_n
            d = (h - mean) * mask_c
            var = jnp.sum(d * d, axis=1, keepdims=True) * inv_n
            y = d * (lax.rsqrt(var + EPS) * gamma) + beta
            # Re-zero halos: they provide the next dilated conv's zero padding and
            # keep the next BatchNorm's lane sums exact.
            return jnp.maximum(y, 0.0) * mask_c

        # Pre conv (masked: feeds BN stats) and pre-skip 1x1 (skip path: unmasked,
        # its halos never feed BN/convs and are cropped in the wrapper).
        conv = (mm(pcw_ref[...], x_ref[...]) + pcb_ref[...]) * mask_c
        skip = mm(psw_ref[...], conv) + psb_ref[...]

        si = 0
        for g, (start, cnt, k, dil, has_skip) in enumerate(groups):
            gw_ref = gw_refs[g]                       # (2*cnt, k*ch, ch) bf16
            pad = dil * (k - 1) // 2
            shifts = [pad - j * dil for j in range(k)]   # static lane shifts

            def dconv(w, bias, h, shifts=shifts, k=k):
                # Shift-at-accumulate dilated conv: one (k*ch, ch) @ (ch, BW) MXU
                # matmul for all taps, then k static lane shifts + adds.  Circular
                # wrap only ever lands on halo columns (per-sequence halo >= pad),
                # which are re-masked below; valid columns reproduce zero padding
                # exactly because h's halo columns are exactly zero.
                p = mm(w, h)                          # (k*ch, BW) f32
                acc = None
                for j in range(k):
                    pj = p[j * ch:(j + 1) * ch, :]
                    if shifts[j] != 0:
                        pj = jnp.roll(pj, shifts[j], axis=1)
                    acc = pj if acc is None else acc + pj
                return (acc + bias) * mask_c

            def body(j, conv, start=start, gw_ref=gw_ref, dconv=dconv):
                i = start + j                         # dynamic layer index
                g_i = bng_ref[i]                      # (2, ch, 1)
                b_i = bnb_ref[i]
                c_i = rcb_ref[i]
                h = bn_relu(conv, g_i[0], b_i[0])
                h = dconv(gw_ref[2 * j], c_i[0], h)
                h = bn_relu(h, g_i[1], b_i[1])
                h = dconv(gw_ref[2 * j + 1], c_i[1], h)
                return conv + h

            conv = lax.fori_loop(0, cnt, body, conv)
            if has_skip:
                skip = skip + mm(skw_ref[si], conv) + skb_ref[si]
                si += 1

        # Output 1x1 conv over the full packed width (lane-dense store); the crop
        # to the valid window happens in the wrapper.
        out_ref[...] = mm(ow_ref[...], skip) + ob_ref[...]

    # Footprint-aware VMEM limit, clamped to a v7x-safe ceiling (64 MiB physical).
    def _nbytes(a):
        return a.size * a.dtype.itemsize
    arg_bytes = sum(_nbytes(a) for a in args)
    work_bytes = 4 * BW * ch * (8 + max(K))   # trunk/skip/temps + (k*ch, BW) matmul
    vmem_limit = int(min(max(2 * (arg_bytes + work_bytes), 16 << 20), 48 << 20))

    vmem = pl.BlockSpec(memory_space=pltpu.MemorySpace.VMEM)
    out_packed = pl.pallas_call(
        kernel,
        out_shape=jax.ShapeDtypeStruct((2, BW), jnp.float32),
        in_specs=[vmem] * len(args),
        out_specs=vmem,
        compiler_params=pltpu.CompilerParams(vmem_limit_bytes=vmem_limit),
    )(*args)

    out = out_packed.reshape(2, B, S)[:, :, pad_max + cr: pad_max + L - cr]
    return jnp.transpose(out, (1, 2, 0))                                  # (B, L_out, 2)


def init_params(key, ch, K, DIL):
    nl = len(K)
    kmax = max(K)
    n_skip = len(_skip_indices(nl))
    ks = jax.random.split(key, 12)

    def rnd(k_, shape, scale):
        return scale * jax.random.normal(k_, shape, jnp.float32)

    return {
        'pre_conv_w': rnd(ks[0], (ch, 4), 0.3),
        'pre_conv_b': rnd(ks[1], (ch, 1), 0.1),
        'pre_skip_w': rnd(ks[2], (ch, ch), 0.2),
        'pre_skip_b': rnd(ks[3], (ch, 1), 0.1),
        'bn_gamma':   1.0 + rnd(ks[4], (nl, 2, ch, 1), 0.1),
        'bn_beta':    rnd(ks[5], (nl, 2, ch, 1), 0.1),
        'res_w':      rnd(ks[6], (nl, 2, kmax, ch, ch), 0.1),   # (layer, conv#, tap, co, ci)
        'res_b':      rnd(ks[7], (nl, 2, ch, 1), 0.05),
        'skip_w':     rnd(ks[8], (n_skip, ch, ch), 0.2),
        'skip_b':     rnd(ks[9], (n_skip, ch, 1), 0.05),
        'out_w':      rnd(ks[10], (2, ch), 0.2),
        'out_b':      rnd(ks[11], (2, 1), 0.05),
    }


def reference_forward(x, params, K, DIL, bf16_matmul=False):
    """Pure-JAX reference mirroring the PyTorch module's forward semantics.

    With bf16_matmul=True the matmul/conv operands are cast to bf16 (f32
    accumulation), mirroring the kernel's MXU numerics for a tight comparison.
    """
    num_layers = len(K)
    CL = 2 * sum(d * (k - 1) for k, d in zip(K, DIL))
    cr = CL // 2
    mdt = jnp.bfloat16 if bf16_matmul else jnp.float32
    prec = None if bf16_matmul else lax.Precision.HIGHEST

    h = jnp.transpose(x, (0, 2, 1)).astype(jnp.float32)   # (B, 4, L)

    def conv1x1(w, b, t):
        y = jnp.einsum('oi,bil->bol', w.astype(mdt), t.astype(mdt),
                       precision=prec, preferred_element_type=jnp.float32)
        return y + b[None]

    def bn(t, g, bt):
        mean = jnp.mean(t, axis=(0, 2), keepdims=True)
        var = jnp.mean((t - mean) ** 2, axis=(0, 2), keepdims=True)
        return (t - mean) * lax.rsqrt(var + EPS) * g[None] + bt[None]

    def dconv(w, b, t, k, dil):
        pad = dil * (k - 1) // 2
        wr = jnp.transpose(w[:k], (1, 2, 0))   # (co, ci, k)
        y = lax.conv_general_dilated(
            t.astype(mdt), wr.astype(mdt), window_strides=(1,),
            padding=[(pad, pad)], rhs_dilation=(dil,),
            dimension_numbers=('NCH', 'OIH', 'NCH'),
            precision=prec, preferred_element_type=jnp.float32)
        return y + b[None]

    conv = conv1x1(params['pre_conv_w'], params['pre_conv_b'], h)
    skip = conv1x1(params['pre_skip_w'], params['pre_skip_b'], conv)
    si = 0
    for i in range(num_layers):
        k, dil = K[i], DIL[i]
        t = bn(conv, params['bn_gamma'][i, 0], params['bn_beta'][i, 0])
        t = jnp.maximum(t, 0.0)
        t = dconv(params['res_w'][i, 0], params['res_b'][i, 0], t, k, dil)
        t = bn(t, params['bn_gamma'][i, 1], params['bn_beta'][i, 1])
        t = jnp.maximum(t, 0.0)
        t = dconv(params['res_w'][i, 1], params['res_b'][i, 1], t, k, dil)
        conv = conv + t
        if (i + 1) % 4 == 0 or i + 1 == num_layers:
            skip = skip + conv1x1(params['skip_w'][si], params['skip_b'][si], conv)
            si += 1
    crop = skip[:, :, cr:-cr]
    out = conv1x1(params['out_w'], params['out_b'], crop)
    return jnp.transpose(out, (0, 2, 1))


if __name__ == "__main__":
    # Small config consistent with the module (SpliceAI(ch, K, DIL) is parametric):
    # two groups of 4 residual blocks with different (k, dil) and skip connections
    # after layers 4 and 8, mirroring the real 16-layer network's structure.
    K = [5, 5, 5, 5, 3, 3, 3, 3]
    DIL = [1, 1, 1, 1, 2, 2, 2, 2]
    ch = 32
    B = 2
    L = 128
    CL = 2 * sum(d * (k - 1) for k, d in zip(K, DIL))   # = 64 -> L_out = 64

    key = jax.random.PRNGKey(0)
    kx, kp = jax.random.split(key)
    x = jax.random.normal(kx, (B, L, 4), jnp.float32)   # (batch, seq, 4) one-hot-like
    params = init_params(kp, ch, K, DIL)

    out = spliceai_forward(x, params, K, DIL)
    out = jax.block_until_ready(out)
    assert out.shape == (B, L - CL, 2), out.shape

    # Tight check against a reference with identical (bf16-operand, f32-accum)
    # matmul numerics; loose drift guard against the full-f32 reference.
    ref16 = reference_forward(x, params, K, DIL, bf16_matmul=True)
    ref32 = reference_forward(x, params, K, DIL, bf16_matmul=False)
    scale = max(1.0, float(jnp.max(jnp.abs(ref32))))
    err16 = float(jnp.max(jnp.abs(out - ref16)))
    err32 = float(jnp.max(jnp.abs(out - ref32)))
    assert err16 <= 3e-3 * scale, f"bf16-ref mismatch: {err16} (scale {scale})"
    assert err32 <= 1e-1 * scale, f"f32-ref drift too large: {err32} (scale {scale})"

    print("KERNEL_OK")
</pallas_src>

<mosaic_0001>
module attributes {stable_mosaic.version = 11 : i64} {
  func.func @kernel(%arg0: memref<4x512xbf16, #tpu.memory_space<vmem>>, %arg1: memref<1x512xf32, #tpu.memory_space<vmem>>, %arg2: memref<32x4xbf16, #tpu.memory_space<vmem>>, %arg3: memref<32x1xf32, #tpu.memory_space<vmem>>, %arg4: memref<32x32xbf16, #tpu.memory_space<vmem>>, %arg5: memref<32x1xf32, #tpu.memory_space<vmem>>, %arg6: memref<8x2x32x1xf32, #tpu.memory_space<vmem>>, %arg7: memref<8x2x32x1xf32, #tpu.memory_space<vmem>>, %arg8: memref<8x2x32x1xf32, #tpu.memory_space<vmem>>, %arg9: memref<2x32x32xbf16, #tpu.memory_space<vmem>>, %arg10: memref<2x32x1xf32, #tpu.memory_space<vmem>>, %arg11: memref<2x32xbf16, #tpu.memory_space<vmem>>, %arg12: memref<2x1xf32, #tpu.memory_space<vmem>>, %arg13: memref<8x160x32xbf16, #tpu.memory_space<vmem>>, %arg14: memref<8x96x32xbf16, #tpu.memory_space<vmem>>, %arg15: memref<2x512xf32, #tpu.memory_space<vmem>>) attributes {dimension_semantics = [], scalar_prefetch = 0 : i64, scratch_operands = 0 : i64, tpu.core_type = #tpu.core_type<tc>} {
    %c0 = arith.constant 0 : index
    %c0_0 = arith.constant 0 : index
    %0 = vector.load %arg1[%c0, %c0_0] : memref<1x512xf32, #tpu.memory_space<vmem>>, vector<1x512xf32>
    %1 = vector.shape_cast %0 : vector<1x512xf32> to vector<1x512xf32>
    %2 = vector.broadcast %1 : vector<1x512xf32> to vector<32x512xf32>
    %c0_1 = arith.constant 0 : index
    %c0_2 = arith.constant 0 : index
    %3 = vector.load %arg2[%c0_1, %c0_2] : memref<32x4xbf16, #tpu.memory_space<vmem>>, vector<32x4xbf16>
    %c0_3 = arith.constant 0 : index
    %c0_4 = arith.constant 0 : index
    %4 = vector.load %arg0[%c0_3, %c0_4] : memref<4x512xbf16, #tpu.memory_space<vmem>>, vector<4x512xbf16>
    %cst = arith.constant dense<0.000000e+00> : vector<32x512xf32>
    %5 = tpu.matmul %3, %4, %cst {dimension_numbers = #tpu.dot_dimension_numbers<[1], [0], [0], [1], [0, 0, 1, 1], [], []>} : vector<32x4xbf16>, vector<4x512xbf16>, vector<32x512xf32> -> vector<32x512xf32>
    %c0_5 = arith.constant 0 : index
    %c0_6 = arith.constant 0 : index
    %6 = vector.load %arg3[%c0_5, %c0_6] : memref<32x1xf32, #tpu.memory_space<vmem>>, vector<32x1xf32>
    %7 = vector.broadcast %6 : vector<32x1xf32> to vector<32x512xf32>
    %8 = arith.addf %5, %7 : vector<32x512xf32>
    %9 = arith.mulf %8, %2 : vector<32x512xf32>
    %c0_7 = arith.constant 0 : index
    %c0_8 = arith.constant 0 : index
    %10 = vector.load %arg4[%c0_7, %c0_8] : memref<32x32xbf16, #tpu.memory_space<vmem>>, vector<32x32xbf16>
    %11 = arith.truncf %9 : vector<32x512xf32> to vector<32x512xbf16>
    %cst_9 = arith.constant dense<0.000000e+00> : vector<32x512xf32>
    %12 = tpu.matmul %10, %11, %cst_9 {dimension_numbers = #tpu.dot_dimension_numbers<[1], [0], [0], [1], [0, 0, 1, 1], [], []>} : vector<32x32xbf16>, vector<32x512xbf16>, vector<32x512xf32> -> vector<32x512xf32>
    %c0_10 = arith.constant 0 : index
    %c0_11 = arith.constant 0 : index
    %13 = vector.load %arg5[%c0_10, %c0_11] : memref<32x1xf32, #tpu.memory_space<vmem>>, vector<32x1xf32>
    %14 = vector.broadcast %13 : vector<32x1xf32> to vector<32x512xf32>
    %15 = arith.addf %12, %14 : vector<32x512xf32>
    %c0_i32 = arith.constant 0 : i32
    %c4_i32 = arith.constant 4 : i32
    %16 = arith.addi %c0_i32, %c4_i32 : i32
    %c1_i32 = arith.constant 1 : i32
    %17 = scf.for %arg16 = %c0_i32 to %16 step %c1_i32 iter_args(%arg17 = %9) -> (vector<32x512xf32>)  : i32 {
      %c0_i32_37 = arith.constant 0 : i32
      %45 = arith.addi %c0_i32_37, %arg16 : i32
      %46 = arith.index_cast %45 : i32 to index
      %c0_38 = arith.constant 0 : index
      %c0_39 = arith.constant 0 : index
      %c0_40 = arith.constant 0 : index
      %47 = vector.load %arg6[%46, %c0_38, %c0_39, %c0_40] : memref<8x2x32x1xf32, #tpu.memory_space<vmem>>, vector<1x2x32x1xf32>
      %48 = vector.shape_cast %47 : vector<1x2x32x1xf32> to vector<2x32x1xf32>
      %49 = arith.index_cast %45 : i32 to index
      %c0_41 = arith.constant 0 : index
      %c0_42 = arith.constant 0 : index
      %c0_43 = arith.constant 0 : index
      %50 = vector.load %arg7[%49, %c0_41, %c0_42, %c0_43] : memref<8x2x32x1xf32, #tpu.memory_space<vmem>>, vector<1x2x32x1xf32>
      %51 = vector.shape_cast %50 : vector<1x2x32x1xf32> to vector<2x32x1xf32>
      %52 = arith.index_cast %45 : i32 to index
      %c0_44 = arith.constant 0 : index
      %c0_45 = arith.constant 0 : index
      %c0_46 = arith.constant 0 : index
      %53 = vector.load %arg8[%52, %c0_44, %c0_45, %c0_46] : memref<8x2x32x1xf32, #tpu.memory_space<vmem>>, vector<1x2x32x1xf32>
      %54 = vector.shape_cast %53 : vector<1x2x32x1xf32> to vector<2x32x1xf32>
      %55 = vector.extract_strided_slice %48 {offsets = [0, 0, 0], sizes = [1, 32, 1], strides = [1, 1, 1]} : vector<2x32x1xf32> to vector<1x32x1xf32>
      %56 = vector.shape_cast %55 : vector<1x32x1xf32> to vector<32x1xf32>
      %57 = vector.extract_strided_slice %51 {offsets = [0, 0, 0], sizes = [1, 32, 1], strides = [1, 1, 1]} : vector<2x32x1xf32> to vector<1x32x1xf32>
      %58 = vector.shape_cast %57 : vector<1x32x1xf32> to vector<32x1xf32>
      %cst_47 = arith.constant dense<0.000000e+00> : vector<32xf32>
      %59 = vector.multi_reduction <add>, %arg17, %cst_47 [1] : vector<32x512xf32> to vector<32xf32>
      %60 = vector.shape_cast %59 : vector<32xf32> to vector<32x1xf32>
      %cst_48 = arith.constant 3.906250e-03 : f32
      %61 = vector.broadcast %cst_48 : f32 to vector<32x1xf32>
      %62 = arith.mulf %60, %61 : vector<32x1xf32>
      %63 = vector.broadcast %62 : vector<32x1xf32> to vector<32x512xf32>
      %64 = arith.subf %arg17, %63 : vector<32x512xf32>
      %65 = arith.mulf %64, %2 : vector<32x512xf32>
      %66 = arith.mulf %65, %65 : vector<32x512xf32>
      %cst_49 = arith.constant dense<0.000000e+00> : vector<32xf32>
      %67 = vector.multi_reduction <add>, %66, %cst_49 [1] : vector<32x512xf32> to vector<32xf32>
      %68 = vector.shape_cast %67 : vector<32xf32> to vector<32x1xf32>
      %cst_50 = arith.constant 3.906250e-03 : f32
      %69 = vector.broadcast %cst_50 : f32 to vector<32x1xf32>
      %70 = arith.mulf %68, %69 : vector<32x1xf32>
      %cst_51 = arith.constant 9.99999974E-6 : f32
      %71 = vector.broadcast %cst_51 : f32 to vector<32x1xf32>
      %72 = arith.addf %70, %71 : vector<32x1xf32>
      %73 = math.rsqrt %72 : vector<32x1xf32>
      %74 = arith.mulf %73, %56 : vector<32x1xf32>
      %75 = vector.broadcast %74 : vector<32x1xf32> to vector<32x512xf32>
      %76 = arith.mulf %65, %75 : vector<32x512xf32>
      %77 = vector.broadcast %58 : vector<32x1xf32> to vector<32x512xf32>
      %78 = arith.addf %76, %77 : vector<32x512xf32>
      %cst_52 = arith.constant 0.000000e+00 : f32
      %79 = vector.broadcast %cst_52 : f32 to vector<32x512xf32>
      %80 = arith.maximumf %78, %79 : vector<32x512xf32>
      %81 = arith.mulf %80, %2 : vector<32x512xf32>
      %c2_i32 = arith.constant 2 : i32
      %82 = arith.muli %c2_i32, %arg16 : i32
      %83 = arith.index_cast %82 : i32 to index
      %c0_53 = arith.constant 0 : index
      %c0_54 = arith.constant 0 : index
      %84 = vector.load %arg13[%83, %c0_53, %c0_54] : memref<8x160x32xbf16, #tpu.memory_space<vmem>>, vector<1x160x32xbf16>
      %85 = vector.shape_cast %84 : vector<1x160x32xbf16> to vector<160x32xbf16>
      %86 = vector.extract_strided_slice %54 {offsets = [0, 0, 0], sizes = [1, 32, 1], strides = [1, 1, 1]} : vector<2x32x1xf32> to vector<1x32x1xf32>
      %87 = vector.shape_cast %86 : vector<1x32x1xf32> to vector<32x1xf32>
      %88 = arith.truncf %81 : vector<32x512xf32> to vector<32x512xbf16>
      %cst_55 = arith.constant dense<0.000000e+00> : vector<160x512xf32>
      %89 = tpu.matmul %85, %88, %cst_55 {dimension_numbers = #tpu.dot_dimension_numbers<[1], [0], [0], [1], [0, 0, 1, 1], [], []>} : vector<160x32xbf16>, vector<32x512xbf16>, vector<160x512xf32> -> vector<160x512xf32>
      %90 = vector.extract_strided_slice %89 {offsets = [0, 0], sizes = [32, 512], strides = [1, 1]} : vector<160x512xf32> to vector<32x512xf32>
      %91 = vector.extract_strided_slice %90 {offsets = [0, 510], sizes = [32, 2], strides = [1, 1]} : vector<32x512xf32> to vector<32x2xf32>
      %92 = vector.extract_strided_slice %90 {offsets = [0, 0], sizes = [32, 510], strides = [1, 1]} : vector<32x512xf32> to vector<32x510xf32>
      %93 = tpu.concatenate %91, %92 in 1 : vector<32x2xf32>, vector<32x510xf32> -> vector<32x512xf32>
      %94 = vector.extract_strided_slice %89 {offsets = [32, 0], sizes = [32, 512], strides = [1, 1]} : vector<160x512xf32> to vector<32x512xf32>
      %95 = vector.extract_strided_slice %94 {offsets = [0, 511], sizes = [32, 1], strides = [1, 1]} : vector<32x512xf32> to vector<32x1xf32>
      %96 = vector.extract_strided_slice %94 {offsets = [0, 0], sizes = [32, 511], strides = [1, 1]} : vector<32x512xf32> to vector<32x511xf32>
      %97 = tpu.concatenate %95, %96 in 1 : vector<32x1xf32>, vector<32x511xf32> -> vector<32x512xf32>
      %98 = arith.addf %93, %97 : vector<32x512xf32>
      %99 = vector.extract_strided_slice %89 {offsets = [64, 0], sizes = [32, 512], strides = [1, 1]} : vector<160x512xf32> to vector<32x512xf32>
      %100 = arith.addf %98, %99 : vector<32x512xf32>
      %101 = vector.extract_strided_slice %89 {offsets = [96, 0], sizes = [32, 512], strides = [1, 1]} : vector<160x512xf32> to vector<32x512xf32>
      %102 = vector.extract_strided_slice %101 {offsets = [0, 1], sizes = [32, 511], strides = [1, 1]} : vector<32x512xf32> to vector<32x511xf32>
      %103 = vector.extract_strided_slice %101 {offsets = [0, 0], sizes = [32, 1], strides = [1, 1]} : vector<32x512xf32> to vector<32x1xf32>
      %104 = tpu.concatenate %102, %103 in 1 : vector<32x511xf32>, vector<32x1xf32> -> vector<32x512xf32>
      %105 = arith.addf %100, %104 : vector<32x512xf32>
      %106 = vector.extract_strided_slice %89 {offsets = [128, 0], sizes = [32, 512], strides = [1, 1]} : vector<160x512xf32> to vector<32x512xf32>
      %107 = vector.extract_strided_slice %106 {offsets = [0, 2], sizes = [32, 510], strides = [1, 1]} : vector<32x512xf32> to vector<32x510xf32>
      %108 = vector.extract_strided_slice %106 {offsets = [0, 0], sizes = [32, 2], strides = [1, 1]} : vector<32x512xf32> to vector<32x2xf32>
      %109 = tpu.concatenate %107, %108 in 1 : vector<32x510xf32>, vector<32x2xf32> -> vector<32x512xf32>
      %110 = arith.addf %105, %109 : vector<32x512xf32>
      %111 = vector.broadcast %87 : vector<32x1xf32> to vector<32x512xf32>
      %112 = arith.addf %110, %111 : vector<32x512xf32>
      %113 = arith.mulf %112, %2 : vector<32x512xf32>
      %114 = vector.extract_strided_slice %48 {offsets = [1, 0, 0], sizes = [1, 32, 1], strides = [1, 1, 1]} : vector<2x32x1xf32> to vector<1x32x1xf32>
      %115 = vector.shape_cast %114 : vector<1x32x1xf32> to vector<32x1xf32>
      %116 = vector.extract_strided_slice %51 {offsets = [1, 0, 0], sizes = [1, 32, 1], strides = [1, 1, 1]} : vector<2x32x1xf32> to vector<1x32x1xf32>
      %117 = vector.shape_cast %116 : vector<1x32x1xf32> to vector<32x1xf32>
      %cst_56 = arith.constant dense<0.000000e+00> : vector<32xf32>
      %118 = vector.multi_reduction <add>, %113, %cst_56 [1] : vector<32x512xf32> to vector<32xf32>
      %119 = vector.shape_cast %118 : vector<32xf32> to vector<32x1xf32>
      %cst_57 = arith.constant 3.906250e-03 : f32
      %120 = vector.broadcast %cst_57 : f32 to vector<32x1xf32>
      %121 = arith.mulf %119, %120 : vector<32x1xf32>
      %122 = vector.broadcast %121 : vector<32x1xf32> to vector<32x512xf32>
      %123 = arith.subf %113, %122 : vector<32x512xf32>
      %124 = arith.mulf %123, %2 : vector<32x512xf32>
      %125 = arith.mulf %124, %124 : vector<32x512xf32>
      %cst_58 = arith.constant dense<0.000000e+00> : vector<32xf32>
      %126 = vector.multi_reduction <add>, %125, %cst_58 [1] : vector<32x512xf32> to vector<32xf32>
      %127 = vector.shape_cast %126 : vector<32xf32> to vector<32x1xf32>
      %cst_59 = arith.constant 3.906250e-03 : f32
      %128 = vector.broadcast %cst_59 : f32 to vector<32x1xf32>
      %129 = arith.mulf %127, %128 : vector<32x1xf32>
      %cst_60 = arith.constant 9.99999974E-6 : f32
      %130 = vector.broadcast %cst_60 : f32 to vector<32x1xf32>
      %131 = arith.addf %129, %130 : vector<32x1xf32>
      %132 = math.rsqrt %131 : vector<32x1xf32>
      %133 = arith.mulf %132, %115 : vector<32x1xf32>
      %134 = vector.broadcast %133 : vector<32x1xf32> to vector<32x512xf32>
      %135 = arith.mulf %124, %134 : vector<32x512xf32>
      %136 = vector.broadcast %117 : vector<32x1xf32> to vector<32x512xf32>
      %137 = arith.addf %135, %136 : vector<32x512xf32>
      %cst_61 = arith.constant 0.000000e+00 : f32
      %138 = vector.broadcast %cst_61 : f32 to vector<32x512xf32>
      %139 = arith.maximumf %137, %138 : vector<32x512xf32>
      %140 = arith.mulf %139, %2 : vector<32x512xf32>
      %c2_i32_62 = arith.constant 2 : i32
      %141 = arith.muli %c2_i32_62, %arg16 : i32
      %c1_i32_63 = arith.constant 1 : i32
      %142 = arith.addi %141, %c1_i32_63 : i32
      %143 = arith.index_cast %142 : i32 to index
      %c0_64 = arith.constant 0 : index
      %c0_65 = arith.constant 0 : index
      %144 = vector.load %arg13[%143, %c0_64, %c0_65] : memref<8x160x32xbf16, #tpu.memory_space<vmem>>, vector<1x160x32xbf16>
      %145 = vector.shape_cast %144 : vector<1x160x32xbf16> to vector<160x32xbf16>
      %146 = vector.extract_strided_slice %54 {offsets = [1, 0, 0], sizes = [1, 32, 1], strides = [1, 1, 1]} : vector<2x32x1xf32> to vector<1x32x1xf32>
      %147 = vector.shape_cast %146 : vector<1x32x1xf32> to vector<32x1xf32>
      %148 = arith.truncf %140 : vector<32x512xf32> to vector<32x512xbf16>
      %cst_66 = arith.constant dense<0.000000e+00> : vector<160x512xf32>
      %149 = tpu.matmul %145, %148, %cst_66 {dimension_numbers = #tpu.dot_dimension_numbers<[1], [0], [0], [1], [0, 0, 1, 1], [], []>} : vector<160x32xbf16>, vector<32x512xbf16>, vector<160x512xf32> -> vector<160x512xf32>
      %150 = vector.extract_strided_slice %149 {offsets = [0, 0], sizes = [32, 512], strides = [1, 1]} : vector<160x512xf32> to vector<32x512xf32>
      %151 = vector.extract_strided_slice %150 {offsets = [0, 510], sizes = [32, 2], strides = [1, 1]} : vector<32x512xf32> to vector<32x2xf32>
      %152 = vector.extract_strided_slice %150 {offsets = [0, 0], sizes = [32, 510], strides = [1, 1]} : vector<32x512xf32> to vector<32x510xf32>
      %153 = tpu.concatenate %151, %152 in 1 : vector<32x2xf32>, vector<32x510xf32> -> vector<32x512xf32>
      %154 = vector.extract_strided_slice %149 {offsets = [32, 0], sizes = [32, 512], strides = [1, 1]} : vector<160x512xf32> to vector<32x512xf32>
      %155 = vector.extract_strided_slice %154 {offsets = [0, 511], sizes = [32, 1], strides = [1, 1]} : vector<32x512xf32> to vector<32x1xf32>
      %156 = vector.extract_strided_slice %154 {offsets = [0, 0], sizes = [32, 511], strides = [1, 1]} : vector<32x512xf32> to vector<32x511xf32>
      %157 = tpu.concatenate %155, %156 in 1 : vector<32x1xf32>, vector<32x511xf32> -> vector<32x512xf32>
      %158 = arith.addf %153, %157 : vector<32x512xf32>
      %159 = vector.extract_strided_slice %149 {offsets = [64, 0], sizes = [32, 512], strides = [1, 1]} : vector<160x512xf32> to vector<32x512xf32>
      %160 = arith.addf %158, %159 : vector<32x512xf32>
      %161 = vector.extract_strided_slice %149 {offsets = [96, 0], sizes = [32, 512], strides = [1, 1]} : vector<160x512xf32> to vector<32x512xf32>
      %162 = vector.extract_strided_slice %161 {offsets = [0, 1], sizes = [32, 511], strides = [1, 1]} : vector<32x512xf32> to vector<32x511xf32>
      %163 = vector.extract_strided_slice %161 {offsets = [0, 0], sizes = [32, 1], strides = [1, 1]} : vector<32x512xf32> to vector<32x1xf32>
      %164 = tpu.concatenate %162, %163 in 1 : vector<32x511xf32>, vector<32x1xf32> -> vector<32x512xf32>
      %165 = arith.addf %160, %164 : vector<32x512xf32>
      %166 = vector.extract_strided_slice %149 {offsets = [128, 0], sizes = [32, 512], strides = [1, 1]} : vector<160x512xf32> to vector<32x512xf32>
      %167 = vector.extract_strided_slice %166 {offsets = [0, 2], sizes = [32, 510], strides = [1, 1]} : vector<32x512xf32> to vector<32x510xf32>
      %168 = vector.extract_strided_slice %166 {offsets = [0, 0], sizes = [32, 2], strides = [1, 1]} : vector<32x512xf32> to vector<32x2xf32>
      %169 = tpu.concatenate %167, %168 in 1 : vector<32x510xf32>, vector<32x2xf32> -> vector<32x512xf32>
      %170 = arith.addf %165, %169 : vector<32x512xf32>
      %171 = vector.broadcast %147 : vector<32x1xf32> to vector<32x512xf32>
      %172 = arith.addf %170, %171 : vector<32x512xf32>
      %173 = arith.mulf %172, %2 : vector<32x512xf32>
      %174 = arith.addf %arg17, %173 : vector<32x512xf32>
      scf.yield %174 : vector<32x512xf32>
    }
    %c4_i32_12 = arith.constant 4 : i32
    %c0_13 = arith.constant 0 : index
    %c0_14 = arith.constant 0 : index
    %c0_15 = arith.constant 0 : index
    %18 = vector.load %arg9[%c0_13, %c0_14, %c0_15] : memref<2x32x32xbf16, #tpu.memory_space<vmem>>, vector<1x32x32xbf16>
    %19 = vector.shape_cast %18 : vector<1x32x32xbf16> to vector<32x32xbf16>
    %20 = arith.truncf %17 : vector<32x512xf32> to vector<32x512xbf16>
    %cst_16 = arith.constant dense<0.000000e+00> : vector<32x512xf32>
    %21 = tpu.matmul %19, %20, %cst_16 {dimension_numbers = #tpu.dot_dimension_numbers<[1], [0], [0], [1], [0, 0, 1, 1], [], []>} : vector<32x32xbf16>, vector<32x512xbf16>, vector<32x512xf32> -> vector<32x512xf32>
    %22 = arith.addf %15, %21 : vector<32x512xf32>
    %c0_17 = arith.constant 0 : index
    %c0_18 = arith.constant 0 : index
    %c0_19 = arith.constant 0 : index
    %23 = vector.load %arg10[%c0_17, %c0_18, %c0_19] : memref<2x32x1xf32, #tpu.memory_space<vmem>>, vector<1x32x1xf32>
    %24 = vector.shape_cast %23 : vector<1x32x1xf32> to vector<32x1xf32>
    %25 = vector.broadcast %24 : vector<32x1xf32> to vector<32x512xf32>
    %26 = arith.addf %22, %25 : vector<32x512xf32>
    %c0_i32_20 = arith.constant 0 : i32
    %c4_i32_21 = arith.constant 4 : i32
    %27 = arith.addi %c0_i32_20, %c4_i32_21 : i32
    %c1_i32_22 = arith.constant 1 : i32
    %28 = scf.for %arg16 = %c0_i32_20 to %27 step %c1_i32_22 iter_args(%arg17 = %17) -> (vector<32x512xf32>)  : i32 {
      %c4_i32_37 = arith.constant 4 : i32
      %45 = arith.addi %c4_i32_37, %arg16 : i32
      %46 = arith.index_cast %45 : i32 to index
      %c0_38 = arith.constant 0 : index
      %c0_39 = arith.constant 0 : index
      %c0_40 = arith.constant 0 : index
      %47 = vector.load %arg6[%46, %c0_38, %c0_39, %c0_40] : memref<8x2x32x1xf32, #tpu.memory_space<vmem>>, vector<1x2x32x1xf32>
      %48 = vector.shape_cast %47 : vector<1x2x32x1xf32> to vector<2x32x1xf32>
      %49 = arith.index_cast %45 : i32 to index
      %c0_41 = arith.constant 0 : index
      %c0_42 = arith.constant 0 : index
      %c0_43 = arith.constant 0 : index
      %50 = vector.load %arg7[%49, %c0_41, %c0_42, %c0_43] : memref<8x2x32x1xf32, #tpu.memory_space<vmem>>, vector<1x2x32x1xf32>
      %51 = vector.shape_cast %50 : vector<1x2x32x1xf32> to vector<2x32x1xf32>
      %52 = arith.index_cast %45 : i32 to index
      %c0_44 = arith.constant 0 : index
      %c0_45 = arith.constant 0 : index
      %c0_46 = arith.constant 0 : index
      %53 = vector.load %arg8[%52, %c0_44, %c0_45, %c0_46] : memref<8x2x32x1xf32, #tpu.memory_space<vmem>>, vector<1x2x32x1xf32>
      %54 = vector.shape_cast %53 : vector<1x2x32x1xf32> to vector<2x32x1xf32>
      %55 = vector.extract_strided_slice %48 {offsets = [0, 0, 0], sizes = [1, 32, 1], strides = [1, 1, 1]} : vector<2x32x1xf32> to vector<1x32x1xf32>
      %56 = vector.shape_cast %55 : vector<1x32x1xf32> to vector<32x1xf32>
      %57 = vector.extract_strided_slice %51 {offsets = [0, 0, 0], sizes = [1, 32, 1], strides = [1, 1, 1]} : vector<2x32x1xf32> to vector<1x32x1xf32>
      %58 = vector.shape_cast %57 : vector<1x32x1xf32> to vector<32x1xf32>
      %cst_47 = arith.constant dense<0.000000e+00> : vector<32xf32>
      %59 = vector.multi_reduction <add>, %arg17, %cst_47 [1] : vector<32x512xf32> to vector<32xf32>
      %60 = vector.shape_cast %59 : vector<32xf32> to vector<32x1xf32>
      %cst_48 = arith.constant 3.906250e-03 : f32
      %61 = vector.broadcast %cst_48 : f32 to vector<32x1xf32>
      %62 = arith.mulf %60, %61 : vector<32x1xf32>
      %63 = vector.broadcast %62 : vector<32x1xf32> to vector<32x512xf32>
      %64 = arith.subf %arg17, %63 : vector<32x512xf32>
      %65 = arith.mulf %64, %2 : vector<32x512xf32>
      %66 = arith.mulf %65, %65 : vector<32x512xf32>
      %cst_49 = arith.constant dense<0.000000e+00> : vector<32xf32>
      %67 = vector.multi_reduction <add>, %66, %cst_49 [1] : vector<32x512xf32> to vector<32xf32>
      %68 = vector.shape_cast %67 : vector<32xf32> to vector<32x1xf32>
      %cst_50 = arith.constant 3.906250e-03 : f32
      %69 = vector.broadcast %cst_50 : f32 to vector<32x1xf32>
      %70 = arith.mulf %68, %69 : vector<32x1xf32>
      %cst_51 = arith.constant 9.99999974E-6 : f32
      %71 = vector.broadcast %cst_51 : f32 to vector<32x1xf32>
      %72 = arith.addf %70, %71 : vector<32x1xf32>
      %73 = math.rsqrt %72 : vector<32x1xf32>
      %74 = arith.mulf %73, %56 : vector<32x1xf32>
      %75 = vector.broadcast %74 : vector<32x1xf32> to vector<32x512xf32>
      %76 = arith.mulf %65, %75 : vector<32x512xf32>
      %77 = vector.broadcast %58 : vector<32x1xf32> to vector<32x512xf32>
      %78 = arith.addf %76, %77 : vector<32x512xf32>
      %cst_52 = arith.constant 0.000000e+00 : f32
      %79 = vector.broadcast %cst_52 : f32 to vector<32x512xf32>
      %80 = arith.maximumf %78, %79 : vector<32x512xf32>
      %81 = arith.mulf %80, %2 : vector<32x512xf32>
      %c2_i32 = arith.constant 2 : i32
      %82 = arith.muli %c2_i32, %arg16 : i32
      %83 = arith.index_cast %82 : i32 to index
      %c0_53 = arith.constant 0 : index
      %c0_54 = arith.constant 0 : index
      %84 = vector.load %arg14[%83, %c0_53, %c0_54] : memref<8x96x32xbf16, #tpu.memory_space<vmem>>, vector<1x96x32xbf16>
      %85 = vector.shape_cast %84 : vector<1x96x32xbf16> to vector<96x32xbf16>
      %86 = vector.extract_strided_slice %54 {offsets = [0, 0, 0], sizes = [1, 32, 1], strides = [1, 1, 1]} : vector<2x32x1xf32> to vector<1x32x1xf32>
      %87 = vector.shape_cast %86 : vector<1x32x1xf32> to vector<32x1xf32>
      %88 = arith.truncf %81 : vector<32x512xf32> to vector<32x512xbf16>
      %cst_55 = arith.constant dense<0.000000e+00> : vector<96x512xf32>
      %89 = tpu.matmul %85, %88, %cst_55 {dimension_numbers = #tpu.dot_dimension_numbers<[1], [0], [0], [1], [0, 0, 1, 1], [], []>} : vector<96x32xbf16>, vector<32x512xbf16>, vector<96x512xf32> -> vector<96x512xf32>
      %90 = vector.extract_strided_slice %89 {offsets = [0, 0], sizes = [32, 512], strides = [1, 1]} : vector<96x512xf32> to vector<32x512xf32>
      %91 = vector.extract_strided_slice %90 {offsets = [0, 510], sizes = [32, 2], strides = [1, 1]} : vector<32x512xf32> to vector<32x2xf32>
      %92 = vector.extract_strided_slice %90 {offsets = [0, 0], sizes = [32, 510], strides = [1, 1]} : vector<32x512xf32> to vector<32x510xf32>
      %93 = tpu.concatenate %91, %92 in 1 : vector<32x2xf32>, vector<32x510xf32> -> vector<32x512xf32>
      %94 = vector.extract_strided_slice %89 {offsets = [32, 0], sizes = [32, 512], strides = [1, 1]} : vector<96x512xf32> to vector<32x512xf32>
      %95 = arith.addf %93, %94 : vector<32x512xf32>
      %96 = vector.extract_strided_slice %89 {offsets = [64, 0], sizes = [32, 512], strides = [1, 1]} : vector<96x512xf32> to vector<32x512xf32>
      %97 = vector.extract_strided_slice %96 {offsets = [0, 2], sizes = [32, 510], strides = [1, 1]} : vector<32x512xf32> to vector<32x510xf32>
      %98 = vector.extract_strided_slice %96 {offsets = [0, 0], sizes = [32, 2], strides = [1, 1]} : vector<32x512xf32> to vector<32x2xf32>
      %99 = tpu.concatenate %97, %98 in 1 : vector<32x510xf32>, vector<32x2xf32> -> vector<32x512xf32>
      %100 = arith.addf %95, %99 : vector<32x512xf32>
      %101 = vector.broadcast %87 : vector<32x1xf32> to vector<32x512xf32>
      %102 = arith.addf %100, %101 : vector<32x512xf32>
      %103 = arith.mulf %102, %2 : vector<32x512xf32>
      %104 = vector.extract_strided_slice %48 {offsets = [1, 0, 0], sizes = [1, 32, 1], strides = [1, 1, 1]} : vector<2x32x1xf32> to vector<1x32x1xf32>
      %105 = vector.shape_cast %104 : vector<1x32x1xf32> to vector<32x1xf32>
      %106 = vector.extract_strided_slice %51 {offsets = [1, 0, 0], sizes = [1, 32, 1], strides = [1, 1, 1]} : vector<2x32x1xf32> to vector<1x32x1xf32>
      %107 = vector.shape_cast %106 : vector<1x32x1xf32> to vector<32x1xf32>
      %cst_56 = arith.constant dense<0.000000e+00> : vector<32xf32>
      %108 = vector.multi_reduction <add>, %103, %cst_56 [1] : vector<32x512xf32> to vector<32xf32>
      %109 = vector.shape_cast %108 : vector<32xf32> to vector<32x1xf32>
      %cst_57 = arith.constant 3.906250e-03 : f32
      %110 = vector.broadcast %cst_57 : f32 to vector<32x1xf32>
      %111 = arith.mulf %109, %110 : vector<32x1xf32>
      %112 = vector.broadcast %111 : vector<32x1xf32> to vector<32x512xf32>
      %113 = arith.subf %103, %112 : vector<32x512xf32>
      %114 = arith.mulf %113, %2 : vector<32x512xf32>
      %115 = arith.mulf %114, %114 : vector<32x512xf32>
      %cst_58 = arith.constant dense<0.000000e+00> : vector<32xf32>
      %116 = vector.multi_reduction <add>, %115, %cst_58 [1] : vector<32x512xf32> to vector<32xf32>
      %117 = vector.shape_cast %116 : vector<32xf32> to vector<32x1xf32>
      %cst_59 = arith.constant 3.906250e-03 : f32
      %118 = vector.broadcast %cst_59 : f32 to vector<32x1xf32>
      %119 = arith.mulf %117, %118 : vector<32x1xf32>
      %cst_60 = arith.constant 9.99999974E-6 : f32
      %120 = vector.broadcast %cst_60 : f32 to vector<32x1xf32>
      %121 = arith.addf %119, %120 : vector<32x1xf32>
      %122 = math.rsqrt %121 : vector<32x1xf32>
      %123 = arith.mulf %122, %105 : vector<32x1xf32>
      %124 = vector.broadcast %123 : vector<32x1xf32> to vector<32x512xf32>
      %125 = arith.mulf %114, %124 : vector<32x512xf32>
      %126 = vector.broadcast %107 : vector<32x1xf32> to vector<32x512xf32>
      %127 = arith.addf %125, %126 : vector<32x512xf32>
      %cst_61 = arith.constant 0.000000e+00 : f32
      %128 = vector.broadcast %cst_61 : f32 to vector<32x512xf32>
      %129 = arith.maximumf %127, %128 : vector<32x512xf32>
      %130 = arith.mulf %129, %2 : vector<32x512xf32>
      %c2_i32_62 = arith.constant 2 : i32
      %131 = arith.muli %c2_i32_62, %arg16 : i32
      %c1_i32_63 = arith.constant 1 : i32
      %132 = arith.addi %131, %c1_i32_63 : i32
      %133 = arith.index_cast %132 : i32 to index
      %c0_64 = arith.constant 0 : index
      %c0_65 = arith.constant 0 : index
      %134 = vector.load %arg14[%133, %c0_64, %c0_65] : memref<8x96x32xbf16, #tpu.memory_space<vmem>>, vector<1x96x32xbf16>
      %135 = vector.shape_cast %134 : vector<1x96x32xbf16> to vector<96x32xbf16>
      %136 = vector.extract_strided_slice %54 {offsets = [1, 0, 0], sizes = [1, 32, 1], strides = [1, 1, 1]} : vector<2x32x1xf32> to vector<1x32x1xf32>
      %137 = vector.shape_cast %136 : vector<1x32x1xf32> to vector<32x1xf32>
      %138 = arith.truncf %130 : vector<32x512xf32> to vector<32x512xbf16>
      %cst_66 = arith.constant dense<0.000000e+00> : vector<96x512xf32>
      %139 = tpu.matmul %135, %138, %cst_66 {dimension_numbers = #tpu.dot_dimension_numbers<[1], [0], [0], [1], [0, 0, 1, 1], [], []>} : vector<96x32xbf16>, vector<32x512xbf16>, vector<96x512xf32> -> vector<96x512xf32>
      %140 = vector.extract_strided_slice %139 {offsets = [0, 0], sizes = [32, 512], strides = [1, 1]} : vector<96x512xf32> to vector<32x512xf32>
      %141 = vector.extract_strided_slice %140 {offsets = [0, 510], sizes = [32, 2], strides = [1, 1]} : vector<32x512xf32> to vector<32x2xf32>
      %142 = vector.extract_strided_slice %140 {offsets = [0, 0], sizes = [32, 510], strides = [1, 1]} : vector<32x512xf32> to vector<32x510xf32>
      %143 = tpu.concatenate %141, %142 in 1 : vector<32x2xf32>, vector<32x510xf32> -> vector<32x512xf32>
      %144 = vector.extract_strided_slice %139 {offsets = [32, 0], sizes = [32, 512], strides = [1, 1]} : vector<96x512xf32> to vector<32x512xf32>
      %145 = arith.addf %143, %144 : vector<32x512xf32>
      %146 = vector.extract_strided_slice %139 {offsets = [64, 0], sizes = [32, 512], strides = [1, 1]} : vector<96x512xf32> to vector<32x512xf32>
      %147 = vector.extract_strided_slice %146 {offsets = [0, 2], sizes = [32, 510], strides = [1, 1]} : vector<32x512xf32> to vector<32x510xf32>
      %148 = vector.extract_strided_slice %146 {offsets = [0, 0], sizes = [32, 2], strides = [1, 1]} : vector<32x512xf32> to vector<32x2xf32>
      %149 = tpu.concatenate %147, %148 in 1 : vector<32x510xf32>, vector<32x2xf32> -> vector<32x512xf32>
      %150 = arith.addf %145, %149 : vector<32x512xf32>
      %151 = vector.broadcast %137 : vector<32x1xf32> to vector<32x512xf32>
      %152 = arith.addf %150, %151 : vector<32x512xf32>
      %153 = arith.mulf %152, %2 : vector<32x512xf32>
      %154 = arith.addf %arg17, %153 : vector<32x512xf32>
      scf.yield %154 : vector<32x512xf32>
    }
    %c4_i32_23 = arith.constant 4 : i32
    %c1 = arith.constant 1 : index
    %c0_24 = arith.constant 0 : index
    %c0_25 = arith.constant 0 : index
    %29 = vector.load %arg9[%c1, %c0_24, %c0_25] : memref<2x32x32xbf16, #tpu.memory_space<vmem>>, vector<1x32x32xbf16>
    %30 = vector.shape_cast %29 : vector<1x32x32xbf16> to vector<32x32xbf16>
    %31 = arith.truncf %28 : vector<32x512xf32> to vector<32x512xbf16>
    %cst_26 = arith.constant dense<0.000000e+00> : vector<32x512xf32>
    %32 = tpu.matmul %30, %31, %cst_26 {dimension_numbers = #tpu.dot_dimension_numbers<[1], [0], [0], [1], [0, 0, 1, 1], [], []>} : vector<32x32xbf16>, vector<32x512xbf16>, vector<32x512xf32> -> vector<32x512xf32>
    %33 = arith.addf %26, %32 : vector<32x512xf32>
    %c1_27 = arith.constant 1 : index
    %c0_28 = arith.constant 0 : index
    %c0_29 = arith.constant 0 : index
    %34 = vector.load %arg10[%c1_27, %c0_28, %c0_29] : memref<2x32x1xf32, #tpu.memory_space<vmem>>, vector<1x32x1xf32>
    %35 = vector.shape_cast %34 : vector<1x32x1xf32> to vector<32x1xf32>
    %36 = vector.broadcast %35 : vector<32x1xf32> to vector<32x512xf32>
    %37 = arith.addf %33, %36 : vector<32x512xf32>
    %c0_30 = arith.constant 0 : index
    %c0_31 = arith.constant 0 : index
    %38 = vector.load %arg11[%c0_30, %c0_31] : memref<2x32xbf16, #tpu.memory_space<vmem>>, vector<2x32xbf16>
    %39 = arith.truncf %37 : vector<32x512xf32> to vector<32x512xbf16>
    %cst_32 = arith.constant dense<0.000000e+00> : vector<2x512xf32>
    %40 = tpu.matmul %38, %39, %cst_32 {dimension_numbers = #tpu.dot_dimension_numbers<[1], [0], [0], [1], [0, 0, 1, 1], [], []>} : vector<2x32xbf16>, vector<32x512xbf16>, vector<2x512xf32> -> vector<2x512xf32>
    %c0_33 = arith.constant 0 : index
    %c0_34 = arith.constant 0 : index
    %41 = vector.load %arg12[%c0_33, %c0_34] : memref<2x1xf32, #tpu.memory_space<vmem>>, vector<2x1xf32>
    %42 = vector.broadcast %41 : vector<2x1xf32> to vector<2x512xf32>
    %43 = arith.addf %40, %42 : vector<2x512xf32>
    %c0_35 = arith.constant 0 : index
    %c0_36 = arith.constant 0 : index
    %44 = vector.load %arg15[%c0_35, %c0_36] : memref<2x512xf32, #tpu.memory_space<vmem>>, vector<2x512xf32>
    tpu.vector_store %arg15[%c0_35, %c0_36], %43 {strides = array<i32>} : memref<2x512xf32, #tpu.memory_space<vmem>>, vector<2x512xf32>,
    return
  }
}

</mosaic_0001>

<bundles_post_ra>
// kernel: tpu_custom_call.1
= control target key start
LH: loop header
LB: loop body
LE: loop exit
PB: predicated region body
PF: predicated region fallthrough
CT: control target
= control target key end

     0   :  { %20 = vsyncpa [#allocation3], 0  ;;  %v54_v0 = vlaneseq  ;;  %v5617_v2 = vmov 1983009808   ;;  %v8327_v5 = vmov 0   ;;  %vm138_vm0 = vcmask 1041408   ;;  %s8311_s0 = inlined_call_operand.vmem [shape: bf16[4,512], index: 0, kind: input, shape index: {}]   ;;  %s8312_s1 = inlined_call_operand.vmem [shape: f32[1,512], index: 1, kind: input, shape index: {}]   ;;  %s8313_s2 = inlined_call_operand.vmem [shape: bf16[32,4], index: 2, kind: input, shape index: {}]   ;;  %s8314_s3 = inlined_call_operand.vmem [shape: f32[32,1], index: 3, kind: input, shape index: {}]   ;;  %s8315_s4 = inlined_call_operand.vmem [shape: bf16[32,32], index: 4, kind: input, shape index: {}]   ;;  %s8316_s5 = inlined_call_operand.vmem [shape: f32[32,1], index: 5, kind: input, shape index: {}]   ;;  %s8317_s6 = inlined_call_operand.vmem [shape: f32[8,2,32,1], index: 6, kind: input, shape index: {}]   ;;  %s8318_s7 = inlined_call_operand.vmem [shape: f32[8,2,32,1], index: 7, kind: input, shape index: {}]   ;;  %s8319_s8 = inlined_call_operand.vmem [shape: f32[8,2,32,1], index: 8, kind: input, shape index: {}]   ;;  %s8320_s9 = inlined_call_operand.vmem [shape: bf16[2,32,32], index: 9, kind: input, shape index: {}]   ;;  %s8321_s10 = inlined_call_operand.vmem [shape: f32[2,32,1], index: 10, kind: input, shape index: {}]   ;;  %s8322_s11 = inlined_call_operand.vmem [shape: bf16[2,32], index: 11, kind: input, shape index: {}]   ;;  %s8323_s12 = inlined_call_operand.vmem [shape: f32[2,1], index: 12, kind: input, shape index: {}]   ;;  %s8324_s13 = inlined_call_operand.vmem [shape: bf16[8,160,32], index: 13, kind: input, shape index: {}]   ;;  %s8325_s14 = inlined_call_operand.vmem [shape: bf16[8,96,32], index: 14, kind: input, shape index: {}]   ;;  %s8326_s15 = inlined_call_operand.hbm [shape: f32[2,512], index: 15, kind: output, shape index: {}]  }
   0x1   :  { %v78_v1 = vld [vmem:[%s8311_s0] sm:$0xff]  ;;  %v116_v3 = vunpack.c.l.s4 %v5617_v2  ;;  %183 = vmatprep.mubr.bf16.mxu0 %v8327_v5  ;;  %236 = vmatprep.mubr.bf16.mxu1 %v8327_v5  ;;  %v81_v9 = vld [vmem:[%s8314_s3 + $0x10] sm:$0xff]  ;;  %v80_v11 = vld [vmem:[%s8314_s3 + $0x8] sm:$0xff]  ;;  %vm131_vm1 = vcmask 31744   ;;  %vm319_vm2 = vcmask 261120  }
   0x2   :  { %v5711_v4 = vshrl.u32 %v54_v0, 7  ;;  %v114_v7 = vcombine.high %v78_v1, %v78_v1  ;;  %5238 = vset.pattern.permute.xlu0 %v8327_v5  ;;  %v79_v8 = vld [vmem:[%s8314_s3] sm:$0xff]  ;;  %5239 = vset.pattern.permute.xlu1 %v8327_v5  ;;  %v82_v12 = vld [vmem:[%s8314_s3 + $0x18] sm:$0xff]  ;;  %v286_v20 = vld [vmem:[%s8316_s5 + $0x8] sm:$0xff] }
   0x3   :  { %v117_v6 = vunpack.c.0.s8 %v116_v3  ;;  %85 = vperm.xlu0 %5238, %v79_v8   ;;  %95 = vperm.xlu1 %5239, %v81_v9   ;;  %v285_v19 = vld [vmem:[%s8316_s5] sm:$0xff]  ;;  %v287_v22 = vld [vmem:[%s8316_s5 + $0x10] sm:$0xff]  ;;  %v288_v23 = vld [vmem:[%s8316_s5 + $0x18] sm:$0xff] }
   0x4   :  { %v5241_v21 = vld [vmem:[%s8313_s2] sm:$0xff]   ;;  %v5242_v24 = vld [vmem:[%s8313_s2 + $0x8] sm:$0xff]   ;;  %v56_v26 = vsub.s32 0, %v5711_v4  ;;  %v64_v27 = vsub.s32 2, %v5711_v4  ;;  %v60_v29 = vsub.s32 1, %v5711_v4  ;;  %v68_v30 = vsub.s32 3, %v5711_v4 }
   0x5   :  { %v5724_v10 = vsub.s32 %v117_v6, %v5711_v4  ;;  %v52_v28 = vld [vmem:[%s8312_s1] sm:$0xf] }
   0x6   :  { %v5763_v35 = vrot.slane %v52_v28, %v56_v26  ;;  %v5765_v37 = vrot.slane %v52_v28, %v64_v27  ;;  %v5767_v41 = vrot.slane %v52_v28, %v60_v29  ;;  %v5769_v43 = vrot.slane %v52_v28, %v68_v30 }
   0x7   :  { %8383 = vst [vmem:[#allocation5_spill] sm:$0xff] %v5724_v10  ;;  %v121_v13 = vrot.slane %v78_v1, %v5724_v10  ;;  %v128_v14 = vrot.slane %v114_v7, %v5724_v10  ;;  %90 = vperm.xlu0 %5238, %v80_v11   ;;  %100 = vperm.xlu1 %5239, %v82_v12  }
   0x8   :  { %8384 = vst [vmem:[#allocation6_spill] sm:$0xff] %v5763_v35  ;;  %8385 = vst [vmem:[#allocation7_spill] sm:$0xff] %v5765_v37 }
   0x9   :  { %v129_v15 = vcombine.high %v121_v13, %v121_v13  ;;  %v130_v16 = vcombine.high %v128_v14, %v128_v14  ;;  %v140_v17 = vsel %vm138_vm0, %v121_v13, 0  ;;  %v146_v18 = vsel %vm138_vm0, %v128_v14, 0  ;;  %8386 = vst [vmem:[#allocation8_spill] sm:$0xff] %v5769_v43 }
   0xb   :  { %4753 = vmatprep.subr.msk.bf16.mxu0 %vm138_vm0, %v129_v15  ;;  %4756 = vmatprep.subr.msk.bf16.mxu1 %vm138_vm0, %v130_v16 }
   0xc   :  { %152 = vmatpush1.bf16.msra.mxu0 %v140_v17  ;;  %205 = vmatpush1.bf16.msra.mxu1 %v146_v18 }
   0xd   :  { %291 = vperm.xlu0 %5238, %v285_v19   ;;  %296 = vperm.xlu1 %5239, %v286_v20  }
   0xf   :  { %4754 = vmatmul.mubr.msk.bf16.vlgmr.msra.gmra.mrb[0].mxu0 %vm131_vm1, %v5241_v21  ;;  %4757 = vmatmul.mubr.msk.bf16.vlgmr.msra.gmra.mrb[0].mxu1 %vm131_vm1, %v5241_v21 }
  0x10   :  { %193 = vmatprep.mubr.bf16.mxu0 %v8327_v5  ;;  %246 = vmatprep.mubr.bf16.mxu1 %v8327_v5 }
  0x11   :  { %301 = vperm.xlu0 %5238, %v287_v22   ;;  %306 = vperm.xlu1 %5239, %v288_v23  }
  0x17   :  { %4755 = vmatmul.mubr.msk.bf16.gmra.mrb[4].mxu0 %vm131_vm1, %v5242_v24  ;;  %4758 = vmatmul.mubr.msk.bf16.gmra.mrb[4].mxu1 %vm131_vm1, %v5242_v24 }
  0x18   :  { %358 = vmatprep.mubr.bf16.mxu0 %v8327_v5  ;;  %411 = vmatprep.mubr.bf16.mxu1 %v8327_v5 }
  0x82   :  { %v86_v25 = vpop.permute.xlu0 %85  ;;  %v96_v32 = vpop.permute.xlu1 %95 }
  0x86   :  { %v91_v31 = vpop.permute.xlu0 %90  ;;  %v101_v61 = vpop.permute.xlu1 %100 }
  0xe2   :  { %v185_v33 = vpop.f32.mrb[0].mxu0  ;;  %v238_v34 = vpop.f32.mrb[0].mxu1 }
  0xe3   :  { %v186_v36 = vadd.f32 %v185_v33, %v86_v25  ;;  %v239_v38 = vadd.f32 %v238_v34, %v86_v25  ;;  %v187_v39 = vpop.f32.mrb[1].mxu0  ;;  %v240_v40 = vpop.f32.mrb[1].mxu1  ;;  %v5244_v33 = vld [vmem:[%s8315_s4 + $0x8] sm:$0xff]  }
  0xe4   :  { %v188_v42 = vadd.f32 %v187_v39, %v86_v25  ;;  %v241_v44 = vadd.f32 %v240_v40, %v86_v25  ;;  %v189_v45 = vpop.f32.mrb[2].mxu0  ;;  %v242_v46 = vpop.f32.mrb[2].mxu1 }
  0xe5   :  { %v190_v47 = vadd.f32 %v189_v45, %v91_v31  ;;  %v243_v48 = vadd.f32 %v242_v46, %v91_v31  ;;  %v191_v49 = vpop.f32.mrb[3].mxu0  ;;  %v244_v50 = vpop.f32.mrb[3].mxu1  ;;  %v5772_v53 = vmul.f32 %v186_v36, %v5763_v35   ;;  %v5775_v54 = vmul.f32 %v239_v38, %v5765_v37  }
  0xe6   :  { %v192_v51 = vadd.f32 %v191_v49, %v91_v31  ;;  %v245_v52 = vadd.f32 %v244_v50, %v91_v31  ;;  %v5784_v57 = vmul.f32 %v188_v42, %v5767_v41   ;;  %v5787_v58 = vmul.f32 %v241_v44, %v5769_v43   ;;  %v292_v34 = vpop.permute.xlu0 %291  ;;  %v297_v36 = vpop.permute.xlu1 %296 }
  0xe7   :  { %v5778_v55 = vmul.f32 %v190_v47, %v5763_v35   ;;  %v5781_v56 = vmul.f32 %v243_v48, %v5765_v37  }
  0xe8   :  { %v5790_v59 = vmul.f32 %v192_v51, %v5767_v41   ;;  %v5793_v60 = vmul.f32 %v245_v52, %v5769_v43  }
  0xe9   :  { %v277_v62 = vpack.c.bf16 %v5778_v55, %v5772_v53  ;;  %v279_v63 = vpack.c.bf16 %v5781_v56, %v5775_v54 }
  0xea   :  { %v195_v0 = vpop.f32.mrb[4].mxu0  ;;  %v248_v1 = vpop.f32.mrb[4].mxu1  ;;  %v278_v2 = vpack.c.bf16 %v5790_v59, %v5784_v57  ;;  %v280_v3 = vpack.c.bf16 %v5793_v60, %v5787_v58 }
  0xeb   :  { %v196_v4 = vadd.f32 %v195_v0, %v96_v32  ;;  %v249_v6 = vadd.f32 %v248_v1, %v96_v32  ;;  %v197_v7 = vpop.f32.mrb[5].mxu0  ;;  %v250_v8 = vpop.f32.mrb[5].mxu1 }
  0xec   :  { %v198_v9 = vadd.f32 %v197_v7, %v96_v32  ;;  %v251_v11 = vadd.f32 %v250_v8, %v96_v32  ;;  %v199_v12 = vpop.f32.mrb[6].mxu0  ;;  %v252_v13 = vpop.f32.mrb[6].mxu1  ;;  %326 = vmatprep.subr.bf16.mxu0 %v278_v2  ;;  %379 = vmatprep.subr.bf16.mxu1 %v280_v3  ;;  %v5243_v32 = vld [vmem:[%s8315_s4] sm:$0xff]   ;;  %s5903_s4 = smov 0  }
  0xed   :  { %v200_v14 = vadd.f32 %v199_v12, %v101_v61  ;;  %v253_v15 = vadd.f32 %v252_v13, %v101_v61  ;;  %v201_v16 = vpop.f32.mrb[7].mxu0  ;;  %v254_v17 = vpop.f32.mrb[7].mxu1  ;;  %327 = vmatpush1.bf16.msra.mxu0 %v277_v62  ;;  %380 = vmatpush1.bf16.msra.mxu1 %v279_v63  ;;  %v5804_v20 = vmul.f32 %v196_v4, %v5763_v35  }
  0xee   :  { %v202_v18 = vadd.f32 %v201_v16, %v101_v61  ;;  %v255_v19 = vadd.f32 %v254_v17, %v101_v61  ;;  %v5807_v21 = vmul.f32 %v249_v6, %v5765_v37   ;;  %v266_v24 = vmul.f32 %v198_v9, %v5767_v41   ;;  %v302_v0 = vpop.permute.xlu0 %301  ;;  %v307_v1 = vpop.permute.xlu1 %306 }
  0xef   :  { %v269_v22 = vmul.f32 %v200_v14, %v5763_v35   ;;  %v271_v23 = vmul.f32 %v253_v15, %v5765_v37   ;;  %v268_v25 = vmul.f32 %v251_v11, %v5769_v43  }
  0xf0   :  { %v270_v26 = vmul.f32 %v202_v18, %v5767_v41   ;;  %v272_v27 = vmul.f32 %v255_v19, %v5769_v43  }
  0xf1   :  { %v281_v28 = vpack.c.bf16 %v269_v22, %v5804_v20  ;;  %v283_v29 = vpack.c.bf16 %v271_v23, %v5807_v21 }
  0xf2   :  { %v282_v30 = vpack.c.bf16 %v270_v26, %v266_v24  ;;  %v284_v31 = vpack.c.bf16 %v272_v27, %v268_v25 }
  0xf4   :  { %328 = vmatprep.subr.bf16.mxu0 %v282_v30  ;;  %381 = vmatprep.subr.bf16.mxu1 %v284_v31 }
  0xf5   :  { %329 = vmatpush1.bf16.msra.mxu0 %v281_v28  ;;  %382 = vmatpush1.bf16.msra.mxu1 %v283_v29 }
  0xf8   :  { %4761 = vmatmul.mubr.msk.bf16.vlgmr.msra.gmra.mrb[8].mxu0 %vm319_vm2, %v5243_v32  ;;  %4763 = vmatmul.mubr.msk.bf16.vlgmr.msra.gmra.mrb[8].mxu1 %vm319_vm2, %v5243_v32 }
  0xf9   :  { %368 = vmatprep.mubr.bf16.mxu0 %v8327_v5  ;;  %421 = vmatprep.mubr.bf16.mxu1 %v8327_v5 }
 0x100   :  { %4762 = vmatmul.mubr.msk.bf16.gmra.mrb[12].mxu0 %vm319_vm2, %v5244_v33  ;;  %4764 = vmatmul.mubr.msk.bf16.gmra.mrb[12].mxu1 %vm319_vm2, %v5244_v33 }
 0x1cb   :  { %v360_v38 = vpop.f32.mrb[8].mxu0  ;;  %v413_v39 = vpop.f32.mrb[8].mxu1 }
 0x1cc   :  { %v5829_v40 = vadd.f32 %v360_v38, %v292_v34  ;;  %v5831_v42 = vadd.f32 %v413_v39, %v292_v34  ;;  %v362_v44 = vpop.f32.mrb[9].mxu0  ;;  %v415_v45 = vpop.f32.mrb[9].mxu1 }
 0x1cd   :  { %v5833_v46 = vadd.f32 %v362_v44, %v292_v34  ;;  %v5835_v47 = vadd.f32 %v415_v45, %v292_v34  ;;  %v364_v48 = vpop.f32.mrb[10].mxu0  ;;  %v417_v49 = vpop.f32.mrb[10].mxu1 }
 0x1ce   :  { %8387 = vst [vmem:[#allocation9_spill] sm:$0xff] %v5829_v40  ;;  %8388 = vst [vmem:[#allocation10_spill] sm:$0xff] %v5831_v42  ;;  %v5837_v50 = vadd.f32 %v364_v48, %v297_v36  ;;  %v5839_v51 = vadd.f32 %v417_v49, %v297_v36  ;;  %v366_v52 = vpop.f32.mrb[11].mxu0  ;;  %v419_v61 = vpop.f32.mrb[11].mxu1 }
 0x1cf   :  { %8389 = vst [vmem:[#allocation11_spill] sm:$0xff] %v5833_v46  ;;  %8390 = vst [vmem:[#allocation12_spill] sm:$0xff] %v5835_v47  ;;  %v5841_v62 = vadd.f32 %v366_v52, %v297_v36  ;;  %v5843_v63 = vadd.f32 %v419_v61, %v297_v36 }
 0x1d0   :  { %8391 = vst [vmem:[#allocation13_spill] sm:$0xff] %v5837_v50  ;;  %8392 = vst [vmem:[#allocation14_spill] sm:$0xff] %v5839_v51 }
 0x1d1   :  { %8393 = vst [vmem:[#allocation15_spill] sm:$0xff] %v5841_v62  ;;  %8394 = vst [vmem:[#allocation16_spill] sm:$0xff] %v5843_v63 }
 0x1d3   :  { %v370_v2 = vpop.f32.mrb[12].mxu0  ;;  %v423_v3 = vpop.f32.mrb[12].mxu1 }
 0x1d4   :  { %v5845_v4 = vadd.f32 %v370_v2, %v302_v0  ;;  %v5847_v6 = vadd.f32 %v423_v3, %v302_v0  ;;  %v372_v7 = vpop.f32.mrb[13].mxu0  ;;  %v425_v8 = vpop.f32.mrb[13].mxu1 }
 0x1d5   :  { %v5849_v9 = vadd.f32 %v372_v7, %v302_v0  ;;  %v5851_v11 = vadd.f32 %v425_v8, %v302_v0  ;;  %v374_v12 = vpop.f32.mrb[14].mxu0  ;;  %v427_v13 = vpop.f32.mrb[14].mxu1 }
 0x1d6   :  { %8395 = vst [vmem:[#allocation17_spill] sm:$0xff] %v5845_v4  ;;  %8396 = vst [vmem:[#allocation18_spill] sm:$0xff] %v5847_v6  ;;  %v5853_v14 = vadd.f32 %v374_v12, %v307_v1  ;;  %v5855_v15 = vadd.f32 %v427_v13, %v307_v1  ;;  %v376_v16 = vpop.f32.mrb[15].mxu0  ;;  %v429_v17 = vpop.f32.mrb[15].mxu1 }
 0x1d7   :  { %8397 = vst [vmem:[#allocation19_spill] sm:$0xff] %v5849_v9  ;;  %8398 = vst [vmem:[#allocation20_spill] sm:$0xff] %v5851_v11  ;;  %v5857_v18 = vadd.f32 %v376_v16, %v307_v1  ;;  %v5859_v19 = vadd.f32 %v429_v17, %v307_v1 }
 0x1d8   :  { %8399 = vst [vmem:[#allocation21_spill] sm:$0xff] %v5853_v14  ;;  %8400 = vst [vmem:[#allocation22_spill] sm:$0xff] %v5855_v15 }
 0x1d9   :  { %8401 = vst [vmem:[#allocation23_spill] sm:$0xff] %v5857_v18  ;;  %8402 = vst [vmem:[#allocation24_spill] sm:$0xff] %v5859_v19 }
 0x1da LB: > { %v8403_v35 = vld [vmem:[#allocation6_spill] sm:$0xff]  ;;  %v8404_v37 = vld [vmem:[#allocation7_spill] sm:$0xff]  ;;  %v8405_v43 = vld [vmem:[#allocation8_spill] sm:$0xff]  ;;  %8406 = vst [vmem:[#allocation25_spill] sm:$0xff] %v5483_v27  ;;  %v482_v28 = vadd.f32 %v5539_v57, %v5543_v53  ;;  %v487_v30 = vadd.f32 %v5523_v59, %v5527_v55  ;;  %v492_v33 = vadd.f32 %v5507_v24, %v5511_v20  ;;  %v497_v38 = vadd.f32 %v5491_v26, %v5495_v22  ;;  %s6069_s25 = sshll.u32 %s5547_s4, 6  ;;  %s4953_s26 = smul.u32 160, %s5547_s4  ;;  %v5491_v26 = vphi %v270_v26, %v8493_v26   ;;  %v5487_v23 = vphi %v271_v23, %v8492_v23   ;;  %v5483_v27 = vphi %v272_v27, %v8491_v27   ;;  %s5547_s4 = sphi %s5903_s4, %s437_s4   ;;  %v5543_v53 = vphi %v5772_v53, %v8506_v53   ;;  %v5539_v57 = vphi %v5784_v57, %v8505_v57   ;;  %v5535_v54 = vphi %v5775_v54, %v8504_v54   ;;  %v5531_v58 = vphi %v5787_v58, %v8503_v58   ;;  %v5527_v55 = vphi %v5778_v55, %v8502_v55   ;;  %v5523_v59 = vphi %v5790_v59, %v8501_v59   ;;  %v5519_v56 = vphi %v5781_v56, %v8500_v56   ;;  %v5515_v60 = vphi %v5793_v60, %v8499_v60   ;;  %v5511_v20 = vphi %v5804_v20, %v8498_v20   ;;  %v5507_v24 = vphi %v266_v24, %v8497_v24   ;;  %v5503_v21 = vphi %v5807_v21, %v8496_v21   ;;  %v5499_v25 = vphi %v268_v25, %v8495_v25   ;;  %v5495_v22 = vphi %v269_v22, %v8494_v22  }
 0x1db   : > { %8407 = vst [vmem:[#allocation26_spill] sm:$0xff] %v5487_v23  ;;  %8408 = vst [vmem:[#allocation27_spill] sm:$0xff] %v5491_v26  ;;  %s6085_s16 = scalar_lea.vmem %s8318_s7, %s6069_s25  ;;  %s6094_s19 = scalar_lea.vmem %s8317_s6, %s6069_s25  ;;  %vm1124_vm3 = vcmask 15360   ;;  %vm1209_vm4 = vcmask 7168   ;;  %vm1322_vm5 = vcmask 1039360   ;;  %vm1423_vm6 = vcmask 1031168  }
 0x1dc   : > { %8409 = vst [vmem:[#allocation28_spill] sm:$0xff] %v5495_v22  ;;  %8410 = vst [vmem:[#allocation29_spill] sm:$0xff] %v5499_v25  ;;  %v483_v29 = vadd.f32 %v5535_v54, %v482_v28  ;;  %v488_v32 = vadd.f32 %v5519_v56, %v487_v30  ;;  %v493_v36 = vadd.f32 %v5503_v21, %v492_v33  ;;  %s6077_s29 = scalar_lea.vmem %s8324_s13, %s4953_s26  ;;  %s6101_s0 = scalar_lea.vmem %s8319_s8, %s6069_s25 }
 0x1dd   : > { %8411 = vst [vmem:[#allocation30_spill] sm:$0xff] %v5503_v21  ;;  %8412 = vst [vmem:[#allocation31_spill] sm:$0xff] %v5507_v24  ;;  %v498_v44 = vadd.f32 %v5487_v23, %v497_v38  ;;  %s5620_s5 = smov 2   ;;  %s5621_s22 = smov 1  }
 0x1de   : > { %8413 = vst [vmem:[#allocation32_spill] sm:$0xff] %v5511_v20  ;;  %8414 = vst [vmem:[#allocation33_spill] sm:$0xff] %v5515_v60  ;;  %v484_v31 = vadd.f32 %v5531_v58, %v483_v29  ;;  %v489_v34 = vadd.f32 %v5515_v60, %v488_v32  ;;  %v494_v39 = vadd.f32 %v5499_v25, %v493_v36  ;;  %s5622_s1 = smov 127   ;;  %s5623_s2 = smov 126  }
 0x1df   : > { %8415 = vst [vmem:[#allocation34_spill] sm:$0xff] %v5519_v56  ;;  %8416 = vst [vmem:[#allocation35_spill] sm:$0xff] %v5523_v59  ;;  %v499_v45 = vadd.f32 %v5483_v27, %v498_v44  ;;  %s437_s4 = sadd.s32 1, %s5547_s4  }
 0x1e0   : > { %8417 = vst [vmem:[#allocation36_spill] sm:$0xff] %v5527_v55  ;;  %8418 = vst [vmem:[#allocation37_spill] sm:$0xff] %v5531_v58  ;;  %485 = vadd.xlane.f32.xlu0 %v484_v31  ;;  %495 = vadd.xlane.f32.xlu1 %v494_v39  ;;  %p7112_p0 = scmp.ge.s32.totalorder %s437_s4, 4  }
 0x1e1   : > { %8419 = vst [vmem:[#allocation38_spill] sm:$0xff] %v5535_v54  ;;  %8420 = vst [vmem:[#allocation39_spill] sm:$0xff] %v5539_v57  ;;  %s7308_s18 = smov (%p7112_p0), 0  }
 0x1e2   : > { %8421 = vst [vmem:[#allocation40_spill] sm:$0xff] %v5543_v53 }
 0x1e4   : > { %490 = vadd.xlane.f32.xlu0 %v489_v34  ;;  %500 = vadd.xlane.f32.xlu1 %v499_v45 }
 0x26d   : > { %v486_v48 = vpop.xlane.xlu0 %485  ;;  %v496_v7 = vpop.xlane.xlu1 %495 }
 0x26e   : > { %v502_v49 = vmul.f32 0.00390625, %v486_v48  ;;  %v504_v16 = vmul.f32 0.00390625, %v496_v7 }
 0x270   : > { %v506_v52 = vsub.f32 %v5543_v53, %v502_v49  ;;  %v507_v61 = vsub.f32 %v5539_v57, %v502_v49  ;;  %v508_v0 = vsub.f32 %v5535_v54, %v502_v49  ;;  %v509_v1 = vsub.f32 %v5531_v58, %v502_v49 }
 0x271   : > { %v491_v2 = vpop.xlane.xlu0 %490  ;;  %v514_v32 = vsub.f32 %v5511_v20, %v504_v16  ;;  %v515_v33 = vsub.f32 %v5507_v24, %v504_v16  ;;  %v501_v38 = vpop.xlane.xlu1 %500  ;;  %v516_v44 = vsub.f32 %v5503_v21, %v504_v16  ;;  %v517_v45 = vsub.f32 %v5499_v25, %v504_v16 }
 0x272   : > { %v503_v3 = vmul.f32 0.00390625, %v491_v2  ;;  %v5977_v8 = vmul.f32 %v506_v52, %v8403_v35  ;;  %v5980_v12 = vmul.f32 %v507_v61, %v5767_v41  ;;  %v5983_v13 = vmul.f32 %v508_v0, %v8404_v37 }
 0x273   : > { %v5986_v17 = vmul.f32 %v509_v1, %v8405_v43  ;;  %v505_v49 = vmul.f32 0.00390625, %v501_v38  ;;  %v6004_v52 = vmul.f32 %v514_v32, %v8403_v35  ;;  %v6007_v61 = vmul.f32 %v515_v33, %v5767_v41 }
 0x274   : > { %v510_v28 = vsub.f32 %v5527_v55, %v503_v3  ;;  %v511_v29 = vsub.f32 %v5523_v59, %v503_v3  ;;  %v538_v30 = vmul.f32 %v5977_v8, %v5977_v8  ;;  %v539_v31 = vmul.f32 %v5980_v12, %v5980_v12 }
 0x275   : > { %v540_v34 = vmul.f32 %v5983_v13, %v5983_v13  ;;  %v541_v36 = vmul.f32 %v5986_v17, %v5986_v17  ;;  %v512_v48 = vsub.f32 %v5519_v56, %v503_v3  ;;  %v513_v0 = vsub.f32 %v5515_v60, %v503_v3 }
 0x276   : > { %v554_v39 = vadd.f32 %v539_v31, %v538_v30  ;;  %v6011_v2 = vmul.f32 %v516_v44, %v8404_v37  ;;  %v6014_v7 = vmul.f32 %v517_v45, %v8405_v43  ;;  %v6017_v16 = vmul.f32 %v510_v28, %v8403_v35 }
 0x277   : > { %v518_v30 = vsub.f32 %v5495_v22, %v505_v49  ;;  %v519_v31 = vsub.f32 %v5491_v26, %v505_v49  ;;  %v546_v32 = vmul.f32 %v6004_v52, %v6004_v52  ;;  %v547_v3 = vmul.f32 %v6007_v61, %v6007_v61 }
 0x278   : > { %v555_v1 = vadd.f32 %v554_v39, %v540_v34  ;;  %v548_v34 = vmul.f32 %v6011_v2, %v6011_v2  ;;  %v549_v38 = vmul.f32 %v6014_v7, %v6014_v7  ;;  %v6030_v28 = vmul.f32 %v511_v29, %v5767_v41 }
 0x279   : > { %v564_v39 = vadd.f32 %v547_v3, %v546_v32  ;;  %v6033_v44 = vmul.f32 %v512_v48, %v8404_v37  ;;  %v6036_v45 = vmul.f32 %v513_v0, %v8405_v43  ;;  %v542_v5 = vmul.f32 %v6017_v16, %v6017_v16 }
 0x27a   : > { %v556_v33 = vadd.f32 %v555_v1, %v541_v36  ;;  %v543_v36 = vmul.f32 %v6030_v28, %v6030_v28  ;;  %v520_v1 = vsub.f32 %v5487_v23, %v505_v49  ;;  %v521_v10 = vsub.f32 %v5483_v27, %v505_v49 }
 0x27b   : > { %v6045_v29 = vmul.f32 %v518_v30, %v8403_v35  ;;  %v565_v32 = vadd.f32 %v564_v39, %v548_v34  ;;  %v544_v48 = vmul.f32 %v6033_v44, %v6033_v44  ;;  %v6050_v0 = vmul.f32 %v519_v31, %v5767_v41 }
 0x27c   : > { %557 = vadd.xlane.f32.xlu0 %v556_v33  ;;  %v559_v3 = vadd.f32 %v543_v36, %v542_v5  ;;  %v6053_v33 = vmul.f32 %v520_v1, %v8404_v37  ;;  %v6056_v19 = vmul.f32 %v521_v10, %v8405_v43  ;;  %v545_v31 = vmul.f32 %v6036_v45, %v6036_v45 }
 0x27d   : > { %v550_v49 = vmul.f32 %v6045_v29, %v6045_v29  ;;  %v566_v30 = vadd.f32 %v565_v32, %v549_v38  ;;  %v551_v34 = vmul.f32 %v6050_v0, %v6050_v0  ;;  %v8332_v38 = vmov 0   ;;  %v467_v32 = vld [vmem:[%s6085_s16 + $0x10] sm:$0xff] }
 0x27e   : > { %v560_v39 = vadd.f32 %v559_v3, %v544_v48  ;;  %v552_v5 = vmul.f32 %v6053_v33, %v6053_v33  ;;  %v553_v10 = vmul.f32 %v6056_v19, %v6056_v19  ;;  %5246 = vset.pattern.permute.xlu1 %v8332_v38  ;;  %5245 = vset.pattern.permute.xlu0 %v8332_v38 }
 0x27f   : > { %v569_v36 = vadd.f32 %v551_v34, %v550_v49  ;;  %838 = vmatprep.mubr.bf16.mxu0 %v8332_v38  ;;  %971 = vmatprep.mubr.bf16.mxu1 %v8332_v38 }
 0x280   : > { %567 = vadd.xlane.f32.xlu0 %v566_v30  ;;  %v561_v1 = vadd.f32 %v560_v39, %v545_v31 }
 0x281   : > { %v570_v18 = vadd.f32 %v569_v36, %v552_v5 }
 0x282   : > { %562 = vadd.xlane.f32.xlu1 %v561_v1 }
 0x283   : > { %v571_v15 = vadd.f32 %v570_v18, %v553_v10  ;;  %v466_v18 = vld [vmem:[%s6085_s16 + $0x8] sm:$0xff] }
 0x286   : > { %572 = vadd.xlane.f32.xlu1 %v571_v15  ;;  %v465_v15 = vld [vmem:[%s6085_s16] sm:$0xff] }
 0x297   : > { %628 = vperm.xlu1 %5246, %v465_v15   ;;  %v456_v15 = vld [vmem:[%s6094_s19] sm:$0xff] }
 0x29b   : > { %633 = vperm.xlu1 %5246, %v466_v18  }
 0x29f   : > { %638 = vperm.xlu1 %5246, %v467_v32  }
 0x309   : > { %v558_v48 = vpop.xlane.xlu0 %557 }
 0x30a   : > { %v574_v3 = vmul.f32 0.00390625, %v558_v48 }
 0x30c   : > { %v578_v49 = vadd.f32 1e-05, %v574_v3  ;;  %v475_v3 = vld [vmem:[%s6101_s0 + $0x8] sm:$0xff] }
 0x30d   : > { %v568_v30 = vpop.xlane.xlu0 %567 }
 0x30e   : > { %5267 = vrsqrt.f32 %v578_v49  ;;  %v576_v34 = vmul.f32 0.00390625, %v568_v30  ;;  %v457_v49 = vld [vmem:[%s6094_s19 + $0x8] sm:$0xff] }
 0x30f   : > { %v563_v31 = vpop.xlane.xlu1 %562 }
 0x310   : > { %v575_v39 = vmul.f32 0.00390625, %v563_v31  ;;  %v580_v5 = vadd.f32 1e-05, %v576_v34  ;;  %v477_v34 = vld [vmem:[%s6101_s0 + $0x18] sm:$0xff] }
 0x312   : > { %v579_v10 = vadd.f32 1e-05, %v575_v39 }
 0x313   : > { %v573_v36 = vpop.xlane.xlu1 %572 }
 0x314   : > { %5269 = vrsqrt.f32 %v579_v10  ;;  %v577_v1 = vmul.f32 0.00390625, %v573_v36 }
 0x315   : > { %5271 = vrsqrt.f32 %v580_v5  ;;  %v458_v5 = vld [vmem:[%s6094_s19 + $0x10] sm:$0xff] }
 0x316   : > { %v581_v32 = vadd.f32 1e-05, %v577_v1  ;;  %v459_v1 = vld [vmem:[%s6094_s19 + $0x18] sm:$0xff] }
 0x318   : > { %v5268_v18 = vpop.eup %5267  ;;  %5273 = vrsqrt.f32 %v581_v32  ;;  %v474_v32 = vld [vmem:[%s6101_s0] sm:$0xff] }
 0x319   : > { %v586_v48 = vmul.f32 %v5268_v18, %v456_v15  ;;  %v468_v18 = vld [vmem:[%s6085_s16 + $0x18] sm:$0xff] }
 0x31b   : > { %592 = vperm.xlu0 %5245, %v586_v48   ;;  %v476_v48 = vld [vmem:[%s6101_s0 + $0x10] sm:$0xff] }
 0x31e   : > { %v5270_v30 = vpop.eup %5269 }
 0x31f   : > { %1483 = vperm.xlu0 %5245, %v475_v3   ;;  %v587_v31 = vmul.f32 %v5270_v30, %v457_v49  ;;  %v5272_v39 = vpop.eup %5271  ;;  %v629_v3 = vpop.permute.xlu1 %628 }
 0x320   : > { %v588_v10 = vmul.f32 %v5272_v39, %v458_v5 }
 0x321   : > { %597 = vperm.xlu1 %5246, %v587_v31  }
 0x322   : > { %v5274_v36 = vpop.eup %5273 }
 0x323   : > { %1493 = vperm.xlu0 %5245, %v477_v34   ;;  %v589_v15 = vmul.f32 %v5274_v36, %v459_v1  ;;  %v634_v38 = vpop.permute.xlu1 %633 }
 0x325   : > { %602 = vperm.xlu1 %5246, %v588_v10  }
 0x327   : > { %v639_v39 = vpop.permute.xlu1 %638 }
 0x329   : > { %607 = vperm.xlu1 %5246, %v589_v15  }
 0x32d   : > { %643 = vperm.xlu1 %5246, %v468_v18  }
 0x331   : > { %1478 = vperm.xlu1 %5246, %v474_v32  }
 0x335   : > { %1488 = vperm.xlu1 %5246, %v476_v48  }
 0x39a   : > { %v593_v14 = vpop.permute.xlu0 %592 }
 0x39b   : > { %v611_v49 = vmul.f32 %v593_v14, %v5980_v12  ;;  %v613_v30 = vmul.f32 %v593_v14, %v5986_v17  ;;  %v610_v34 = vmul.f32 %v593_v14, %v5977_v8  ;;  %v612_v31 = vmul.f32 %v593_v14, %v5983_v13 }
 0x39d   : > { %v647_v5 = vadd.f32 %v629_v3, %v611_v49  ;;  %v649_v10 = vadd.f32 %v629_v3, %v613_v30  ;;  %v646_v36 = vadd.f32 %v629_v3, %v610_v34  ;;  %v648_v1 = vadd.f32 %v629_v3, %v612_v31 }
 0x39f   : > { %v663_v11 = vmax.f32 %v647_v5, 0.0  ;;  %v665_v17 = vmax.f32 %v649_v10, 0.0  ;;  %v662_v9 = vmax.f32 %v646_v36, 0.0  ;;  %v664_v8 = vmax.f32 %v648_v1, 0.0 }
 0x3a0   : > { %v598_v15 = vpop.permute.xlu1 %597 }
 0x3a1   : > { %v615_v18 = vmul.f32 %v598_v15, %v6030_v28  ;;  %v617_v32 = vmul.f32 %v598_v15, %v6036_v45  ;;  %v614_v48 = vmul.f32 %v598_v15, %v6017_v16  ;;  %v616_v12 = vmul.f32 %v598_v15, %v6033_v44 }
 0x3a2   : > { %v679_v10 = vmul.f32 %v663_v11, %v5767_v41  ;;  %v681_v36 = vmul.f32 %v665_v17, %v8405_v43  ;;  %v678_v1 = vmul.f32 %v662_v9, %v8403_v35 }
 0x3a3   : > { %v651_v6 = vadd.f32 %v634_v38, %v615_v18  ;;  %v653_v14 = vadd.f32 %v634_v38, %v617_v32  ;;  %v650_v13 = vadd.f32 %v634_v38, %v614_v48  ;;  %v652_v49 = vadd.f32 %v634_v38, %v616_v12 }
 0x3a4   : > { %v603_v30 = vpop.permute.xlu1 %602  ;;  %v680_v38 = vmul.f32 %v664_v8, %v8404_v37 }
 0x3a5   : > { %v618_v3 = vmul.f32 %v603_v30, %v6004_v52  ;;  %v619_v34 = vmul.f32 %v603_v30, %v6007_v61  ;;  %v620_v28 = vmul.f32 %v603_v30, %v6011_v2  ;;  %v621_v45 = vmul.f32 %v603_v30, %v6014_v7 }
 0x3a6   : > { %v667_v16 = vmax.f32 %v651_v6, 0.0  ;;  %v669_v31 = vmax.f32 %v653_v14, 0.0  ;;  %v666_v44 = vmax.f32 %v650_v13, 0.0  ;;  %v668_v5 = vmax.f32 %v652_v49, 0.0 }
 0x3a7   : > { %v655_v7 = vadd.f32 %v639_v39, %v619_v34  ;;  %v657_v18 = vadd.f32 %v639_v39, %v621_v45  ;;  %v654_v32 = vadd.f32 %v639_v39, %v618_v3  ;;  %v656_v48 = vadd.f32 %v639_v39, %v620_v28 }
 0x3a8   : > { %v608_v15 = vpop.permute.xlu1 %607  ;;  %v683_v52 = vmul.f32 %v667_v16, %v5767_v41  ;;  %v685_v61 = vmul.f32 %v669_v31, %v8405_v43  ;;  %v682_v2 = vmul.f32 %v666_v44, %v8403_v35  ;;  %v684_v6 = vmul.f32 %v668_v5, %v8404_v37 }
 0x3a9   : > { %v623_v9 = vmul.f32 %v608_v15, %v6050_v0  ;;  %v625_v8 = vmul.f32 %v608_v15, %v6056_v19  ;;  %v622_v13 = vmul.f32 %v608_v15, %v6045_v29  ;;  %v624_v49 = vmul.f32 %v608_v15, %v6053_v33 }
 0x3aa   : > { %v719_v11 = vpack.c.bf16 %v683_v52, %v679_v10  ;;  %v721_v12 = vpack.c.bf16 %v685_v61, %v681_v36  ;;  %v718_v17 = vpack.c.bf16 %v682_v2, %v678_v1  ;;  %v720_v14 = vpack.c.bf16 %v684_v6, %v680_v38 }
 0x3ab   : > { %v671_v3 = vmax.f32 %v655_v7, 0.0  ;;  %v673_v28 = vmax.f32 %v657_v18, 0.0  ;;  %v670_v16 = vmax.f32 %v654_v32, 0.0  ;;  %v672_v44 = vmax.f32 %v656_v48, 0.0  ;;  %v5247_v32 = vld [vmem:[%s6077_s29] sm:$0xff]  }
 0x3ac   : > { %806 = vmatprep.subr.bf16.mxu0 %v719_v11  ;;  %939 = vmatprep.subr.bf16.mxu1 %v721_v12  ;;  %v644_v30 = vpop.permute.xlu1 %643  ;;  %v8422_v48 = vmov 0   ;;  %v5248_v11 = vld [vmem:[%s6077_s29 + $0x8] sm:$0xff]   ;;  %v5249_v12 = vld [vmem:[%s6077_s29 + $0x10] sm:$0xff]  }
 0x3ad   : > { %807 = vmatpush1.bf16.msra.mxu0 %v718_v17  ;;  %940 = vmatpush1.bf16.msra.mxu1 %v720_v14  ;;  %v659_v34 = vadd.f32 %v644_v30, %v623_v9  ;;  %v661_v39 = vadd.f32 %v644_v30, %v625_v8  ;;  %v658_v45 = vadd.f32 %v644_v30, %v622_v13  ;;  %v5250_v17 = vld [vmem:[%s6077_s29 + $0x18] sm:$0xff]   ;;  %v5251_v14 = vld [vmem:[%s6077_s29 + $0x20] sm:$0xff]   ;;  %v5252_v9 = vld [vmem:[%s6077_s29 + $0x28] sm:$0xff]  }
 0x3ae   : > { %v660_v31 = vadd.f32 %v644_v30, %v624_v49  ;;  %v687_v33 = vmul.f32 %v671_v3, %v5767_v41  ;;  %v689_v36 = vmul.f32 %v673_v28, %v8405_v43  ;;  %v686_v38 = vmul.f32 %v670_v16, %v8403_v35  ;;  %v5253_v8 = vld [vmem:[%s6077_s29 + $0x30] sm:$0xff]   ;;  %v5254_v13 = vld [vmem:[%s6077_s29 + $0x38] sm:$0xff]   ;;  %v5255_v49 = vld [vmem:[%s6077_s29 + $0x40] sm:$0xff]  }
 0x3af   : > { %v675_v0 = vmax.f32 %v659_v34, 0.0  ;;  %v677_v5 = vmax.f32 %v661_v39, 0.0  ;;  %v674_v19 = vmax.f32 %v658_v45, 0.0  ;;  %v688_v52 = vmul.f32 %v672_v44, %v8404_v37  ;;  %v5256_v30 = vld [vmem:[%s6077_s29 + $0x48] sm:$0xff]  }
 0x3b0   : > { %v676_v29 = vmax.f32 %v660_v31, 0.0 }
 0x3b1   : > { %v691_v10 = vmul.f32 %v675_v0, %v5767_v41  ;;  %v693_v1 = vmul.f32 %v677_v5, %v8405_v43  ;;  %v690_v15 = vmul.f32 %v674_v19, %v8403_v35 }
 0x3b2   : > { %v692_v61 = vmul.f32 %v676_v29, %v8404_v37 }
 0x3b3   : > { %v723_v2 = vpack.c.bf16 %v691_v10, %v687_v33  ;;  %v725_v6 = vpack.c.bf16 %v693_v1, %v689_v36  ;;  %v722_v7 = vpack.c.bf16 %v690_v15, %v686_v38 }
 0x3b4   : > { %v724_v18 = vpack.c.bf16 %v692_v61, %v688_v52 }
 0x3b5   : > { %808 = vmatprep.subr.bf16.mxu0 %v723_v2  ;;  %941 = vmatprep.subr.bf16.mxu1 %v725_v6 }
 0x3b6   : > { %809 = vmatpush1.bf16.msra.mxu0 %v722_v7  ;;  %942 = vmatpush1.bf16.msra.mxu1 %v724_v18 }
 0x3b9   : > { %4779 = vmatmul.mubr.msk.bf16.vlgmr.msra.gmra.mrb[0].mxu0 %vm319_vm2, %v5247_v32  ;;  %4789 = vmatmul.mubr.msk.bf16.vlgmr.msra.gmra.mrb[0].mxu1 %vm319_vm2, %v5247_v32 }
 0x3ba   : > { %848 = vmatprep.mubr.bf16.mxu0 %v8422_v48  ;;  %981 = vmatprep.mubr.bf16.mxu1 %v8422_v48 }
 0x3c1   : > { %4780 = vmatmul.mubr.msk.bf16.gmra.mrb[4].mxu0 %vm319_vm2, %v5248_v11  ;;  %4790 = vmatmul.mubr.msk.bf16.gmra.mrb[4].mxu1 %vm319_vm2, %v5248_v11 }
 0x3c2   : > { %858 = vmatprep.mubr.bf16.mxu0 %v8422_v48  ;;  %991 = vmatprep.mubr.bf16.mxu1 %v8422_v48 }
 0x3c9   : > { %4781 = vmatmul.mubr.msk.bf16.gmra.mrb[8].mxu0 %vm319_vm2, %v5249_v12  ;;  %4791 = vmatmul.mubr.msk.bf16.gmra.mrb[8].mxu1 %vm319_vm2, %v5249_v12 }
 0x3ca   : > { %868 = vmatprep.mubr.bf16.mxu0 %v8422_v48  ;;  %1001 = vmatprep.mubr.bf16.mxu1 %v8422_v48 }
 0x3d1   : > { %4782 = vmatmul.mubr.msk.bf16.gmra.mrb[12].mxu0 %vm319_vm2, %v5250_v17  ;;  %4792 = vmatmul.mubr.msk.bf16.gmra.mrb[12].mxu1 %vm319_vm2, %v5250_v17 }
 0x3d2   : > { %878 = vmatprep.mubr.bf16.mxu0 %v8422_v48  ;;  %1011 = vmatprep.mubr.bf16.mxu1 %v8422_v48 }
 0x3d9   : > { %4783 = vmatmul.mubr.msk.bf16.gmra.mrb[16].mxu0 %vm319_vm2, %v5251_v14  ;;  %4793 = vmatmul.mubr.msk.bf16.gmra.mrb[16].mxu1 %vm319_vm2, %v5251_v14 }
 0x3da   : > { %888 = vmatprep.mubr.bf16.mxu0 %v8422_v48  ;;  %1021 = vmatprep.mubr.bf16.mxu1 %v8422_v48 }
 0x3e1   : > { %4784 = vmatmul.mubr.msk.bf16.gmra.mrb[20].mxu0 %vm319_vm2, %v5252_v9  ;;  %4794 = vmatmul.mubr.msk.bf16.gmra.mrb[20].mxu1 %vm319_vm2, %v5252_v9 }
 0x3e2   : > { %898 = vmatprep.mubr.bf16.mxu0 %v8422_v48  ;;  %1031 = vmatprep.mubr.bf16.mxu1 %v8422_v48 }
 0x3e9   : > { %4785 = vmatmul.mubr.msk.bf16.gmra.mrb[24].mxu0 %vm319_vm2, %v5253_v8  ;;  %4795 = vmatmul.mubr.msk.bf16.gmra.mrb[24].mxu1 %vm319_vm2, %v5253_v8 }
 0x3ea   : > { %908 = vmatprep.mubr.bf16.mxu0 %v8422_v48  ;;  %1041 = vmatprep.mubr.bf16.mxu1 %v8422_v48 }
 0x3f1   : > { %4786 = vmatmul.mubr.msk.bf16.gmra.mrb[28].mxu0 %vm319_vm2, %v5254_v13  ;;  %4796 = vmatmul.mubr.msk.bf16.gmra.mrb[28].mxu1 %vm319_vm2, %v5254_v13 }
 0x3f2   : > { %918 = vmatprep.mubr.bf16.mxu0 %v8422_v48  ;;  %1051 = vmatprep.mubr.bf16.mxu1 %v8422_v48 }
 0x3f9   : > { %4787 = vmatmul.mubr.msk.bf16.gmra.mrb[32].mxu0 %vm319_vm2, %v5255_v49  ;;  %4797 = vmatmul.mubr.msk.bf16.gmra.mrb[32].mxu1 %vm319_vm2, %v5255_v49 }
 0x3fa   : > { %928 = vmatprep.mubr.bf16.mxu0 %v8422_v48  ;;  %1061 = vmatprep.mubr.bf16.mxu1 %v8422_v48 }
 0x401   : > { %4788 = vmatmul.mubr.msk.bf16.gmra.mrb[36].mxu0 %vm319_vm2, %v5256_v30  ;;  %4798 = vmatmul.mubr.msk.bf16.gmra.mrb[36].mxu1 %vm319_vm2, %v5256_v30 }
 0x402   : > { %1884 = vmatprep.mubr.bf16.mxu0 %v8422_v48  ;;  %2017 = vmatprep.mubr.bf16.mxu1 %v8422_v48 }
 0x48c   : > { %v840_v34 = vpop.f32.mrb[0].mxu0  ;;  %v973_v3 = vpop.f32.mrb[0].mxu1 }
 0x48d   : > { %1100 = vrot.lane.b32.xlu1 %v840_v34, %s5620_s5  ;;  %v842_v39 = vpop.f32.mrb[1].mxu0  ;;  %v975_v28 = vpop.f32.mrb[1].mxu1 }
 0x48e   : > { %1102 = vrot.lane.b32.xlu0 %v842_v39, %s5620_s5  ;;  %v844_v45 = vpop.f32.mrb[2].mxu0  ;;  %v977_v16 = vpop.f32.mrb[2].mxu1 }
 0x48f   : > { %v846_v31 = vpop.f32.mrb[3].mxu0  ;;  %v979_v44 = vpop.f32.mrb[3].mxu1 }
 0x491   : > { %1104 = vrot.lane.b32.xlu1 %v973_v3, %s5620_s5 }
 0x492   : > { %1110 = vrot.lane.b32.xlu0 %v977_v16, %s5620_s5 }
 0x494   : > { %v850_v0 = vpop.f32.mrb[4].mxu0  ;;  %v983_v5 = vpop.f32.mrb[4].mxu1 }
 0x495   : > { %1076 = vrot.lane.b32.xlu1 %v975_v28, %s5620_s5  ;;  %v852_v19 = vpop.f32.mrb[5].mxu0  ;;  %v985_v29 = vpop.f32.mrb[5].mxu1 }
 0x496   : > { %1078 = vrot.lane.b32.xlu0 %v979_v44, %s5620_s5  ;;  %v854_v33 = vpop.f32.mrb[6].mxu0  ;;  %v987_v10 = vpop.f32.mrb[6].mxu1 }
 0x497   : > { %v856_v36 = vpop.f32.mrb[7].mxu0  ;;  %v989_v1 = vpop.f32.mrb[7].mxu1 }
 0x499   : > { %1106 = vrot.lane.b32.xlu1 %v844_v45, %s5620_s5 }
 0x49a   : > { %1108 = vrot.lane.b32.xlu0 %v846_v31, %s5620_s5 }
 0x49c   : > { %v860_v38 = vpop.f32.mrb[8].mxu0  ;;  %v993_v15 = vpop.f32.mrb[8].mxu1 }
 0x49d   : > { %1112 = vrot.lane.b32.xlu1 %v850_v0, %s5620_s5  ;;  %v862_v52 = vpop.f32.mrb[9].mxu0  ;;  %v995_v61 = vpop.f32.mrb[9].mxu1 }
 0x49e   : > { %1114 = vrot.lane.b32.xlu0 %v852_v19, %s5620_s5  ;;  %v864_v2 = vpop.f32.mrb[10].mxu0  ;;  %v997_v6 = vpop.f32.mrb[10].mxu1 }
 0x49f   : > { %v866_v7 = vpop.f32.mrb[11].mxu0  ;;  %v999_v18 = vpop.f32.mrb[11].mxu1 }
 0x4a1   : > { %1116 = vrot.lane.b32.xlu1 %v983_v5, %s5620_s5 }
 0x4a2   : > { %1122 = vrot.lane.b32.xlu0 %v987_v10, %s5620_s5 }
 0x4a4   : > { %v870_v32 = vpop.f32.mrb[12].mxu0  ;;  %v1003_v11 = vpop.f32.mrb[12].mxu1 }
 0x4a5   : > { %1080 = vrot.lane.b32.xlu1 %v985_v29, %s5620_s5  ;;  %v872_v12 = vpop.f32.mrb[13].mxu0  ;;  %v1005_v17 = vpop.f32.mrb[13].mxu1 }
 0x4a6   : > { %1082 = vrot.lane.b32.xlu0 %v989_v1, %s5620_s5  ;;  %v874_v14 = vpop.f32.mrb[14].mxu0  ;;  %v1007_v9 = vpop.f32.mrb[14].mxu1 }
 0x4a7   : > { %v876_v8 = vpop.f32.mrb[15].mxu0  ;;  %v1009_v13 = vpop.f32.mrb[15].mxu1 }
 0x4a9   : > { %1118 = vrot.lane.b32.xlu1 %v854_v33, %s5620_s5 }
 0x4aa   : > { %1120 = vrot.lane.b32.xlu0 %v856_v36, %s5620_s5 }
 0x4ac   : > { %v6209_v49 = vpop.f32.mrb[16].mxu0  ;;  %v6211_v30 = vpop.f32.mrb[16].mxu1 }
 0x4ad   : > { %1185 = vrot.lane.b32.xlu1 %v860_v38, %s5621_s22  ;;  %v6214_v34 = vpop.f32.mrb[17].mxu0  ;;  %v6216_v3 = vpop.f32.mrb[17].mxu1 }
 0x4ae   : > { %1187 = vrot.lane.b32.xlu0 %v862_v52, %s5621_s22  ;;  %v6219_v39 = vpop.f32.mrb[18].mxu0  ;;  %v6221_v28 = vpop.f32.mrb[18].mxu1 }
 0x4af   : > { %v6223_v45 = vpop.f32.mrb[19].mxu0  ;;  %v6225_v16 = vpop.f32.mrb[19].mxu1 }
 0x4b1   : > { %1189 = vrot.lane.b32.xlu1 %v993_v15, %s5621_s22 }
 0x4b2   : > { %1195 = vrot.lane.b32.xlu0 %v997_v6, %s5621_s22 }
 0x4b4   : > { %v6229_v31 = vpop.f32.mrb[20].mxu0  ;;  %v6231_v44 = vpop.f32.mrb[20].mxu1 }
 0x4b5   : > { %8423 = vst [vmem:[#allocation41_spill] sm:$0xff] %v6229_v31  ;;  %1161 = vrot.lane.b32.xlu1 %v995_v61, %s5621_s22  ;;  %v6234_v0 = vpop.f32.mrb[21].mxu0  ;;  %v6236_v5 = vpop.f32.mrb[21].mxu1 }
 0x4b6   : > { %8424 = vst [vmem:[#allocation42_spill] sm:$0xff] %v6236_v5  ;;  %1163 = vrot.lane.b32.xlu0 %v999_v18, %s5621_s22  ;;  %v6239_v19 = vpop.f32.mrb[22].mxu0  ;;  %v6241_v29 = vpop.f32.mrb[22].mxu1 }
 0x4b7   : > { %8425 = vst [vmem:[#allocation43_spill] sm:$0xff] %v6239_v19  ;;  %8426 = vst [vmem:[#allocation44_spill] sm:$0xff] %v6241_v29  ;;  %v6243_v33 = vpop.f32.mrb[23].mxu0  ;;  %v6245_v10 = vpop.f32.mrb[23].mxu1 }
 0x4b8   : > { %8427 = vst [vmem:[#allocation45_spill] sm:$0xff] %v6243_v33  ;;  %8428 = vst [vmem:[#allocation46_spill] sm:$0xff] %v6245_v10 }
 0x4b9   : > { %1191 = vrot.lane.b32.xlu1 %v864_v2, %s5621_s22 }
 0x4ba   : > { %1193 = vrot.lane.b32.xlu0 %v866_v7, %s5621_s22 }
 0x4bc   : > { %v900_v36 = vpop.f32.mrb[24].mxu0  ;;  %v1033_v1 = vpop.f32.mrb[24].mxu1 }
 0x4bd   : > { %1197 = vrot.lane.b32.xlu1 %v870_v32, %s5621_s22  ;;  %v902_v38 = vpop.f32.mrb[25].mxu0  ;;  %v1035_v15 = vpop.f32.mrb[25].mxu1 }
 0x4be   : > { %1199 = vrot.lane.b32.xlu0 %v872_v12, %s5621_s22  ;;  %v904_v52 = vpop.f32.mrb[26].mxu0  ;;  %v1037_v61 = vpop.f32.mrb[26].mxu1 }
 0x4bf   : > { %v906_v6 = vpop.f32.mrb[27].mxu0  ;;  %v1039_v18 = vpop.f32.mrb[27].mxu1 }
 0x4c1   : > { %1201 = vrot.lane.b32.xlu1 %v1003_v11, %s5621_s22 }
 0x4c2   : > { %1207 = vrot.lane.b32.xlu0 %v1007_v9, %s5621_s22 }
 0x4c4   : > { %v910_v4 = vpop.f32.mrb[28].mxu0  ;;  %v1043_v2 = vpop.f32.mrb[28].mxu1 }
 0x4c5   : > { %1165 = vrot.lane.b32.xlu1 %v1005_v17, %s5621_s22  ;;  %v912_v7 = vpop.f32.mrb[29].mxu0  ;;  %v1045_v63 = vpop.f32.mrb[29].mxu1 }
 0x4c6   : > { %1167 = vrot.lane.b32.xlu0 %v1009_v13, %s5621_s22  ;;  %v914_v32 = vpop.f32.mrb[30].mxu0  ;;  %v1047_v62 = vpop.f32.mrb[30].mxu1 }
 0x4c7   : > { %v916_v51 = vpop.f32.mrb[31].mxu0  ;;  %v1049_v12 = vpop.f32.mrb[31].mxu1 }
 0x4c9   : > { %1203 = vrot.lane.b32.xlu1 %v874_v14, %s5621_s22 }
 0x4ca   : > { %1205 = vrot.lane.b32.xlu0 %v876_v8, %s5621_s22 }
 0x4cc   : > { %v920_v50 = vpop.f32.mrb[32].mxu0  ;;  %v1053_v11 = vpop.f32.mrb[32].mxu1 }
 0x4cd   : > { %1290 = vrot.lane.b32.xlu1 %v900_v36, %s5622_s1  ;;  %v922_v9 = vpop.f32.mrb[33].mxu0  ;;  %v1055_v47 = vpop.f32.mrb[33].mxu1 }
 0x4ce   : > { %1292 = vrot.lane.b32.xlu0 %v902_v38, %s5622_s1  ;;  %v924_v17 = vpop.f32.mrb[34].mxu0  ;;  %v1057_v46 = vpop.f32.mrb[34].mxu1 }
 0x4cf   : > { %v926_v13 = vpop.f32.mrb[35].mxu0  ;;  %v1059_v42 = vpop.f32.mrb[35].mxu1 }
 0x4d1   : > { %1294 = vrot.lane.b32.xlu1 %v1033_v1, %s5622_s1 }
 0x4d2   : > { %1298 = vrot.lane.b32.xlu0 %v904_v52, %s5622_s1 }
 0x4d4   : > { %v930_v14 = vpop.f32.mrb[36].mxu0  ;;  %v1063_v40 = vpop.f32.mrb[36].mxu1 }
 0x4d5   : > { %1296 = vrot.lane.b32.xlu1 %v1035_v15, %s5622_s1  ;;  %v932_v8 = vpop.f32.mrb[37].mxu0  ;;  %v1065_v27 = vpop.f32.mrb[37].mxu1 }
 0x4d6   : > { %1302 = vrot.lane.b32.xlu0 %v1037_v61, %s5622_s1  ;;  %v934_v36 = vpop.f32.mrb[38].mxu0  ;;  %v1067_v23 = vpop.f32.mrb[38].mxu1 }
 0x4d7   : > { %v936_v26 = vpop.f32.mrb[39].mxu0  ;;  %v1069_v38 = vpop.f32.mrb[39].mxu1 }
 0x4d9   : > { %1300 = vrot.lane.b32.xlu1 %v906_v6, %s5622_s1 }
 0x4da   : > { %1304 = vrot.lane.b32.xlu0 %v1039_v18, %s5622_s1 }
 0x4dd   : > { %1306 = vrot.lane.b32.xlu1 %v910_v4, %s5622_s1  ;;  %v6277_v4 = vpop.permute.xlu1 %1478 }
 0x4de   : > { %1308 = vrot.lane.b32.xlu0 %v912_v7, %s5622_s1 }
 0x4e1   : > { %1310 = vrot.lane.b32.xlu1 %v1043_v2, %s5622_s1 }
 0x4e2   : > { %1314 = vrot.lane.b32.xlu0 %v914_v32, %s5622_s1 }
 0x4e5   : > { %1312 = vrot.lane.b32.xlu1 %v1045_v63, %s5622_s1  ;;  %v6280_v63 = vpop.permute.xlu0 %1483 }
 0x4e6   : > { %1318 = vrot.lane.b32.xlu0 %v1047_v62, %s5622_s1  ;;  %8429 = vst [vmem:[#allocation47_spill] sm:$0xff] %v6280_v63 }
 0x4e9   : > { %1316 = vrot.lane.b32.xlu1 %v916_v51, %s5622_s1  ;;  %v6285_v51 = vpop.permute.xlu1 %1488 }
 0x4ea   : > { %1320 = vrot.lane.b32.xlu0 %v1049_v12, %s5622_s1  ;;  %8430 = vst [vmem:[#allocation48_spill] sm:$0xff] %v6285_v51 }
 0x4ed   : > { %1391 = vrot.lane.b32.xlu1 %v920_v50, %s5623_s2  ;;  %v6287_v50 = vpop.permute.xlu0 %1493 }
 0x4ee   : > { %1393 = vrot.lane.b32.xlu0 %v922_v9, %s5623_s2  ;;  %8431 = vst [vmem:[#allocation49_spill] sm:$0xff] %v6287_v50 }
 0x4f1   : > { %1395 = vrot.lane.b32.xlu1 %v1053_v11, %s5623_s2 }
 0x4f2   : > { %1399 = vrot.lane.b32.xlu0 %v924_v17, %s5623_s2 }
 0x4f5   : > { %1397 = vrot.lane.b32.xlu1 %v1055_v47, %s5623_s2 }
 0x4f6   : > { %1403 = vrot.lane.b32.xlu0 %v1057_v46, %s5623_s2 }
 0x4f9   : > { %1401 = vrot.lane.b32.xlu1 %v926_v13, %s5623_s2 }
 0x4fa   : > { %1405 = vrot.lane.b32.xlu0 %v1059_v42, %s5623_s2 }
 0x4fd   : > { %1407 = vrot.lane.b32.xlu1 %v930_v14, %s5623_s2 }
 0x4fe   : > { %1409 = vrot.lane.b32.xlu0 %v932_v8, %s5623_s2 }
 0x4ff   : > { %v1101_v62 = vpop.permute.xlu1 %1100 }
 0x500   : > { %v1103_v1 = vpop.permute.xlu0 %1102 }
 0x501   : > { %1411 = vrot.lane.b32.xlu1 %v1063_v40, %s5623_s2  ;;  %v1125_v19 = vsel %vm1124_vm3, %v1101_v62, %v1103_v1 }
 0x502   : > { %1415 = vrot.lane.b32.xlu0 %v934_v36, %s5623_s2 }
 0x503   : > { %v1105_v47 = vpop.permute.xlu1 %1104 }
 0x504   : > { %v1111_v46 = vpop.permute.xlu0 %1110  ;;  %v1126_v31 = vsel %vm1124_vm3, %v1103_v1, %v1105_v47 }
 0x505   : > { %1417 = vrot.lane.b32.xlu1 %v936_v26, %s5623_s2 }
 0x506   : > { %1419 = vrot.lane.b32.xlu0 %v1067_v23, %s5623_s2 }
 0x507   : > { %v1077_v42 = vpop.permute.xlu1 %1076 }
 0x508   : > { %v1079_v15 = vpop.permute.xlu0 %1078 }
 0x509   : > { %1413 = vrot.lane.b32.xlu1 %v1065_v27, %s5623_s2 }
 0x50a   : > { %1421 = vrot.lane.b32.xlu0 %v1069_v38, %s5623_s2 }
 0x50b   : > { %v1107_v52 = vpop.permute.xlu1 %1106 }
 0x50c   : > { %v1109_v61 = vpop.permute.xlu0 %1108 }
 0x50d   : > { %v1128_v43 = vsel %vm1124_vm3, %v1107_v52, %v1109_v61 }
 0x50f   : > { %v1113_v6 = vpop.permute.xlu1 %1112 }
 0x510   : > { %v1115_v18 = vpop.permute.xlu0 %1114 }
 0x513   : > { %v1117_v2 = vpop.permute.xlu1 %1116 }
 0x514   : > { %v6297_v40 = vpop.permute.xlu0 %1122 }
 0x517   : > { %v1081_v7 = vpop.permute.xlu1 %1080 }
 0x518   : > { %v6299_v32 = vpop.permute.xlu0 %1082 }
 0x51b   : > { %v6301_v12 = vpop.permute.xlu1 %1118 }
 0x51c   : > { %v6303_v26 = vpop.permute.xlu0 %1120 }
 0x51f   : > { %v1186_v23 = vpop.permute.xlu1 %1185 }
 0x520   : > { %v1188_v11 = vpop.permute.xlu0 %1187 }
 0x523   : > { %v1190_v9 = vpop.permute.xlu1 %1189 }
 0x524   : > { %v1196_v27 = vpop.permute.xlu0 %1195  ;;  %v1211_v37 = vsel %vm1209_vm4, %v1188_v11, %v1190_v9 }
 0x527   : > { %v1162_v17 = vpop.permute.xlu1 %1161 }
 0x528   : > { %v1164_v13 = vpop.permute.xlu0 %1163  ;;  %v1238_v33 = vsel %vm1209_vm4, %v1162_v17, %v1186_v23  ;;  %v1212_v1 = vsel %vm1209_vm4, %v1190_v9, %v1162_v17 }
 0x52b   : > { %v1192_v14 = vpop.permute.xlu1 %1191 }
 0x52c   : > { %v1194_v8 = vpop.permute.xlu0 %1193 }
 0x52f   : > { %v6305_v36 = vpop.permute.xlu1 %1197 }
 0x530   : > { %v1200_v38 = vpop.permute.xlu0 %1199 }
 0x533   : > { %v6307_v22 = vpop.permute.xlu1 %1201 }
 0x534   : > { %v6309_v25 = vpop.permute.xlu0 %1207 }
 0x535   : > { %8432 = vst [vmem:[#allocation50_spill] sm:$0xff] %v6309_v25  ;;  %v1210_v25 = vsel %vm1209_vm4, %v1186_v23, %v1188_v11  ;;  %v1216_v11 = vsel %vm1209_vm4, %v6305_v36, %v1200_v38 }
 0x537   : > { %v6311_v21 = vpop.permute.xlu1 %1165 }
 0x538   : > { %v6313_v24 = vpop.permute.xlu0 %1167 }
 0x53b   : > { %v6315_v20 = vpop.permute.xlu1 %1203 }
 0x53c   : > { %v6317_v60 = vpop.permute.xlu0 %1205 }
 0x53f   : > { %v6319_v56 = vpop.permute.xlu1 %1290 }
 0x540   : > { %v1293_v59 = vpop.permute.xlu0 %1292 }
 0x543   : > { %v6321_v55 = vpop.permute.xlu1 %1294 }
 0x544   : > { %v6323_v58 = vpop.permute.xlu0 %1298 }
 0x547   : > { %v6325_v54 = vpop.permute.xlu1 %1296 }
 0x548   : > { %v6327_v57 = vpop.permute.xlu0 %1302 }
 0x54b   : > { %v6329_v53 = vpop.permute.xlu1 %1300 }
 0x54c   : > { %v6331_v48 = vpop.permute.xlu0 %1304 }
 0x54f   : > { %v6333_v50 = vpop.permute.xlu1 %1306 }
 0x550   : > { %8433 = vst [vmem:[#allocation51_spill] sm:$0xff] %v6333_v50  ;;  %v6335_v10 = vpop.permute.xlu0 %1308  ;;  %v1127_v50 = vsel %vm1124_vm3, %v1105_v47, %v1077_v42  ;;  %v1131_v47 = vsel %vm1124_vm3, %v1113_v6, %v1115_v18 }
 0x551   : > { %8434 = vst [vmem:[#allocation52_spill] sm:$0xff] %v6335_v10  ;;  %v1153_v10 = vsel %vm1124_vm3, %v1077_v42, %v1101_v62  ;;  %v1132_v62 = vsel %vm1124_vm3, %v1115_v18, %v1117_v2  ;;  %v6360_v42 = vsel %vm1124_vm3, %v1117_v2, %v1081_v7  ;;  %v1244_v18 = vadd.f32 %v1211_v37, %v1126_v31 }
 0x552   : > { %v1242_v35 = vadd.f32 %v1238_v33, %v1153_v10  ;;  %v1239_v33 = vsel %vm1209_vm4, %v1164_v13, %v1192_v14  ;;  %v1245_v23 = vadd.f32 %v1212_v1, %v1127_v50  ;;  %v1213_v2 = vsel %vm1209_vm4, %v1192_v14, %v1194_v8 }
 0x553   : > { %v6337_v51 = vpop.permute.xlu1 %1310  ;;  %v1156_v37 = vsel %vm1124_vm3, %v6299_v32, %v6301_v12  ;;  %v6389_v31 = vsel %vm1124_vm3, %v6301_v12, %v6303_v26  ;;  %v1247_v17 = vadd.f32 %v1213_v2, %v1128_v43  ;;  %v6398_v12 = vsel %vm1124_vm3, %v6303_v26, %v6297_v40 }
 0x554   : > { %8435 = vst [vmem:[#allocation53_spill] sm:$0xff] %v6337_v51  ;;  %v6339_v29 = vpop.permute.xlu0 %1314  ;;  %v1154_v51 = vsel %vm1124_vm3, %v1079_v15, %v1107_v52  ;;  %v1243_v52 = vadd.f32 %v1210_v25, %v1125_v19  ;;  %v1217_v25 = vsel %vm1209_vm4, %v1200_v38, %v6307_v22  ;;  %v1258_v19 = vadd.f32 %v1242_v35, %v6209_v49 }
 0x555   : > { %8436 = vst [vmem:[#allocation54_spill] sm:$0xff] %v6339_v29  ;;  %v1130_v29 = vsel %vm1124_vm3, %v1111_v46, %v1079_v15  ;;  %v1155_v15 = vsel %vm1124_vm3, %v1081_v7, %v1113_v6  ;;  %v1323_v6 = vsel %vm1322_vm5, %v6319_v56, %v1293_v59  ;;  %v1214_v7 = vsel %vm1209_vm4, %v1194_v8, %v1196_v27 }
 0x556   : > { %v1246_v9 = vadd.f32 %v1239_v33, %v1154_v51  ;;  %v1259_v14 = vadd.f32 %v1243_v52, %v6214_v34  ;;  %v1324_v8 = vsel %vm1322_vm5, %v1293_v59, %v6321_v55  ;;  %v1251_v38 = vadd.f32 %v1216_v11, %v1131_v47 }
 0x557   : > { %v6342_v5 = vpop.permute.xlu1 %1312  ;;  %v1252_v1 = vadd.f32 %v1217_v25, %v1132_v62  ;;  %v1261_v43 = vadd.f32 %v1245_v23, %v6216_v3  ;;  %v1240_v59 = vsel %vm1209_vm4, %v6311_v21, %v6305_v36  ;;  %v1263_v3 = vadd.f32 %v1247_v17, %v6223_v45 }
 0x558   : > { %8437 = vst [vmem:[#allocation55_spill] sm:$0xff] %v6342_v5  ;;  %v6348_v63 = vpop.permute.xlu0 %1318  ;;  %v1129_v5 = vsel %vm1124_vm3, %v1109_v61, %v1111_v46  ;;  %v6368_v46 = vsel %vm1124_vm3, %v6297_v40, %v6299_v32  ;;  %v1215_v61 = vsel %vm1209_vm4, %v1196_v27, %v1164_v13  ;;  %v1359_v13 = vadd.f32 %v1323_v6, %v1258_v19 }
 0x559   : > { %8438 = vst [vmem:[#allocation56_spill] sm:$0xff] %v6348_v63  ;;  %v1249_v50 = vadd.f32 %v1215_v61, %v1130_v29  ;;  %v1248_v49 = vadd.f32 %v1214_v7, %v1129_v5  ;;  %v1260_v29 = vadd.f32 %v1244_v18, %v6211_v30  ;;  %v1360_v34 = vadd.f32 %v1324_v8, %v1259_v14 }
 0x55a   : > { %v1262_v5 = vadd.f32 %v1246_v9, %v6219_v39  ;;  %v1325_v40 = vsel %vm1322_vm5, %v6321_v55, %v6325_v54  ;;  %v1355_v30 = vsel %vm1322_vm5, %v6325_v54, %v6319_v56  ;;  %v6417_v39 = vadd.f32 %v1251_v38, %v6234_v0 }
 0x55b   : > { %v6363_v63 = vpop.permute.xlu1 %1316  ;;  %v1265_v47 = vadd.f32 %v1249_v50, %v6225_v16  ;;  %v1264_v36 = vadd.f32 %v1248_v49, %v6221_v28  ;;  %v6420_v16 = vadd.f32 %v1252_v1, %v6231_v44  ;;  %v1218_v55 = vsel %vm1209_vm4, %v6307_v22, %v6311_v21  ;;  %v8439_v50 = vld [vmem:[#allocation6_spill] sm:$0xff]  ;;  %v8440_v49 = vld [vmem:[#allocation7_spill] sm:$0xff] }
 0x55c   : > { %v6372_v10 = vpop.permute.xlu0 %1320  ;;  %v1250_v33 = vadd.f32 %v1240_v59, %v1155_v15  ;;  %v1241_v54 = vsel %vm1209_vm4, %v6313_v24, %v6315_v20  ;;  %v1361_v45 = vadd.f32 %v1325_v40, %v1260_v29  ;;  %v1362_v28 = vadd.f32 %v1355_v30, %v1261_v43  ;;  %v8441_v43 = vld [vmem:[#allocation50_spill] sm:$0xff] }
 0x55d   : > { %v1326_v0 = vsel %vm1322_vm5, %v6323_v58, %v6329_v53  ;;  %v1327_v21 = vsel %vm1322_vm5, %v6329_v53, %v6327_v57  ;;  %v1328_v22 = vsel %vm1322_vm5, %v6327_v57, %v6331_v48  ;;  %v1356_v6 = vsel %vm1322_vm5, %v6331_v48, %v6323_v58 }
 0x55e   : > { %v1254_v19 = vadd.f32 %v1241_v54, %v1156_v37  ;;  %v1219_v53 = vsel %vm1209_vm4, %v6315_v20, %v6317_v60  ;;  %v1363_v57 = vadd.f32 %v1326_v0, %v1262_v5  ;;  %v1365_v17 = vadd.f32 %v1328_v22, %v1264_v36  ;;  %v8447_v0 = vld [vmem:[#allocation51_spill] sm:$0xff] }
 0x55f   : > { %v1392_v27 = vpop.permute.xlu1 %1391  ;;  %v1366_v48 = vadd.f32 %v1356_v6, %v1265_v47  ;;  %v8443_v47 = vld [vmem:[#allocation47_spill] sm:$0xff]  ;;  %v1253_v36 = vadd.f32 %v1218_v55, %v6360_v42  ;;  %v1255_v55 = vadd.f32 %v1219_v53, %v6389_v31 }
 0x560   : > { %v1394_v35 = vpop.permute.xlu0 %1393  ;;  %v8448_v6 = vld [vmem:[#allocation43_spill] sm:$0xff] }
 0x561   : > { %v1424_v32 = vsel %vm1423_vm6, %v1392_v27, %v1394_v35 }
 0x562   : > { %v1460_v51 = vadd.f32 %v1424_v32, %v1359_v13 }
 0x563   : > { %v1396_v62 = vpop.permute.xlu1 %1395 }
 0x564   : > { %v1425_v26 = vsel %vm1423_vm6, %v1394_v35, %v1396_v62  ;;  %v1400_v52 = vpop.permute.xlu0 %1399  ;;  %v1496_v56 = vadd.f32 %v6277_v4, %v1460_v51 }
 0x565   : > { %v1461_v61 = vadd.f32 %v1425_v26, %v1360_v34  ;;  %v8442_v34 = vld [vmem:[#allocation8_spill] sm:$0xff] }
 0x566   : > { %v6451_v9 = vmul.f32 %v1496_v56, %v8439_v50  ;;  %v8445_v56 = vld [vmem:[#allocation53_spill] sm:$0xff] }
 0x567   : > { %v1497_v44 = vadd.f32 %v6277_v4, %v1461_v61  ;;  %v1398_v18 = vpop.permute.xlu1 %1397  ;;  %v8444_v61 = vld [vmem:[#allocation41_spill] sm:$0xff] }
 0x568   : > { %v1426_v15 = vsel %vm1423_vm6, %v1396_v62, %v1398_v18  ;;  %v1456_v23 = vsel %vm1423_vm6, %v1398_v18, %v1392_v27  ;;  %v1404_v2 = vpop.permute.xlu0 %1403  ;;  %v1364_v27 = vadd.f32 %v1327_v21, %v1263_v3  ;;  %v1266_v54 = vadd.f32 %v1250_v33, %v8444_v61 }
 0x569   : > { %v6445_v7 = vmul.f32 %v1497_v44, %v5767_v41  ;;  %v1462_v11 = vadd.f32 %v1426_v15, %v1361_v45  ;;  %v1463_v25 = vadd.f32 %v1456_v23, %v1362_v28  ;;  %v1221_v23 = vsel %vm1209_vm4, %v8441_v43, %v6313_v24  ;;  %v8450_v24 = vld [vmem:[#allocation56_spill] sm:$0xff] }
 0x56b   : > { %v1498_v13 = vadd.f32 %v6277_v4, %v1462_v11  ;;  %v1402_v14 = vpop.permute.xlu1 %1401  ;;  %v1499_v58 = vadd.f32 %v6277_v4, %v1463_v25  ;;  %v1528_v20 = vadd.f32 %v6445_v7, %v6451_v9  ;;  %v1220_v4 = vsel %vm1209_vm4, %v6317_v60, %v8441_v43  ;;  %v8446_v60 = vld [vmem:[#allocation52_spill] sm:$0xff] }
 0x56c   : > { %v1427_v8 = vsel %vm1423_vm6, %v1400_v52, %v1402_v14  ;;  %v1428_v37 = vsel %vm1423_vm6, %v1402_v14, %v1404_v2  ;;  %v1406_v35 = vpop.permute.xlu0 %1405  ;;  %v1329_v44 = vsel %vm1322_vm5, %v8447_v0, %v8446_v60  ;;  %v1256_v33 = vadd.f32 %v1220_v4, %v6398_v12  ;;  %v8449_v12 = vld [vmem:[#allocation54_spill] sm:$0xff] }
 0x56d   : > { %v6460_v38 = vmul.f32 %v1498_v13, %v8440_v49  ;;  %v1464_v1 = vadd.f32 %v1427_v8, %v1363_v57  ;;  %v1465_v32 = vadd.f32 %v1428_v37, %v1364_v27  ;;  %v1429_v29 = vsel %vm1423_vm6, %v1404_v2, %v1406_v35  ;;  %v8451_v8 = vld [vmem:[#allocation42_spill] sm:$0xff] }
 0x56e   : > { %v1457_v51 = vsel %vm1423_vm6, %v1406_v35, %v1400_v52  ;;  %v1466_v59 = vadd.f32 %v1429_v29, %v1365_v17  ;;  %v6468_v5 = vmul.f32 %v1499_v58, %v8442_v34  ;;  %v1330_v52 = vsel %vm1322_vm5, %v8446_v60, %v8445_v56  ;;  %v8452_v35 = vld [vmem:[#allocation45_spill] sm:$0xff]  ;;  %v8454_v29 = vld [vmem:[#allocation55_spill] sm:$0xff] }
 0x56f   : > { %v1500_v62 = vadd.f32 %v8443_v47, %v1464_v1  ;;  %v1501_v40 = vadd.f32 %v8443_v47, %v1465_v32  ;;  %v1467_v30 = vadd.f32 %v1457_v51, %v1366_v48  ;;  %v1408_v3 = vpop.permute.xlu1 %1407  ;;  %v1529_v26 = vadd.f32 %v1528_v20, %v6460_v38  ;;  %v8453_v1 = vld [vmem:[#allocation44_spill] sm:$0xff] }
 0x570   : > { %v1502_v45 = vadd.f32 %v8443_v47, %v1466_v59  ;;  %v1410_v28 = vpop.permute.xlu0 %1409  ;;  %v1368_v2 = vadd.f32 %v1330_v52, %v6417_v39  ;;  %v1270_v11 = vadd.f32 %v1254_v19, %v8448_v6  ;;  %v1367_v53 = vadd.f32 %v1329_v44, %v1266_v54  ;;  %v8456_v52 = vld [vmem:[#allocation46_spill] sm:$0xff] }
 0x571   : > { %v6483_v18 = vmul.f32 %v1500_v62, %v8439_v50  ;;  %v6486_v21 = vmul.f32 %v1501_v40, %v5767_v41  ;;  %v1530_v42 = vadd.f32 %v1529_v26, %v6468_v5  ;;  %v1503_v15 = vadd.f32 %v8443_v47, %v1467_v30 }
 0x572   : > { %v6492_v22 = vmul.f32 %v1502_v45, %v8440_v49  ;;  %v1332_v57 = vsel %vm1322_vm5, %v8449_v12, %v6363_v63  ;;  %v1430_v27 = vsel %vm1423_vm6, %v1408_v3, %v1410_v28  ;;  %v1333_v39 = vsel %vm1322_vm5, %v6363_v63, %v8450_v24 }
 0x573   : > { %1531 = vadd.xlane.f32.xlu1 %v1530_v42  ;;  %v1412_v25 = vpop.permute.xlu1 %1411  ;;  %v1533_v31 = vadd.f32 %v6486_v21, %v6483_v18  ;;  %v6511_v14 = vmul.f32 %v1503_v15, %v8442_v34  ;;  %v1257_v48 = vadd.f32 %v1221_v23, %v6368_v46  ;;  %v1269_v37 = vadd.f32 %v1253_v36, %v8451_v8  ;;  %v8455_v36 = vld [vmem:[#allocation48_spill] sm:$0xff] }
 0x574   : > { %v1431_v17 = vsel %vm1423_vm6, %v1410_v28, %v1412_v25  ;;  %v1416_v13 = vpop.permute.xlu0 %1415  ;;  %v1271_v20 = vadd.f32 %v1255_v55, %v8452_v35  ;;  %v1272_v32 = vadd.f32 %v1256_v33, %v8453_v1  ;;  %v1331_v43 = vsel %vm1322_vm5, %v8445_v56, %v8454_v29  ;;  %v8457_v55 = vld [vmem:[#allocation49_spill] sm:$0xff] }
 0x575   : > { %v1469_v19 = vadd.f32 %v1431_v17, %v1368_v2  ;;  %v1534_v58 = vadd.f32 %v1533_v31, %v6492_v22  ;;  %v1371_v4 = vadd.f32 %v1332_v57, %v1270_v11  ;;  %v1468_v63 = vadd.f32 %v1430_v27, %v1367_v53 }
 0x576   : > { %v1357_v47 = vsel %vm1322_vm5, %v8454_v29, %v8447_v0  ;;  %v1372_v46 = vadd.f32 %v1333_v39, %v1271_v20  ;;  %v1334_v62 = vsel %vm1322_vm5, %v8450_v24, %v6372_v10  ;;  %v1358_v26 = vsel %vm1322_vm5, %v6372_v10, %v8449_v12 }
 0x577   : > { %v1418_v51 = vpop.permute.xlu1 %1417  ;;  %v1535_v59 = vadd.f32 %v1534_v58, %v6511_v14  ;;  %v1505_v61 = vadd.f32 %v8455_v36, %v1469_v19  ;;  %v1369_v60 = vadd.f32 %v1331_v43, %v6420_v16  ;;  %v1273_v45 = vadd.f32 %v1257_v48, %v8456_v52 }
 0x578   : > { %v1433_v40 = vsel %vm1423_vm6, %v1416_v13, %v1418_v51  ;;  %v1420_v30 = vpop.permute.xlu0 %1419  ;;  %v1370_v0 = vadd.f32 %v1357_v47, %v1269_v37  ;;  %v1373_v44 = vadd.f32 %v1334_v62, %v1272_v32  ;;  %v1504_v42 = vadd.f32 %v8455_v36, %v1468_v63 }
 0x579   : > { %v1472_v54 = vadd.f32 %v1433_v40, %v1371_v4  ;;  %v1434_v56 = vsel %vm1423_vm6, %v1418_v51, %v1420_v30  ;;  %1536 = vadd.xlane.f32.xlu0 %v1535_v59  ;;  %v1374_v23 = vadd.f32 %v1358_v26, %v1273_v45  ;;  %v6542_v16 = vmul.f32 %v1505_v61, %v5767_v41 }
 0x57a   : > { %v1473_v28 = vadd.f32 %v1434_v56, %v1372_v46 }
 0x57b   : > { %v1508_v33 = vadd.f32 %v8457_v55, %v1472_v54  ;;  %v1414_v15 = vpop.permute.xlu1 %1413 }
 0x57c   : > { %v1509_v10 = vadd.f32 %v8457_v55, %v1473_v28  ;;  %v1432_v2 = vsel %vm1423_vm6, %v1412_v25, %v1414_v15  ;;  %v1458_v6 = vsel %vm1423_vm6, %v1414_v15, %v1408_v3  ;;  %v1422_v11 = vpop.permute.xlu0 %1421  ;;  %v6553_v25 = vmul.f32 %v1504_v42, %v8439_v50 }
 0x57d   : > { %v1470_v31 = vadd.f32 %v1432_v2, %v1369_v60  ;;  %v1471_v53 = vadd.f32 %v1458_v6, %v1370_v0  ;;  %v1435_v12 = vsel %vm1423_vm6, %v1420_v30, %v1422_v11  ;;  %v6546_v57 = vmul.f32 %v1508_v33, %v8439_v50 }
 0x57e   : > { %v6549_v27 = vmul.f32 %v1509_v10, %v5767_v41  ;;  %v1459_v17 = vsel %vm1423_vm6, %v1422_v11, %v1416_v13  ;;  %v1474_v24 = vadd.f32 %v1435_v12, %v1373_v44  ;;  %v1538_v8 = vadd.f32 %v6542_v16, %v6553_v25 }
 0x57f   : > { %v1506_v3 = vadd.f32 %v8455_v36, %v1470_v31  ;;  %v1475_v39 = vadd.f32 %v1459_v17, %v1374_v23  ;;  %v1507_v19 = vadd.f32 %v8455_v36, %v1471_v53 }
 0x580   : > { %v1510_v58 = vadd.f32 %v8457_v55, %v1474_v24  ;;  %v1543_v35 = vadd.f32 %v6549_v27, %v6546_v57 }
 0x581   : > { %v6559_v48 = vmul.f32 %v1506_v3, %v8440_v49  ;;  %v1511_v37 = vadd.f32 %v8457_v55, %v1475_v39  ;;  %v6570_v20 = vmul.f32 %v1507_v19, %v8442_v34 }
 0x582   : > { %v6565_v13 = vmul.f32 %v1510_v58, %v8440_v49 }
 0x583   : > { %v1539_v1 = vadd.f32 %v1538_v8, %v6559_v48  ;;  %v6574_v32 = vmul.f32 %v1511_v37, %v8442_v34 }
 0x584   : > { %v1544_v29 = vadd.f32 %v1543_v35, %v6565_v13 }
 0x585   : > { %v1540_v43 = vadd.f32 %v1539_v1, %v6570_v20 }
 0x586   : > { %v1545_v4 = vadd.f32 %v1544_v29, %v6574_v32 }
 0x587   : > { %1541 = vadd.xlane.f32.xlu0 %v1540_v43 }
 0x588   : > { %1546 = vadd.xlane.f32.xlu1 %v1545_v4 }
 0x600   : > { %v1532_v63 = vpop.xlane.xlu1 %1531 }
 0x601   : > { %v1548_v51 = vmul.f32 0.00390625, %v1532_v63 }
 0x603   : > { %v1552_v59 = vsub.f32 %v6451_v9, %v1548_v51  ;;  %v1553_v47 = vsub.f32 %v6445_v7, %v1548_v51  ;;  %v1554_v46 = vsub.f32 %v6460_v38, %v1548_v51  ;;  %v1555_v62 = vsub.f32 %v6468_v5, %v1548_v51 }
 0x605   : > { %v6584_v40 = vmul.f32 %v1552_v59, %v8439_v50  ;;  %v6587_v30 = vmul.f32 %v1553_v47, %v5767_v41  ;;  %v6590_v26 = vmul.f32 %v1554_v46, %v8440_v49  ;;  %v6593_v61 = vmul.f32 %v1555_v62, %v8442_v34 }
 0x606   : > { %v1537_v36 = vpop.xlane.xlu0 %1536 }
 0x607   : > { %v1549_v9 = vmul.f32 0.00390625, %v1537_v36  ;;  %v1584_v7 = vmul.f32 %v6584_v40, %v6584_v40  ;;  %v1585_v38 = vmul.f32 %v6587_v30, %v6587_v30  ;;  %v1586_v5 = vmul.f32 %v6590_v26, %v6590_v26 }
 0x608   : > { %v1587_v45 = vmul.f32 %v6593_v61, %v6593_v61 }
 0x609   : > { %v1556_v54 = vsub.f32 %v6483_v18, %v1549_v9  ;;  %v1557_v56 = vsub.f32 %v6486_v21, %v1549_v9  ;;  %v1600_v60 = vadd.f32 %v1585_v38, %v1584_v7  ;;  %v1558_v52 = vsub.f32 %v6492_v22, %v1549_v9  ;;  %v469_v7 = vld [vmem:[%s6085_s16 + $0x20] sm:$0xff]  ;;  %v470_v38 = vld [vmem:[%s6085_s16 + $0x28] sm:$0xff] }
 0x60a   : > { %v1559_v28 = vsub.f32 %v6511_v14, %v1549_v9 }
 0x60b   : > { %v6608_v0 = vmul.f32 %v1556_v54, %v8439_v50  ;;  %v6611_v44 = vmul.f32 %v1557_v56, %v5767_v41  ;;  %v1601_v42 = vadd.f32 %v1600_v60, %v1586_v5  ;;  %v6614_v55 = vmul.f32 %v1558_v52, %v8440_v49 }
 0x60c   : > { %v6617_v21 = vmul.f32 %v1559_v28, %v8442_v34  ;;  %v460_v28 = vld [vmem:[%s6094_s19 + $0x20] sm:$0xff] }
 0x60d   : > { %v1602_v18 = vadd.f32 %v1601_v42, %v1587_v45  ;;  %v1588_v22 = vmul.f32 %v6608_v0, %v6608_v0  ;;  %v1589_v14 = vmul.f32 %v6611_v44, %v6611_v44  ;;  %v1590_v33 = vmul.f32 %v6614_v55, %v6614_v55 }
 0x60e   : > { %v1591_v23 = vmul.f32 %v6617_v21, %v6617_v21 }
 0x60f   : > { %1603 = vadd.xlane.f32.xlu0 %v1602_v18  ;;  %v1605_v15 = vadd.f32 %v1589_v14, %v1588_v22  ;;  %v461_v22 = vld [vmem:[%s6094_s19 + $0x28] sm:$0xff] }
 0x611   : > { %v1606_v10 = vadd.f32 %v1605_v15, %v1590_v33 }
 0x613   : > { %v1607_v2 = vadd.f32 %v1606_v10, %v1591_v23 }
 0x614   : > { %v1542_v6 = vpop.xlane.xlu0 %1541 }
 0x615   : > { %v1550_v11 = vmul.f32 0.00390625, %v1542_v6  ;;  %1608 = vadd.xlane.f32.xlu1 %v1607_v2  ;;  %v1547_v31 = vpop.xlane.xlu1 %1546 }
 0x616   : > { %v1551_v53 = vmul.f32 0.00390625, %v1547_v31  ;;  %v462_v31 = vld [vmem:[%s6094_s19 + $0x30] sm:$0xff] }
 0x617   : > { %v1560_v12 = vsub.f32 %v6553_v25, %v1550_v11  ;;  %v1561_v17 = vsub.f32 %v6542_v16, %v1550_v11  ;;  %v1562_v24 = vsub.f32 %v6559_v48, %v1550_v11  ;;  %v1563_v3 = vsub.f32 %v6570_v20, %v1550_v11 }
 0x618   : > { %v1564_v39 = vsub.f32 %v6546_v57, %v1551_v53  ;;  %v1565_v19 = vsub.f32 %v6549_v27, %v1551_v53  ;;  %v1566_v58 = vsub.f32 %v6565_v13, %v1551_v53  ;;  %v1567_v8 = vsub.f32 %v6574_v32, %v1551_v53  ;;  %v463_v53 = vld [vmem:[%s6094_s19 + $0x38] sm:$0xff] }
 0x619   : > { %v6636_v37 = vmul.f32 %v1560_v12, %v8439_v50  ;;  %v6639_v35 = vmul.f32 %v1561_v17, %v5767_v41  ;;  %v6642_v16 = vmul.f32 %v1562_v24, %v8440_v49  ;;  %v6654_v48 = vmul.f32 %v1563_v3, %v8442_v34 }
 0x61a   : > { %v6645_v25 = vmul.f32 %v1564_v39, %v8439_v50  ;;  %v6648_v57 = vmul.f32 %v1565_v19, %v5767_v41  ;;  %v6651_v27 = vmul.f32 %v1566_v58, %v8440_v49  ;;  %v6661_v1 = vmul.f32 %v1567_v8, %v8442_v34  ;;  %v471_v39 = vld [vmem:[%s6085_s16 + $0x30] sm:$0xff]  ;;  %v472_v19 = vld [vmem:[%s6085_s16 + $0x38] sm:$0xff]  ;;  %v478_v58 = vld [vmem:[%s6101_s0 + $0x20] sm:$0xff] }
 0x61b   : > { %v1592_v13 = vmul.f32 %v6636_v37, %v6636_v37  ;;  %v1593_v20 = vmul.f32 %v6639_v35, %v6639_v35  ;;  %v1594_v43 = vmul.f32 %v6642_v16, %v6642_v16  ;;  %v1595_v59 = vmul.f32 %v6654_v48, %v6654_v48  ;;  %v479_v8 = vld [vmem:[%s6101_s0 + $0x28] sm:$0xff] }
 0x61c   : > { %v1596_v32 = vmul.f32 %v6645_v25, %v6645_v25  ;;  %v1597_v29 = vmul.f32 %v6648_v57, %v6648_v57  ;;  %v1598_v63 = vmul.f32 %v6651_v27, %v6651_v27  ;;  %v1599_v46 = vmul.f32 %v6661_v1, %v6661_v1 }
 0x61d   : > { %v1610_v4 = vadd.f32 %v1593_v20, %v1592_v13  ;;  %v480_v13 = vld [vmem:[%s6101_s0 + $0x30] sm:$0xff]  ;;  %v481_v20 = vld [vmem:[%s6101_s0 + $0x38] sm:$0xff] }
 0x61e   : > { %v1615_v51 = vadd.f32 %v1597_v29, %v1596_v32 }
 0x61f   : > { %v1611_v47 = vadd.f32 %v1610_v4, %v1594_v43 }
 0x620   : > { %v1616_v62 = vadd.f32 %v1615_v51, %v1598_v63 }
 0x621   : > { %v1612_v36 = vadd.f32 %v1611_v47, %v1595_v59 }
 0x622   : > { %v1617_v9 = vadd.f32 %v1616_v62, %v1599_v46 }
 0x623   : > { %1613 = vadd.xlane.f32.xlu0 %v1612_v36 }
 0x624   : > { %1618 = vadd.xlane.f32.xlu1 %v1617_v9 }
 0x635   : > { %1674 = vperm.xlu1 %5246, %v469_v7  }
 0x639   : > { %1679 = vperm.xlu0 %5245, %v470_v38  }
 0x69c   : > { %v1604_v5 = vpop.xlane.xlu0 %1603 }
 0x69d   : > { %v1620_v54 = vmul.f32 0.00390625, %v1604_v5 }
 0x69f   : > { %v1624_v56 = vadd.f32 1e-05, %v1620_v54 }
 0x6a1   : > { %5275 = vrsqrt.f32 %v1624_v56 }
 0x6a2   : > { %v1609_v60 = vpop.xlane.xlu1 %1608 }
 0x6a3   : > { %v1621_v52 = vmul.f32 0.00390625, %v1609_v60 }
 0x6a5   : > { %v1625_v45 = vadd.f32 1e-05, %v1621_v52 }
 0x6a7   : > { %5277 = vrsqrt.f32 %v1625_v45 }
 0x6ab   : > { %v5276_v42 = vpop.eup %5275 }
 0x6ac   : > { %v1632_v18 = vmul.f32 %v5276_v42, %v460_v28 }
 0x6ae   : > { %1638 = vperm.xlu0 %5245, %v1632_v18  }
 0x6b0   : > { %v1614_v14 = vpop.xlane.xlu0 %1613 }
 0x6b1   : > { %v5278_v33 = vpop.eup %5277  ;;  %v1622_v15 = vmul.f32 0.00390625, %v1614_v14  ;;  %v1619_v23 = vpop.xlane.xlu1 %1618 }
 0x6b2   : > { %v1623_v10 = vmul.f32 0.00390625, %v1619_v23  ;;  %v1633_v2 = vmul.f32 %v5278_v33, %v461_v22 }
 0x6b3   : > { %v1626_v6 = vadd.f32 1e-05, %v1622_v15 }
 0x6b4   : > { %v1627_v11 = vadd.f32 1e-05, %v1623_v10  ;;  %1643 = vperm.xlu1 %5246, %v1633_v2  }
 0x6b5   : > { %5279 = vrsqrt.f32 %v1626_v6  ;;  %v1675_v63 = vpop.permute.xlu1 %1674 }
 0x6b6   : > { %5281 = vrsqrt.f32 %v1627_v11 }
 0x6b8   : > { %v1680_v32 = vpop.permute.xlu0 %1679 }
 0x6bf   : > { %v5280_v12 = vpop.eup %5279 }
 0x6c0   : > { %v5282_v17 = vpop.eup %5281  ;;  %v1634_v24 = vmul.f32 %v5280_v12, %v462_v31 }
 0x6c1   : > { %v1635_v3 = vmul.f32 %v5282_v17, %v463_v53 }
 0x6c2   : > { %1648 = vperm.xlu1 %5246, %v1634_v24  }
 0x6c3   : > { %1653 = vperm.xlu0 %5245, %v1635_v3  }
 0x6c6   : > { %1684 = vperm.xlu1 %5246, %v471_v39  }
 0x6c7   : > { %1689 = vperm.xlu0 %5245, %v472_v19  }
 0x6ca   : > { %2520 = vperm.xlu1 %5246, %v478_v58  }
 0x6cb   : > { %2525 = vperm.xlu0 %5245, %v479_v8  }
 0x6ce   : > { %2530 = vperm.xlu1 %5246, %v480_v13  }
 0x6cf   : > { %2535 = vperm.xlu0 %5245, %v481_v20  }
 0x72d   : > { %v1639_v29 = vpop.permute.xlu0 %1638 }
 0x72e   : > { %v1656_v43 = vmul.f32 %v1639_v29, %v6584_v40  ;;  %v1657_v4 = vmul.f32 %v1639_v29, %v6587_v30  ;;  %v1658_v51 = vmul.f32 %v1639_v29, %v6590_v26  ;;  %v1659_v59 = vmul.f32 %v1639_v29, %v6593_v61 }
 0x730   : > { %v1692_v47 = vadd.f32 %v1675_v63, %v1656_v43  ;;  %v1693_v46 = vadd.f32 %v1675_v63, %v1657_v4  ;;  %v1694_v62 = vadd.f32 %v1675_v63, %v1658_v51  ;;  %v1695_v9 = vadd.f32 %v1675_v63, %v1659_v59 }
 0x732   : > { %v1708_v54 = vmax.f32 %v1692_v47, 0.0  ;;  %v1709_v60 = vmax.f32 %v1693_v46, 0.0  ;;  %v1710_v26 = vmax.f32 %v1694_v62, 0.0  ;;  %v1711_v45 = vmax.f32 %v1695_v9, 0.0 }
 0x733   : > { %v1644_v36 = vpop.permute.xlu1 %1643 }
 0x734   : > { %v1660_v7 = vmul.f32 %v1644_v36, %v6608_v0  ;;  %v1661_v38 = vmul.f32 %v1644_v36, %v6611_v44  ;;  %v1662_v5 = vmul.f32 %v1644_v36, %v6614_v55  ;;  %v1663_v40 = vmul.f32 %v1644_v36, %v6617_v21 }
 0x735   : > { %v1724_v0 = vmul.f32 %v1708_v54, %v8439_v50  ;;  %v1725_v55 = vmul.f32 %v1709_v60, %v5767_v41  ;;  %v1726_v14 = vmul.f32 %v1710_v26, %v8440_v49  ;;  %v1727_v15 = vmul.f32 %v1711_v45, %v8442_v34  ;;  %v5257_v26 = vld [vmem:[%s6077_s29 + $0x50] sm:$0xff]   ;;  %v5259_v45 = vld [vmem:[%s6077_s29 + $0x60] sm:$0xff]  }
 0x736   : > { %v1696_v30 = vadd.f32 %v1680_v32, %v1660_v7  ;;  %v1697_v56 = vadd.f32 %v1680_v32, %v1661_v38  ;;  %v1698_v52 = vadd.f32 %v1680_v32, %v1662_v5  ;;  %v1699_v61 = vadd.f32 %v1680_v32, %v1663_v40 }
 0x738   : > { %v1712_v28 = vmax.f32 %v1696_v30, 0.0  ;;  %v1713_v42 = vmax.f32 %v1697_v56, 0.0  ;;  %v1714_v18 = vmax.f32 %v1698_v52, 0.0  ;;  %v1715_v22 = vmax.f32 %v1699_v61, 0.0  ;;  %v5258_v61 = vld [vmem:[%s6077_s29 + $0x58] sm:$0xff]  }
 0x739   : > { %v8458_v52 = vmov 0  }
 0x73a   : > { %v1728_v44 = vmul.f32 %v1712_v28, %v8439_v50  ;;  %v1729_v21 = vmul.f32 %v1713_v42, %v5767_v41  ;;  %v1730_v33 = vmul.f32 %v1714_v18, %v8440_v49  ;;  %v1731_v23 = vmul.f32 %v1715_v22, %v8442_v34  ;;  %v5260_v28 = vld [vmem:[%s6077_s29 + $0x68] sm:$0xff]   ;;  %v5261_v42 = vld [vmem:[%s6077_s29 + $0x70] sm:$0xff]   ;;  %v5262_v18 = vld [vmem:[%s6077_s29 + $0x78] sm:$0xff]  }
 0x73b   : > { %v5263_v22 = vld [vmem:[%s6077_s29 + $0x80] sm:$0xff]  }
 0x73c   : > { %v1765_v10 = vpack.c.bf16 %v1729_v21, %v1725_v55  ;;  %v1764_v2 = vpack.c.bf16 %v1728_v44, %v1724_v0  ;;  %v1767_v6 = vpack.c.bf16 %v1731_v23, %v1727_v15  ;;  %v1766_v11 = vpack.c.bf16 %v1730_v33, %v1726_v14  ;;  %v5264_v0 = vld [vmem:[%s6077_s29 + $0x88] sm:$0xff]   ;;  %v5265_v44 = vld [vmem:[%s6077_s29 + $0x90] sm:$0xff]   ;;  %v5266_v55 = vld [vmem:[%s6077_s29 + $0x98] sm:$0xff]  }
 0x73e   : > { %1852 = vmatprep.subr.bf16.mxu0 %v1765_v10  ;;  %1985 = vmatprep.subr.bf16.mxu1 %v1767_v6 }
 0x73f   : > { %1853 = vmatpush1.bf16.msra.mxu0 %v1764_v2  ;;  %1986 = vmatpush1.bf16.msra.mxu1 %v1766_v11 }
 0x741   : > { %v1649_v31 = vpop.permute.xlu1 %1648 }
 0x742   : > { %v1654_v53 = vpop.permute.xlu0 %1653  ;;  %v1664_v12 = vmul.f32 %v1649_v31, %v6636_v37  ;;  %v1665_v17 = vmul.f32 %v1649_v31, %v6639_v35  ;;  %v1666_v24 = vmul.f32 %v1649_v31, %v6642_v16  ;;  %v1667_v3 = vmul.f32 %v1649_v31, %v6654_v48 }
 0x743   : > { %v1668_v39 = vmul.f32 %v1654_v53, %v6645_v25  ;;  %v1669_v19 = vmul.f32 %v1654_v53, %v6648_v57  ;;  %v1670_v58 = vmul.f32 %v1654_v53, %v6651_v27  ;;  %v1671_v8 = vmul.f32 %v1654_v53, %v6661_v1 }
 0x745   : > { %v1685_v13 = vpop.permute.xlu1 %1684 }
 0x746   : > { %v1700_v20 = vadd.f32 %v1685_v13, %v1664_v12  ;;  %v1701_v32 = vadd.f32 %v1685_v13, %v1665_v17  ;;  %v1702_v29 = vadd.f32 %v1685_v13, %v1666_v24  ;;  %v1703_v43 = vadd.f32 %v1685_v13, %v1667_v3  ;;  %v1690_v37 = vpop.permute.xlu0 %1689 }
 0x747   : > { %v1704_v4 = vadd.f32 %v1690_v37, %v1668_v39  ;;  %v1705_v35 = vadd.f32 %v1690_v37, %v1669_v19  ;;  %v1706_v63 = vadd.f32 %v1690_v37, %v1670_v58  ;;  %v1707_v16 = vadd.f32 %v1690_v37, %v1671_v8 }
 0x748   : > { %v1716_v51 = vmax.f32 %v1700_v20, 0.0  ;;  %v1717_v48 = vmax.f32 %v1701_v32, 0.0  ;;  %v1718_v59 = vmax.f32 %v1702_v29, 0.0  ;;  %v1719_v25 = vmax.f32 %v1703_v43, 0.0 }
 0x749   : > { %v1720_v47 = vmax.f32 %v1704_v4, 0.0  ;;  %v1721_v57 = vmax.f32 %v1705_v35, 0.0  ;;  %v1722_v46 = vmax.f32 %v1706_v63, 0.0  ;;  %v1723_v27 = vmax.f32 %v1707_v16, 0.0 }
 0x74a   : > { %v1732_v1 = vmul.f32 %v1716_v51, %v8439_v50  ;;  %v1734_v62 = vmul.f32 %v1718_v59, %v8440_v49  ;;  %v1733_v36 = vmul.f32 %v1717_v48, %v5767_v41  ;;  %v1735_v9 = vmul.f32 %v1719_v25, %v8442_v34 }
 0x74b   : > { %v1736_v7 = vmul.f32 %v1720_v47, %v8439_v50  ;;  %v1738_v38 = vmul.f32 %v1722_v46, %v8440_v49  ;;  %v1737_v5 = vmul.f32 %v1721_v57, %v5767_v41  ;;  %v1739_v40 = vmul.f32 %v1723_v27, %v8442_v34 }
 0x74d   : > { %v1769_v54 = vpack.c.bf16 %v1737_v5, %v1733_v36  ;;  %v1771_v30 = vpack.c.bf16 %v1739_v40, %v1735_v9  ;;  %v1768_v56 = vpack.c.bf16 %v1736_v7, %v1732_v1  ;;  %v1770_v60 = vpack.c.bf16 %v1738_v38, %v1734_v62 }
 0x74f   : > { %1854 = vmatprep.subr.bf16.mxu0 %v1769_v54  ;;  %1987 = vmatprep.subr.bf16.mxu1 %v1771_v30 }
 0x750   : > { %1855 = vmatpush1.bf16.msra.mxu0 %v1768_v56  ;;  %1988 = vmatpush1.bf16.msra.mxu1 %v1770_v60 }
 0x753   : > { %4831 = vmatmul.mubr.msk.bf16.vlgmr.msra.gmra.mrb[40].mxu0 %vm319_vm2, %v5257_v26  ;;  %4841 = vmatmul.mubr.msk.bf16.vlgmr.msra.gmra.mrb[40].mxu1 %vm319_vm2, %v5257_v26 }
 0x754   : > { %1894 = vmatprep.mubr.bf16.mxu0 %v8458_v52  ;;  %2027 = vmatprep.mubr.bf16.mxu1 %v8458_v52 }
 0x75b   : > { %4832 = vmatmul.mubr.msk.bf16.gmra.mrb[44].mxu0 %vm319_vm2, %v5258_v61  ;;  %4842 = vmatmul.mubr.msk.bf16.gmra.mrb[44].mxu1 %vm319_vm2, %v5258_v61 }
 0x75c   : > { %1904 = vmatprep.mubr.bf16.mxu0 %v8458_v52  ;;  %2037 = vmatprep.mubr.bf16.mxu1 %v8458_v52 }
 0x763   : > { %4833 = vmatmul.mubr.msk.bf16.gmra.mrb[48].mxu0 %vm319_vm2, %v5259_v45  ;;  %4843 = vmatmul.mubr.msk.bf16.gmra.mrb[48].mxu1 %vm319_vm2, %v5259_v45 }
 0x764   : > { %1914 = vmatprep.mubr.bf16.mxu0 %v8458_v52  ;;  %2047 = vmatprep.mubr.bf16.mxu1 %v8458_v52 }
 0x76b   : > { %4834 = vmatmul.mubr.msk.bf16.gmra.mrb[52].mxu0 %vm319_vm2, %v5260_v28  ;;  %4844 = vmatmul.mubr.msk.bf16.gmra.mrb[52].mxu1 %vm319_vm2, %v5260_v28 }
 0x76c   : > { %1924 = vmatprep.mubr.bf16.mxu0 %v8458_v52  ;;  %2057 = vmatprep.mubr.bf16.mxu1 %v8458_v52 }
 0x773   : > { %4835 = vmatmul.mubr.msk.bf16.gmra.mrb[56].mxu0 %vm319_vm2, %v5261_v42  ;;  %4845 = vmatmul.mubr.msk.bf16.gmra.mrb[56].mxu1 %vm319_vm2, %v5261_v42 }
 0x774   : > { %1934 = vmatprep.mubr.bf16.mxu0 %v8458_v52  ;;  %2067 = vmatprep.mubr.bf16.mxu1 %v8458_v52 }
 0x77b   : > { %4836 = vmatmul.mubr.msk.bf16.gmra.mrb[60].mxu0 %vm319_vm2, %v5262_v18  ;;  %4846 = vmatmul.mubr.msk.bf16.gmra.mrb[60].mxu1 %vm319_vm2, %v5262_v18 }
 0x77c   : > { %1944 = vmatprep.mubr.bf16.mxu0 %v8458_v52  ;;  %2077 = vmatprep.mubr.bf16.mxu1 %v8458_v52 }
 0x783   : > { %4837 = vmatmul.mubr.msk.bf16.gmra.mrb[64].mxu0 %vm319_vm2, %v5263_v22  ;;  %4847 = vmatmul.mubr.msk.bf16.gmra.mrb[64].mxu1 %vm319_vm2, %v5263_v22 }
 0x784   : > { %1954 = vmatprep.mubr.bf16.mxu0 %v8458_v52  ;;  %2087 = vmatprep.mubr.bf16.mxu1 %v8458_v52 }
 0x78b   : > { %4838 = vmatmul.mubr.msk.bf16.gmra.mrb[68].mxu0 %vm319_vm2, %v5264_v0  ;;  %4848 = vmatmul.mubr.msk.bf16.gmra.mrb[68].mxu1 %vm319_vm2, %v5264_v0 }
 0x78c   : > { %1964 = vmatprep.mubr.bf16.mxu0 %v8458_v52  ;;  %2097 = vmatprep.mubr.bf16.mxu1 %v8458_v52 }
 0x793   : > { %4839 = vmatmul.mubr.msk.bf16.gmra.mrb[72].mxu0 %vm319_vm2, %v5265_v44  ;;  %4849 = vmatmul.mubr.msk.bf16.gmra.mrb[72].mxu1 %vm319_vm2, %v5265_v44 }
 0x794   : > { %1974 = vmatprep.mubr.bf16.mxu0 %v8458_v52  ;;  %2107 = vmatprep.mubr.bf16.mxu1 %v8458_v52 }
 0x79b   : > { %4840 = vmatmul.mubr.msk.bf16.gmra.mrb[76].mxu0 %vm319_vm2, %v5266_v55  ;;  %4850 = vmatmul.mubr.msk.bf16.gmra.mrb[76].mxu1 %vm319_vm2, %v5266_v55 }
 0x826   : > { %v1886_v21 = vpop.f32.mrb[40].mxu0  ;;  %v2019_v14 = vpop.f32.mrb[40].mxu1 }
 0x827   : > { %2146 = vrot.lane.b32.xlu1 %v1886_v21, %s5620_s5  ;;  %v1888_v33 = vpop.f32.mrb[41].mxu0  ;;  %v2021_v15 = vpop.f32.mrb[41].mxu1 }
 0x828   : > { %2148 = vrot.lane.b32.xlu0 %v1888_v33, %s5620_s5  ;;  %v1890_v23 = vpop.f32.mrb[42].mxu0  ;;  %v2023_v10 = vpop.f32.mrb[42].mxu1 }
 0x829   : > { %v1892_v2 = vpop.f32.mrb[43].mxu0  ;;  %v2025_v6 = vpop.f32.mrb[43].mxu1 }
 0x82b   : > { %2150 = vrot.lane.b32.xlu1 %v2019_v14, %s5620_s5 }
 0x82c   : > { %2152 = vrot.lane.b32.xlu0 %v1890_v23, %s5620_s5 }
 0x82e   : > { %v1896_v11 = vpop.f32.mrb[44].mxu0  ;;  %v2029_v31 = vpop.f32.mrb[44].mxu1 }
 0x82f   : > { %2122 = vrot.lane.b32.xlu1 %v2021_v15, %s5620_s5  ;;  %v1898_v53 = vpop.f32.mrb[45].mxu0  ;;  %v2031_v12 = vpop.f32.mrb[45].mxu1 }
 0x830   : > { %2156 = vrot.lane.b32.xlu0 %v2023_v10, %s5620_s5  ;;  %v1900_v17 = vpop.f32.mrb[46].mxu0  ;;  %v2033_v24 = vpop.f32.mrb[46].mxu1 }
 0x831   : > { %v1902_v3 = vpop.f32.mrb[47].mxu0  ;;  %v2035_v39 = vpop.f32.mrb[47].mxu1 }
 0x833   : > { %2154 = vrot.lane.b32.xlu1 %v1892_v2, %s5620_s5 }
 0x834   : > { %2124 = vrot.lane.b32.xlu0 %v2025_v6, %s5620_s5 }
 0x836   : > { %v1906_v19 = vpop.f32.mrb[48].mxu0  ;;  %v2039_v58 = vpop.f32.mrb[48].mxu1 }
 0x837   : > { %2158 = vrot.lane.b32.xlu1 %v1896_v11, %s5620_s5  ;;  %v1908_v8 = vpop.f32.mrb[49].mxu0  ;;  %v2041_v13 = vpop.f32.mrb[49].mxu1 }
 0x838   : > { %2160 = vrot.lane.b32.xlu0 %v1898_v53, %s5620_s5  ;;  %v1910_v20 = vpop.f32.mrb[50].mxu0  ;;  %v2043_v32 = vpop.f32.mrb[50].mxu1 }
 0x839   : > { %v1912_v29 = vpop.f32.mrb[51].mxu0  ;;  %v2045_v43 = vpop.f32.mrb[51].mxu1 }
 0x83b   : > { %2162 = vrot.lane.b32.xlu1 %v2029_v31, %s5620_s5 }
 0x83c   : > { %2164 = vrot.lane.b32.xlu0 %v1900_v17, %s5620_s5 }
 0x83e   : > { %v1916_v37 = vpop.f32.mrb[52].mxu0  ;;  %v2049_v4 = vpop.f32.mrb[52].mxu1 }
 0x83f   : > { %2126 = vrot.lane.b32.xlu1 %v2031_v12, %s5620_s5  ;;  %v1918_v35 = vpop.f32.mrb[53].mxu0  ;;  %v2051_v63 = vpop.f32.mrb[53].mxu1 }
 0x840   : > { %2168 = vrot.lane.b32.xlu0 %v2033_v24, %s5620_s5  ;;  %v1920_v16 = vpop.f32.mrb[54].mxu0  ;;  %v2053_v51 = vpop.f32.mrb[54].mxu1 }
 0x841   : > { %v1922_v48 = vpop.f32.mrb[55].mxu0  ;;  %v2055_v59 = vpop.f32.mrb[55].mxu1 }
 0x843   : > { %2166 = vrot.lane.b32.xlu1 %v1902_v3, %s5620_s5 }
 0x844   : > { %2128 = vrot.lane.b32.xlu0 %v2035_v39, %s5620_s5 }
 0x846   : > { %v6783_v25 = vpop.f32.mrb[56].mxu0  ;;  %v6785_v47 = vpop.f32.mrb[56].mxu1 }
 0x847   : > { %2230 = vrot.lane.b32.xlu1 %v1906_v19, %s5621_s22  ;;  %v6788_v57 = vpop.f32.mrb[57].mxu0  ;;  %v6790_v46 = vpop.f32.mrb[57].mxu1 }
 0x848   : > { %2232 = vrot.lane.b32.xlu0 %v1908_v8, %s5621_s22  ;;  %v6793_v27 = vpop.f32.mrb[58].mxu0  ;;  %v6795_v1 = vpop.f32.mrb[58].mxu1 }
 0x849   : > { %v6797_v62 = vpop.f32.mrb[59].mxu0  ;;  %v6799_v36 = vpop.f32.mrb[59].mxu1 }
 0x84b   : > { %2234 = vrot.lane.b32.xlu1 %v2039_v58, %s5621_s22 }
 0x84c   : > { %2236 = vrot.lane.b32.xlu0 %v1910_v20, %s5621_s22  ;;  %v6851_v20 = vpop.permute.xlu1 %2520 }
 0x84e   : > { %v6803_v9 = vpop.f32.mrb[60].mxu0  ;;  %v6805_v7 = vpop.f32.mrb[60].mxu1 }
 0x84f   : > { %2206 = vrot.lane.b32.xlu1 %v2041_v13, %s5621_s22  ;;  %v6808_v38 = vpop.f32.mrb[61].mxu0  ;;  %v6810_v5 = vpop.f32.mrb[61].mxu1 }
 0x850   : > { %2240 = vrot.lane.b32.xlu0 %v2043_v32, %s5621_s22  ;;  %v6813_v40 = vpop.f32.mrb[62].mxu0  ;;  %v6815_v54 = vpop.f32.mrb[62].mxu1 }
 0x851   : > { %v6817_v30 = vpop.f32.mrb[63].mxu0  ;;  %v6819_v56 = vpop.f32.mrb[63].mxu1 }
 0x852   : > { %v6854_v32 = vpop.permute.xlu0 %2525 }
 0x853   : > { %2238 = vrot.lane.b32.xlu1 %v1912_v29, %s5621_s22  ;;  %v6859_v29 = vpop.permute.xlu1 %2530 }
 0x854   : > { %2208 = vrot.lane.b32.xlu0 %v2045_v43, %s5621_s22 }
 0x856   : > { %v1946_v60 = vpop.f32.mrb[64].mxu0  ;;  %v2079_v26 = vpop.f32.mrb[64].mxu1 }
 0x857   : > { %2242 = vrot.lane.b32.xlu1 %v1916_v37, %s5621_s22  ;;  %v1948_v52 = vpop.f32.mrb[65].mxu0  ;;  %v2081_v61 = vpop.f32.mrb[65].mxu1 }
 0x858   : > { %2244 = vrot.lane.b32.xlu0 %v1918_v35, %s5621_s22  ;;  %v1950_v45 = vpop.f32.mrb[66].mxu0  ;;  %v2083_v28 = vpop.f32.mrb[66].mxu1 }
 0x859   : > { %v1952_v42 = vpop.f32.mrb[67].mxu0  ;;  %v2085_v18 = vpop.f32.mrb[67].mxu1 }
 0x85a   : > { %v6861_v43 = vpop.permute.xlu0 %2535 }
 0x85b   : > { %2246 = vrot.lane.b32.xlu1 %v2049_v4, %s5621_s22 }
 0x85c   : > { %2248 = vrot.lane.b32.xlu0 %v1920_v16, %s5621_s22 }
 0x85e   : > { %v1956_v22 = vpop.f32.mrb[68].mxu0  ;;  %v2089_v0 = vpop.f32.mrb[68].mxu1 }
 0x85f   : > { %2210 = vrot.lane.b32.xlu1 %v2051_v63, %s5621_s22  ;;  %v1958_v44 = vpop.f32.mrb[69].mxu0  ;;  %v2091_v55 = vpop.f32.mrb[69].mxu1 }
 0x860   : > { %2252 = vrot.lane.b32.xlu0 %v2053_v51, %s5621_s22  ;;  %v1960_v21 = vpop.f32.mrb[70].mxu0  ;;  %v2093_v14 = vpop.f32.mrb[70].mxu1 }
 0x861   : > { %v1962_v33 = vpop.f32.mrb[71].mxu0  ;;  %v2095_v15 = vpop.f32.mrb[71].mxu1 }
 0x863   : > { %2250 = vrot.lane.b32.xlu1 %v1922_v48, %s5621_s22 }
 0x864   : > { %2212 = vrot.lane.b32.xlu0 %v2055_v59, %s5621_s22 }
 0x866   : > { %v1966_v23 = vpop.f32.mrb[72].mxu0  ;;  %v2099_v10 = vpop.f32.mrb[72].mxu1 }
 0x867   : > { %2334 = vrot.lane.b32.xlu1 %v1946_v60, %s5622_s1  ;;  %v1968_v2 = vpop.f32.mrb[73].mxu0  ;;  %v2101_v6 = vpop.f32.mrb[73].mxu1 }
 0x868   : > { %2336 = vrot.lane.b32.xlu0 %v1948_v52, %s5622_s1  ;;  %v1970_v11 = vpop.f32.mrb[74].mxu0  ;;  %v2103_v31 = vpop.f32.mrb[74].mxu1 }
 0x869   : > { %v1972_v53 = vpop.f32.mrb[75].mxu0  ;;  %v2105_v12 = vpop.f32.mrb[75].mxu1 }
 0x86b   : > { %2338 = vrot.lane.b32.xlu1 %v2079_v26, %s5622_s1 }
 0x86c   : > { %2340 = vrot.lane.b32.xlu0 %v2081_v61, %s5622_s1 }
 0x86e   : > { %v1976_v17 = vpop.f32.mrb[76].mxu0  ;;  %v2109_v24 = vpop.f32.mrb[76].mxu1 }
 0x86f   : > { %2342 = vrot.lane.b32.xlu1 %v1950_v45, %s5622_s1  ;;  %v1978_v3 = vpop.f32.mrb[77].mxu0  ;;  %v2111_v39 = vpop.f32.mrb[77].mxu1 }
 0x870   : > { %2344 = vrot.lane.b32.xlu0 %v1952_v42, %s5622_s1  ;;  %v1980_v19 = vpop.f32.mrb[78].mxu0  ;;  %v2113_v58 = vpop.f32.mrb[78].mxu1 }
 0x871   : > { %v1982_v8 = vpop.f32.mrb[79].mxu0  ;;  %v2115_v13 = vpop.f32.mrb[79].mxu1 }
 0x873   : > { %2346 = vrot.lane.b32.xlu1 %v2083_v28, %s5622_s1 }
 0x874   : > { %2348 = vrot.lane.b32.xlu0 %v2085_v18, %s5622_s1 }
 0x877   : > { %2350 = vrot.lane.b32.xlu1 %v1956_v22, %s5622_s1 }
 0x878   : > { %2352 = vrot.lane.b32.xlu0 %v1958_v44, %s5622_s1 }
 0x87b   : > { %2354 = vrot.lane.b32.xlu1 %v2089_v0, %s5622_s1 }
 0x87c   : > { %2356 = vrot.lane.b32.xlu0 %v2091_v55, %s5622_s1 }
 0x87f   : > { %2358 = vrot.lane.b32.xlu1 %v1960_v21, %s5622_s1 }
 0x880   : > { %2360 = vrot.lane.b32.xlu0 %v1962_v33, %s5622_s1 }
 0x883   : > { %2362 = vrot.lane.b32.xlu1 %v2093_v14, %s5622_s1 }
 0x884   : > { %2364 = vrot.lane.b32.xlu0 %v2095_v15, %s5622_s1 }
 0x887   : > { %2434 = vrot.lane.b32.xlu1 %v1966_v23, %s5623_s2 }
 0x888   : > { %2436 = vrot.lane.b32.xlu0 %v1968_v2, %s5623_s2 }
 0x88b   : > { %2438 = vrot.lane.b32.xlu1 %v2099_v10, %s5623_s2 }
 0x88c   : > { %2440 = vrot.lane.b32.xlu0 %v2101_v6, %s5623_s2 }
 0x88f   : > { %2442 = vrot.lane.b32.xlu1 %v1970_v11, %s5623_s2 }
 0x890   : > { %2444 = vrot.lane.b32.xlu0 %v1972_v53, %s5623_s2 }
 0x893   : > { %2446 = vrot.lane.b32.xlu1 %v2103_v31, %s5623_s2 }
 0x894   : > { %2448 = vrot.lane.b32.xlu0 %v2105_v12, %s5623_s2 }
 0x897   : > { %2450 = vrot.lane.b32.xlu1 %v1976_v17, %s5623_s2 }
 0x898   : > { %2452 = vrot.lane.b32.xlu0 %v1978_v3, %s5623_s2 }
 0x899   : > { %v2147_v37 = vpop.permute.xlu1 %2146 }
 0x89a   : > { %v2149_v4 = vpop.permute.xlu0 %2148 }
 0x89b   : > { %v2170_v35 = vsel %vm1124_vm3, %v2147_v37, %v2149_v4  ;;  %2454 = vrot.lane.b32.xlu1 %v2109_v24, %s5623_s2 }
 0x89c   : > { %2456 = vrot.lane.b32.xlu0 %v2111_v39, %s5623_s2 }
 0x89d   : > { %v2151_v63 = vpop.permute.xlu1 %2150 }
 0x89e   : > { %v2171_v16 = vsel %vm1124_vm3, %v2149_v4, %v2151_v63  ;;  %v2153_v51 = vpop.permute.xlu0 %2152 }
 0x89f   : > { %2458 = vrot.lane.b32.xlu1 %v1980_v19, %s5623_s2 }
 0x8a0   : > { %2460 = vrot.lane.b32.xlu0 %v1982_v8, %s5623_s2 }
 0x8a1   : > { %v2123_v48 = vpop.permute.xlu1 %2122 }
 0x8a2   : > { %v2172_v59 = vsel %vm1124_vm3, %v2151_v63, %v2123_v48  ;;  %v2198_v60 = vsel %vm1124_vm3, %v2123_v48, %v2147_v37  ;;  %v2157_v26 = vpop.permute.xlu0 %2156 }
 0x8a3   : > { %2462 = vrot.lane.b32.xlu1 %v2113_v58, %s5623_s2 }
 0x8a4   : > { %2464 = vrot.lane.b32.xlu0 %v2115_v13, %s5623_s2 }
 0x8a5   : > { %v2155_v52 = vpop.permute.xlu1 %2154 }
 0x8a6   : > { %v2173_v61 = vsel %vm1124_vm3, %v2153_v51, %v2155_v52  ;;  %v2174_v45 = vsel %vm1124_vm3, %v2155_v52, %v2157_v26  ;;  %v2125_v28 = vpop.permute.xlu0 %2124 }
 0x8a7   : > { %v2175_v42 = vsel %vm1124_vm3, %v2157_v26, %v2125_v28  ;;  %v2199_v18 = vsel %vm1124_vm3, %v2125_v28, %v2153_v51 }
 0x8a9   : > { %v2159_v22 = vpop.permute.xlu1 %2158 }
 0x8aa   : > { %v2161_v0 = vpop.permute.xlu0 %2160 }
 0x8ab   : > { %v2176_v44 = vsel %vm1124_vm3, %v2159_v22, %v2161_v0 }
 0x8ad   : > { %v2163_v55 = vpop.permute.xlu1 %2162 }
 0x8ae   : > { %v2177_v21 = vsel %vm1124_vm3, %v2161_v0, %v2163_v55  ;;  %v2165_v14 = vpop.permute.xlu0 %2164 }
 0x8b1   : > { %v2127_v33 = vpop.permute.xlu1 %2126 }
 0x8b2   : > { %v2178_v15 = vsel %vm1124_vm3, %v2163_v55, %v2127_v33  ;;  %v2200_v23 = vsel %vm1124_vm3, %v2127_v33, %v2159_v22  ;;  %v2169_v10 = vpop.permute.xlu0 %2168 }
 0x8b5   : > { %v2167_v2 = vpop.permute.xlu1 %2166 }
 0x8b6   : > { %v2179_v6 = vsel %vm1124_vm3, %v2165_v14, %v2167_v2  ;;  %v2180_v11 = vsel %vm1124_vm3, %v2167_v2, %v2169_v10  ;;  %v2129_v31 = vpop.permute.xlu0 %2128 }
 0x8b7   : > { %v2181_v53 = vsel %vm1124_vm3, %v2169_v10, %v2129_v31  ;;  %v2201_v12 = vsel %vm1124_vm3, %v2129_v31, %v2165_v14 }
 0x8b9   : > { %v2231_v17 = vpop.permute.xlu1 %2230 }
 0x8ba   : > { %v2233_v24 = vpop.permute.xlu0 %2232 }
 0x8bb   : > { %v2254_v3 = vsel %vm1209_vm4, %v2231_v17, %v2233_v24 }
 0x8bc   : > { %v2287_v39 = vadd.f32 %v2254_v3, %v2170_v35 }
 0x8bd   : > { %v2235_v19 = vpop.permute.xlu1 %2234 }
 0x8be   : > { %v2255_v58 = vsel %vm1209_vm4, %v2233_v24, %v2235_v19  ;;  %v2237_v8 = vpop.permute.xlu0 %2236  ;;  %v6890_v13 = vadd.f32 %v2287_v39, %v6788_v57 }
 0x8bf   : > { %v2288_v37 = vadd.f32 %v2255_v58, %v2171_v16 }
 0x8c1   : > { %v2207_v4 = vpop.permute.xlu1 %2206  ;;  %v6893_v63 = vadd.f32 %v2288_v37, %v6785_v47 }
 0x8c2   : > { %v2256_v51 = vsel %vm1209_vm4, %v2235_v19, %v2207_v4  ;;  %v2282_v48 = vsel %vm1209_vm4, %v2207_v4, %v2231_v17  ;;  %v2241_v26 = vpop.permute.xlu0 %2240 }
 0x8c3   : > { %v2286_v52 = vadd.f32 %v2282_v48, %v2198_v60  ;;  %v2289_v28 = vadd.f32 %v2256_v51, %v2172_v59 }
 0x8c5   : > { %v2239_v35 = vpop.permute.xlu1 %2238  ;;  %v6898_v22 = vadd.f32 %v2286_v52, %v6783_v25  ;;  %v6901_v0 = vadd.f32 %v2289_v28, %v6790_v46 }
 0x8c6   : > { %v2257_v57 = vsel %vm1209_vm4, %v2237_v8, %v2239_v35  ;;  %v2258_v16 = vsel %vm1209_vm4, %v2239_v35, %v2241_v26  ;;  %v2209_v47 = vpop.permute.xlu0 %2208 }
 0x8c7   : > { %v2291_v55 = vadd.f32 %v2257_v57, %v2173_v61  ;;  %v2292_v14 = vadd.f32 %v2258_v16, %v2174_v45  ;;  %v2259_v33 = vsel %vm1209_vm4, %v2241_v26, %v2209_v47  ;;  %v2283_v10 = vsel %vm1209_vm4, %v2209_v47, %v2237_v8 }
 0x8c8   : > { %v2290_v60 = vadd.f32 %v2283_v10, %v2199_v18  ;;  %v2293_v59 = vadd.f32 %v2259_v33, %v2175_v42 }
 0x8c9   : > { %v2243_v2 = vpop.permute.xlu1 %2242  ;;  %v6908_v25 = vadd.f32 %v2291_v55, %v6797_v62  ;;  %v6911_v46 = vadd.f32 %v2292_v14, %v6795_v1 }
 0x8ca   : > { %v2245_v31 = vpop.permute.xlu0 %2244  ;;  %v6914_v17 = vadd.f32 %v2290_v60, %v6793_v27  ;;  %v6917_v61 = vadd.f32 %v2293_v59, %v6799_v36 }
 0x8cb   : > { %v2260_v45 = vsel %vm1209_vm4, %v2243_v2, %v2245_v31 }
 0x8cc   : > { %v2295_v24 = vadd.f32 %v2260_v45, %v2176_v44 }
 0x8cd   : > { %v2247_v3 = vpop.permute.xlu1 %2246 }
 0x8ce   : > { %v2261_v42 = vsel %vm1209_vm4, %v2245_v31, %v2247_v3  ;;  %v2249_v18 = vpop.permute.xlu0 %2248  ;;  %v6922_v62 = vadd.f32 %v2295_v24, %v6808_v38 }
 0x8cf   : > { %v2296_v39 = vadd.f32 %v2261_v42, %v2177_v21 }
 0x8d1   : > { %v2211_v1 = vpop.permute.xlu1 %2210  ;;  %v6925_v19 = vadd.f32 %v2296_v39, %v6805_v7 }
 0x8d2   : > { %v2262_v27 = vsel %vm1209_vm4, %v2247_v3, %v2211_v1  ;;  %v2284_v36 = vsel %vm1209_vm4, %v2211_v1, %v2243_v2  ;;  %v2253_v58 = vpop.permute.xlu0 %2252 }
 0x8d3   : > { %v2294_v8 = vadd.f32 %v2284_v36, %v2200_v23  ;;  %v2297_v37 = vadd.f32 %v2262_v27, %v2178_v15 }
 0x8d5   : > { %v2251_v44 = vpop.permute.xlu1 %2250  ;;  %v6930_v4 = vadd.f32 %v2294_v8, %v6803_v9  ;;  %v6933_v51 = vadd.f32 %v2297_v37, %v6810_v5 }
 0x8d6   : > { %v2263_v38 = vsel %vm1209_vm4, %v2249_v18, %v2251_v44  ;;  %v2264_v21 = vsel %vm1209_vm4, %v2251_v44, %v2253_v58  ;;  %v2213_v7 = vpop.permute.xlu0 %2212 }
 0x8d7   : > { %v2299_v48 = vadd.f32 %v2263_v38, %v2179_v6  ;;  %v2300_v26 = vadd.f32 %v2264_v21, %v2180_v11  ;;  %v2265_v52 = vsel %vm1209_vm4, %v2253_v58, %v2213_v7  ;;  %v2285_v28 = vsel %vm1209_vm4, %v2213_v7, %v2249_v18 }
 0x8d8   : > { %v2298_v23 = vadd.f32 %v2285_v28, %v2201_v12  ;;  %v2301_v15 = vadd.f32 %v2265_v52, %v2181_v53 }
 0x8d9   : > { %v2335_v35 = vpop.permute.xlu1 %2334  ;;  %v6940_v9 = vadd.f32 %v2299_v48, %v6817_v30  ;;  %v6943_v5 = vadd.f32 %v2300_v26, %v6815_v54 }
 0x8da   : > { %v2337_v57 = vpop.permute.xlu0 %2336  ;;  %v6946_v16 = vadd.f32 %v2298_v23, %v6813_v40  ;;  %v6949_v6 = vadd.f32 %v2301_v15, %v6819_v56 }
 0x8db   : > { %v2366_v2 = vsel %vm1322_vm5, %v2335_v35, %v2337_v57 }
 0x8dc   : > { %v2402_v45 = vadd.f32 %v2366_v2, %v6898_v22 }
 0x8dd   : > { %v2339_v11 = vpop.permute.xlu1 %2338 }
 0x8de   : > { %v2341_v47 = vpop.permute.xlu0 %2340  ;;  %v2367_v24 = vsel %vm1322_vm5, %v2337_v57, %v2339_v11  ;;  %v8459_v57 = vld [vmem:[#allocation40_spill] sm:$0xff] }
 0x8df   : > { %v2368_v3 = vsel %vm1322_vm5, %v2339_v11, %v2341_v47  ;;  %v2398_v18 = vsel %vm1322_vm5, %v2341_v47, %v2335_v35  ;;  %v2403_v27 = vadd.f32 %v2367_v24, %v6890_v13 }
 0x8e0   : > { %v2404_v36 = vadd.f32 %v2368_v3, %v6893_v63  ;;  %v2405_v8 = vadd.f32 %v2398_v18, %v6901_v0 }
 0x8e1   : > { %v2343_v55 = vpop.permute.xlu1 %2342 }
 0x8e2   : > { %v2345_v14 = vpop.permute.xlu0 %2344 }
 0x8e3   : > { %v2369_v37 = vsel %vm1322_vm5, %v2343_v55, %v2345_v14 }
 0x8e4   : > { %v2406_v63 = vadd.f32 %v2369_v37, %v6914_v17 }
 0x8e5   : > { %v2347_v12 = vpop.permute.xlu1 %2346 }
 0x8e6   : > { %v2349_v53 = vpop.permute.xlu0 %2348  ;;  %v2370_v0 = vsel %vm1322_vm5, %v2345_v14, %v2347_v12 }
 0x8e7   : > { %v2371_v28 = vsel %vm1322_vm5, %v2347_v12, %v2349_v53  ;;  %v2399_v35 = vsel %vm1322_vm5, %v2349_v53, %v2343_v55  ;;  %v2407_v14 = vadd.f32 %v2370_v0, %v6908_v25  ;;  %v8465_v25 = vld [vmem:[#allocation37_spill] sm:$0xff] }
 0x8e8   : > { %v2408_v55 = vadd.f32 %v2371_v28, %v6911_v46  ;;  %v8467_v28 = vld [vmem:[#allocation36_spill] sm:$0xff] }
 0x8e9   : > { %v6951_v33 = vpop.permute.xlu1 %2350 }
 0x8ea   : > { %v6953_v30 = vpop.permute.xlu0 %2352 }
 0x8ed   : > { %v6955_v10 = vpop.permute.xlu1 %2354 }
 0x8ee   : > { %v6957_v54 = vpop.permute.xlu0 %2356 }
 0x8ef   : > { %v2400_v0 = vsel %vm1322_vm5, %v6957_v54, %v6951_v33 }
 0x8f1   : > { %v6959_v60 = vpop.permute.xlu1 %2358 }
 0x8f2   : > { %v6961_v40 = vpop.permute.xlu0 %2360 }
 0x8f5   : > { %v6963_v56 = vpop.permute.xlu1 %2362 }
 0x8f6   : > { %v6965_v59 = vpop.permute.xlu0 %2364 }
 0x8f9   : > { %v2435_v31 = vpop.permute.xlu1 %2434 }
 0x8fa   : > { %v2437_v42 = vpop.permute.xlu0 %2436 }
 0x8fb   : > { %v2466_v39 = vsel %vm1423_vm6, %v2435_v31, %v2437_v42 }
 0x8fc   : > { %v2502_v1 = vadd.f32 %v2466_v39, %v2402_v45 }
 0x8fd   : > { %v2439_v58 = vpop.permute.xlu1 %2438 }
 0x8fe   : > { %v2538_v22 = vadd.f32 %v6851_v20, %v2502_v1  ;;  %v2467_v44 = vsel %vm1423_vm6, %v2437_v42, %v2439_v58  ;;  %v2441_v38 = vpop.permute.xlu0 %2440  ;;  %v8461_v42 = vld [vmem:[#allocation39_spill] sm:$0xff]  ;;  %v8463_v1 = vld [vmem:[#allocation38_spill] sm:$0xff] }
 0x8ff   : > { %v2503_v21 = vadd.f32 %v2467_v44, %v2403_v27  ;;  %v2468_v7 = vsel %vm1423_vm6, %v2439_v58, %v2441_v38  ;;  %v2498_v48 = vsel %vm1423_vm6, %v2441_v38, %v2435_v31 }
 0x900   : > { %v2554_v26 = vmul.f32 %v2538_v22, %v8439_v50  ;;  %v2504_v13 = vadd.f32 %v2468_v7, %v2404_v36  ;;  %v2505_v52 = vadd.f32 %v2498_v48, %v2405_v8 }
 0x901   : > { %v2539_v23 = vadd.f32 %v6851_v20, %v2503_v21  ;;  %v2443_v15 = vpop.permute.xlu1 %2442 }
 0x902   : > { %v6988_v53 = vadd.f32 %v8459_v57, %v2554_v26   ;;  %v2540_v47 = vadd.f32 %v6851_v20, %v2504_v13  ;;  %v2541_v2 = vadd.f32 %v6851_v20, %v2505_v52  ;;  %v2445_v31 = vpop.permute.xlu0 %2444  ;;  %v2372_v20 = vsel %vm1322_vm5, %v6951_v33, %v6953_v30 }
 0x903   : > { %v2555_v45 = vmul.f32 %v2539_v23, %v5767_v41  ;;  %v2469_v17 = vsel %vm1423_vm6, %v2443_v15, %v2445_v31  ;;  %v2410_v26 = vadd.f32 %v2372_v20, %v6930_v4  ;;  %v2374_v13 = vsel %vm1322_vm5, %v6955_v10, %v6957_v54 }
 0x904   : > { %v8460_v11 = vmov %v6988_v53  ;;  %v2556_v12 = vmul.f32 %v2540_v47, %v8440_v49  ;;  %v2557_v24 = vmul.f32 %v2541_v2, %v8442_v34  ;;  %v2506_v3 = vadd.f32 %v2469_v17, %v2406_v63 }
 0x905   : > { %v2409_v53 = vadd.f32 %v2399_v35, %v6917_v61  ;;  %v7003_v57 = vadd.f32 %v8461_v42, %v2555_v45   ;;  %v2447_v39 = vpop.permute.xlu1 %2446  ;;  %v2412_v33 = vadd.f32 %v2374_v13, %v6925_v19  ;;  %v2413_v54 = vadd.f32 %v2400_v0, %v6933_v51  ;;  %v8469_v45 = vld [vmem:[#allocation35_spill] sm:$0xff] }
 0x906   : > { %v7006_v27 = vadd.f32 %v8463_v1, %v2556_v12   ;;  %v7009_v58 = vadd.f32 %v8465_v25, %v2557_v24   ;;  %v2542_v37 = vadd.f32 %v6854_v32, %v2506_v3  ;;  %v2470_v46 = vsel %vm1423_vm6, %v2445_v31, %v2447_v39  ;;  %v2449_v22 = vpop.permute.xlu0 %2448  ;;  %v8470_v12 = vld [vmem:[#allocation34_spill] sm:$0xff]  ;;  %v8472_v3 = vld [vmem:[#allocation33_spill] sm:$0xff] }
 0x907   : > { %v8462_v18 = vmov %v7003_v57  ;;  %v2507_v61 = vadd.f32 %v2470_v46, %v2407_v14  ;;  %v2471_v44 = vsel %vm1423_vm6, %v2447_v39, %v2449_v22  ;;  %v2499_v38 = vsel %vm1423_vm6, %v2449_v22, %v2443_v15 }
 0x908   : > { %v8464_v36 = vmov %v7006_v27  ;;  %v8466_v8 = vmov %v7009_v58  ;;  %v2558_v21 = vmul.f32 %v2542_v37, %v8439_v50  ;;  %v2508_v7 = vadd.f32 %v2471_v44, %v2408_v55 }
 0x909   : > { %v2509_v48 = vadd.f32 %v2499_v38, %v2409_v53  ;;  %v2373_v58 = vsel %vm1322_vm5, %v6953_v30, %v6955_v10  ;;  %v2543_v52 = vadd.f32 %v6854_v32, %v2507_v61  ;;  %v2451_v63 = vpop.permute.xlu1 %2450  ;;  %v2376_v22 = vsel %vm1322_vm5, %v6961_v40, %v6963_v56 }
 0x90a   : > { %v7028_v55 = vadd.f32 %v8467_v28, %v2558_v21   ;;  %v2544_v4 = vadd.f32 %v6854_v32, %v2508_v7  ;;  %v2453_v35 = vpop.permute.xlu0 %2452  ;;  %v2411_v10 = vadd.f32 %v2373_v58, %v6922_v62  ;;  %v2377_v61 = vsel %vm1322_vm5, %v6963_v56, %v6965_v59  ;;  %v8474_v7 = vld [vmem:[#allocation32_spill] sm:$0xff]  ;;  %v8476_v28 = vld [vmem:[#allocation31_spill] sm:$0xff] }
 0x90b   : > { %v2545_v23 = vadd.f32 %v6854_v32, %v2509_v48  ;;  %v2559_v30 = vmul.f32 %v2543_v52, %v5767_v41  ;;  %v2472_v57 = vsel %vm1423_vm6, %v2451_v63, %v2453_v35  ;;  %v2375_v32 = vsel %vm1322_vm5, %v6959_v60, %v6961_v40 }
 0x90c   : > { %v8468_v15 = vmov %v7028_v55  ;;  %v2560_v47 = vmul.f32 %v2544_v4, %v8440_v49  ;;  %v2510_v31 = vadd.f32 %v2472_v57, %v2410_v26  ;;  %v2414_v46 = vadd.f32 %v2375_v32, %v6946_v16 }
 0x90d   : > { %v2561_v2 = vmul.f32 %v2545_v23, %v8442_v34  ;;  %v7043_v17 = vadd.f32 %v8469_v45, %v2559_v30   ;;  %v2455_v14 = vpop.permute.xlu1 %2454  ;;  %v2401_v21 = vsel %vm1322_vm5, %v6965_v59, %v6959_v60  ;;  %v2415_v0 = vadd.f32 %v2376_v22, %v6940_v9  ;;  %v8478_v23 = vld [vmem:[#allocation30_spill] sm:$0xff]  ;;  %v8480_v30 = vld [vmem:[#allocation29_spill] sm:$0xff]  ;;  %v8482_v45 = vld [vmem:[#allocation28_spill] sm:$0xff] }
 0x90e   : > { %v7046_v24 = vadd.f32 %v8470_v12, %v2560_v47   ;;  %v2546_v53 = vadd.f32 %v6859_v29, %v2510_v31  ;;  %v2473_v19 = vsel %vm1423_vm6, %v2453_v35, %v2455_v14  ;;  %v2457_v20 = vpop.permute.xlu0 %2456  ;;  %v2416_v60 = vadd.f32 %v2377_v61, %v6943_v5 }
 0x90f   : > { %v7049_v55 = vadd.f32 %v8472_v3, %v2561_v2   ;;  %v2511_v51 = vadd.f32 %v2473_v19, %v2411_v10  ;;  %v2474_v39 = vsel %vm1423_vm6, %v2455_v14, %v2457_v20  ;;  %v2500_v1 = vsel %vm1423_vm6, %v2457_v20, %v2451_v63  ;;  %v8484_v19 = vld [vmem:[#allocation27_spill] sm:$0xff] }
 0x910   : > { %v8471_v62 = vmov %v7046_v24  ;;  %v2562_v27 = vmul.f32 %v2546_v53, %v8439_v50  ;;  %v2512_v25 = vadd.f32 %v2474_v39, %v2412_v33  ;;  %v2513_v37 = vadd.f32 %v2500_v1, %v2413_v54  ;;  %v8488_v39 = vld [vmem:[#allocation25_spill] sm:$0xff] }
 0x911   : > { %v8473_v42 = vmov %v7049_v55  ;;  %v2547_v44 = vadd.f32 %v6859_v29, %v2511_v51  ;;  %v2459_v38 = vpop.permute.xlu1 %2458  ;;  %v2417_v59 = vadd.f32 %v2401_v21, %v6949_v6 }
 0x912   : > { %v7068_v20 = vadd.f32 %v8474_v7, %v2562_v27   ;;  %v2548_v16 = vadd.f32 %v6859_v29, %v2512_v25  ;;  %v2549_v26 = vadd.f32 %v6859_v29, %v2513_v37  ;;  %v2461_v58 = vpop.permute.xlu0 %2460  ;;  %v2592_v37 = vpack.c.bf16 (%p7112_p0), %v8471_v62, %v8464_v36  ;;  %v2737_v7 = vld [vmem:[%s8321_s10 + $0x8] sm:$0xff] (%p7112_p0) }
 0x913   : > { %v2563_v40 = vmul.f32 %v2547_v44, %v5767_v41  ;;  %v2475_v13 = vsel %vm1423_vm6, %v2459_v38, %v2461_v58 }
 0x914   : > { %v8475_v48 = vmov %v7068_v20  ;;  %v2564_v56 = vmul.f32 %v2548_v16, %v8440_v49  ;;  %v2565_v52 = vmul.f32 %v2549_v26, %v8442_v34  ;;  %v2514_v63 = vadd.f32 %v2475_v13, %v2414_v46  ;;  %v8486_v20 = vld [vmem:[#allocation26_spill] sm:$0xff]  ;;  %v2739_v16 = vld [vmem:[%s8321_s10 + $0x18] sm:$0xff] (%p7112_p0) }
 0x915   : > { %v7080_v24 = vadd.f32 %v8476_v28, %v2563_v40   ;;  %v2463_v29 = vpop.permute.xlu1 %2462  ;;  %v8507_v46 = vmov (%p7112_p0), 0  }
 0x916   : > { %v7083_v21 = vadd.f32 %v8478_v23, %v2564_v56   ;;  %v7086_v25 = vadd.f32 %v8480_v30, %v2565_v52   ;;  %v2550_v57 = vadd.f32 %v6861_v43, %v2514_v63  ;;  %v2476_v47 = vsel %vm1423_vm6, %v2461_v58, %v2463_v29  ;;  %v2465_v2 = vpop.permute.xlu0 %2464  ;;  %2646 = vmatprep.mubr.bf16.mxu0 (%p7112_p0), %v8507_v46  ;;  %v8508_v52 = vld [vmem:[#allocation9_spill] sm:$0xff] (%p7112_p0)  ;;  %v8511_v30 = vld [vmem:[#allocation12_spill] sm:$0xff] (%p7112_p0) }
 0x917   : > { %v8477_v4 = vmov %v7080_v24  ;;  %v2515_v9 = vadd.f32 %v2476_v47, %v2415_v0  ;;  %v2477_v5 = vsel %vm1423_vm6, %v2463_v29, %v2465_v2  ;;  %v2501_v6 = vsel %vm1423_vm6, %v2465_v2, %v2459_v38  ;;  %2699 = vmatprep.mubr.bf16.mxu1 (%p7112_p0), %v8507_v46  ;;  %v2738_v38 = vld [vmem:[%s8321_s10 + $0x10] sm:$0xff] (%p7112_p0)  ;;  %5283 = vset.pattern.permute.xlu0 (%p7112_p0), %v8507_v46  ;;  %v8510_v29 = vld [vmem:[#allocation11_spill] sm:$0xff] (%p7112_p0) }
 0x918   : > { %v8479_v35 = vmov %v7083_v21  ;;  %v8481_v10 = vmov %v7086_v25  ;;  %v2566_v31 = vmul.f32 %v2550_v57, %v8439_v50  ;;  %v2516_v33 = vadd.f32 %v2477_v5, %v2416_v60  ;;  %5284 = vset.pattern.permute.xlu1 (%p7112_p0), %v8507_v46  ;;  %v8509_v0 = vld [vmem:[#allocation10_spill] sm:$0xff] (%p7112_p0) }
 0x919   : > { %v2517_v54 = vadd.f32 %v2501_v6, %v2417_v59  ;;  %v2551_v32 = vadd.f32 %v6861_v43, %v2515_v9  ;;  %v8495_v25 = vmov %v8481_v10  ;;  %v8496_v21 = vmov %v8479_v35  ;;  %2752 = vperm.xlu1 (%p7112_p0), %5284, %v2738_v38   ;;  %v8514_v6 = vld [vmem:[#allocation13_spill] sm:$0xff] (%p7112_p0) }
 0x91a   : > { %v7095_v22 = vadd.f32 %v8482_v45, %v2566_v31   ;;  %v2552_v12 = vadd.f32 %v6861_v43, %v2516_v33  ;;  %v8499_v60 = vmov %v8473_v42  ;;  %v8500_v56 = vmov %v8471_v62  ;;  %v5285_v21 = vld [vmem:[%s8320_s9] sm:$0xff] (%p7112_p0)   ;;  %v8515_v33 = vld [vmem:[#allocation14_spill] sm:$0xff] (%p7112_p0) }
 0x91b   : > { %v2553_v24 = vadd.f32 %v6861_v43, %v2517_v54  ;;  %v2567_v3 = vmul.f32 %v2551_v32, %v5767_v41  ;;  %v8501_v59 = vmov %v7043_v17  ;;  %v8503_v58 = vmov %v8466_v8 }
 0x91c   : > { %v8483_v14 = vmov %v7095_v22  ;;  %v2568_v55 = vmul.f32 %v2552_v12, %v8440_v49  ;;  %v8504_v54 = vmov %v8464_v36  ;;  %v8505_v57 = vmov %v8462_v18  ;;  %436 = sbr.rel (!%p7112_p0) target bundleno = 474 (0x1da), region = 106 }
 0x91d   : > { %v2569_v53 = vmul.f32 %v2553_v24, %v8442_v34  ;;  %v7103_v26 = vadd.f32 %v8484_v19, %v2567_v3   ;;  %v8494_v22 = vmov %v8483_v14  ;;  %v8497_v24 = vmov %v8477_v4  ;;  %2757 = vperm.xlu1 (%p7112_p0), %5284, %v2739_v16   ;;  %v8518_v3 = vld [vmem:[#allocation15_spill] sm:$0xff] (%p7112_p0)  ;;  %v8527_v16 = vld [vmem:[#allocation20_spill] sm:$0xff] (%p7112_p0) }
 0x91e   : > { %v7106_v23 = vadd.f32 %v8486_v20, %v2568_v55   ;;  %v8498_v20 = vmov %v8475_v48  ;;  %v8502_v55 = vmov %v8468_v15  ;;  %v2591_v49 = vpack.c.bf16 (%p7112_p0), %v7043_v17, %v8462_v18  ;;  %v2736_v22 = vld [vmem:[%s8321_s10] sm:$0xff] (%p7112_p0) }
 0x91f   : > { %v8485_v50 = vmov %v7103_v26  ;;  %v7109_v27 = vadd.f32 %v8488_v39, %v2569_v53   ;;  %v8506_v53 = vmov %v8460_v11  ;;  %v2593_v34 = vpack.c.bf16 (%p7112_p0), %v8473_v42, %v8466_v8  ;;  %2742 = vperm.xlu0 (%p7112_p0), %5283, %v2736_v22  }
 0x920   : > { %v8487_v51 = vmov %v7106_v23  ;;  %v8493_v26 = vmov %v8485_v50  ;;  %v2590_v43 = vpack.c.bf16 (%p7112_p0), %v8468_v15, %v8460_v11  ;;  %v2595_v61 = vpack.c.bf16 (%p7112_p0), %v8485_v50, %v8477_v4  ;;  %2614 = vmatprep.subr.bf16.mxu0 (%p7112_p0), %v2591_v49  ;;  %v8519_v53 = vld [vmem:[#allocation16_spill] sm:$0xff] (%p7112_p0) }
 0x921   : > { %v8489_v1 = vmov %v7109_v27  ;;  %v8492_v23 = vmov %v8487_v51  ;;  %2667 = vmatprep.subr.bf16.mxu1 (%p7112_p0), %v2593_v34  ;;  %v2596_v25 = vpack.c.bf16 (%p7112_p0), %v8487_v51, %v8479_v35  ;;  %v5286_v26 = vld [vmem:[%s8320_s9 + $0x8] sm:$0xff] (%p7112_p0)  }
 0x922   : > { %v8491_v27 = vmov %v8489_v1  ;;  %v2597_v44 = vpack.c.bf16 (%p7112_p0), %v8489_v1, %v8481_v10  ;;  %2615 = vmatpush1.bf16.msra.mxu0 (%p7112_p0), %v2590_v43  ;;  %2668 = vmatpush1.bf16.msra.mxu1 (%p7112_p0), %v2592_v37 }
 0x923   :  { %v2594_v27 = vpack.c.bf16 %v8483_v14, %v8475_v48  ;;  %2616 = vmatprep.subr.bf16.mxu0 %v2595_v61  ;;  %2747 = vperm.xlu0 %5283, %v2737_v7   ;;  %v8524_v61 = vld [vmem:[#allocation17_spill] sm:$0xff] }
 0x924   :  { %2669 = vmatprep.subr.bf16.mxu1 %v2597_v44 }
 0x926   :  { %2617 = vmatpush1.bf16.msra.mxu0 %v2594_v27  ;;  %2670 = vmatpush1.bf16.msra.mxu1 %v2596_v25  ;;  %v8525_v27 = vld [vmem:[#allocation18_spill] sm:$0xff] }
 0x929   :  { %4853 = vmatmul.mubr.msk.bf16.vlgmr.msra.gmra.mrb[0].mxu0 %vm319_vm2, %v5285_v21  ;;  %4855 = vmatmul.mubr.msk.bf16.vlgmr.msra.gmra.mrb[0].mxu1 %vm319_vm2, %v5285_v21  ;;  %v8526_v21 = vld [vmem:[#allocation19_spill] sm:$0xff] }
 0x92a   :  { %2656 = vmatprep.mubr.bf16.mxu0 %v8507_v46  ;;  %2709 = vmatprep.mubr.bf16.mxu1 %v8507_v46 }
 0x931   :  { %4854 = vmatmul.mubr.msk.bf16.gmra.mrb[4].mxu0 %vm319_vm2, %v5286_v26  ;;  %4856 = vmatmul.mubr.msk.bf16.gmra.mrb[4].mxu1 %vm319_vm2, %v5286_v26 }
 0x998   :  { %v2753_v43 = vpop.permute.xlu1 %2752 }
 0x99e   :  { %v2743_v58 = vpop.permute.xlu0 %2742 }
 0x9a2   :  { %v2748_v40 = vpop.permute.xlu0 %2747 }
 0x9fc   :  { %v2648_v13 = vpop.f32.mrb[0].mxu0  ;;  %v2701_v56 = vpop.f32.mrb[0].mxu1 }
 0x9fd   :  { %v2720_v63 = vadd.f32 %v2648_v13, %v8508_v52  ;;  %v2722_v60 = vadd.f32 %v2701_v56, %v8509_v0  ;;  %v2650_v59 = vpop.f32.mrb[1].mxu0  ;;  %v2703_v28 = vpop.f32.mrb[1].mxu1  ;;  %v8531_v0 = vld [vmem:[#allocation22_spill] sm:$0xff] }
 0x9fe   :  { %v2721_v23 = vadd.f32 %v2650_v59, %v8510_v29  ;;  %v2723_v57 = vadd.f32 %v2703_v28, %v8511_v30  ;;  %v2652_v47 = vpop.f32.mrb[2].mxu0  ;;  %v2705_v2 = vpop.f32.mrb[2].mxu1 }
 0x9ff   :  { %v7216_v9 = vadd.f32 %v2743_v58, %v2720_v63  ;;  %v7218_v5 = vadd.f32 %v2743_v58, %v2722_v60  ;;  %v2724_v31 = vadd.f32 %v2652_v47, %v8514_v6  ;;  %v2726_v54 = vadd.f32 %v2705_v2, %v8515_v33  ;;  %v2654_v32 = vpop.f32.mrb[3].mxu0  ;;  %v2707_v45 = vpop.f32.mrb[3].mxu1  ;;  %v8535_v2 = vld [vmem:[#allocation24_spill] sm:$0xff] }
 0xa00   :  { %v7222_v12 = vadd.f32 %v2743_v58, %v2721_v23  ;;  %v7224_v24 = vadd.f32 %v2743_v58, %v2723_v57  ;;  %v2725_v55 = vadd.f32 %v2654_v32, %v8518_v3  ;;  %v2727_v19 = vadd.f32 %v2707_v45, %v8519_v53  ;;  %v2758_v29 = vpop.permute.xlu1 %2757  ;;  %v8534_v57 = vld [vmem:[#allocation23_spill] sm:$0xff] }
 0xa01   :  { %8512 = vst [vmem:[#allocation9_spill] sm:$0xff] %v7216_v9  ;;  %8513 = vst [vmem:[#allocation10_spill] sm:$0xff] %v7218_v5  ;;  %v7228_v20 = vadd.f32 %v2748_v40, %v2724_v31  ;;  %v7230_v39 = vadd.f32 %v2748_v40, %v2726_v54 }
 0xa02   :  { %8516 = vst [vmem:[#allocation11_spill] sm:$0xff] %v7222_v12  ;;  %8517 = vst [vmem:[#allocation12_spill] sm:$0xff] %v7224_v24  ;;  %v7232_v49 = vadd.f32 %v2748_v40, %v2725_v55  ;;  %v7234_v34 = vadd.f32 %v2748_v40, %v2727_v19  ;;  %v8530_v40 = vld [vmem:[#allocation21_spill] sm:$0xff] }
 0xa03   :  { %8520 = vst [vmem:[#allocation13_spill] sm:$0xff] %v7228_v20  ;;  %8521 = vst [vmem:[#allocation14_spill] sm:$0xff] %v7230_v39 }
 0xa04   :  { %8522 = vst [vmem:[#allocation15_spill] sm:$0xff] %v7232_v49  ;;  %8523 = vst [vmem:[#allocation16_spill] sm:$0xff] %v7234_v34  ;;  %v2658_v37 = vpop.f32.mrb[4].mxu0  ;;  %v2711_v46 = vpop.f32.mrb[4].mxu1 }
 0xa05   :  { %v2728_v44 = vadd.f32 %v2658_v37, %v8524_v61  ;;  %v2730_v25 = vadd.f32 %v2711_v46, %v8525_v27  ;;  %v2660_v22 = vpop.f32.mrb[5].mxu0  ;;  %v2713_v38 = vpop.f32.mrb[5].mxu1 }
 0xa06   :  { %v2729_v7 = vadd.f32 %v2660_v22, %v8526_v21  ;;  %v2731_v26 = vadd.f32 %v2713_v38, %v8527_v16  ;;  %v2662_v58 = vpop.f32.mrb[6].mxu0  ;;  %v2715_v13 = vpop.f32.mrb[6].mxu1 }
 0xa07   :  { %v7240_v56 = vadd.f32 %v2753_v43, %v2728_v44  ;;  %v7242_v52 = vadd.f32 %v2753_v43, %v2730_v25  ;;  %v2732_v63 = vadd.f32 %v2662_v58, %v8530_v40  ;;  %v2734_v60 = vadd.f32 %v2715_v13, %v8531_v0  ;;  %v2664_v59 = vpop.f32.mrb[7].mxu0  ;;  %v2717_v28 = vpop.f32.mrb[7].mxu1 }
 0xa08   :  { %v7246_v23 = vadd.f32 %v2753_v43, %v2729_v7  ;;  %v7248_v30 = vadd.f32 %v2753_v43, %v2731_v26  ;;  %v2733_v47 = vadd.f32 %v2664_v59, %v8534_v57  ;;  %v2735_v6 = vadd.f32 %v2717_v28, %v8535_v2 }
 0xa09   :  { %8528 = vst [vmem:[#allocation17_spill] sm:$0xff] %v7240_v56  ;;  %8529 = vst [vmem:[#allocation18_spill] sm:$0xff] %v7242_v52  ;;  %v7252_v31 = vadd.f32 %v2758_v29, %v2732_v63  ;;  %v7254_v33 = vadd.f32 %v2758_v29, %v2734_v60 }
 0xa0a   :  { %8532 = vst [vmem:[#allocation19_spill] sm:$0xff] %v7246_v23  ;;  %8533 = vst [vmem:[#allocation20_spill] sm:$0xff] %v7248_v30  ;;  %v7256_v54 = vadd.f32 %v2758_v29, %v2733_v47  ;;  %v7258_v32 = vadd.f32 %v2758_v29, %v2735_v6 }
 0xa0b   :  { %8536 = vst [vmem:[#allocation21_spill] sm:$0xff] %v7252_v31  ;;  %8537 = vst [vmem:[#allocation22_spill] sm:$0xff] %v7254_v33 }
 0xa0c   :  { %8538 = vst [vmem:[#allocation23_spill] sm:$0xff] %v7256_v54  ;;  %8539 = vst [vmem:[#allocation24_spill] sm:$0xff] %v7258_v32 }
 0xa0d LB: > { %8540 = vst [vmem:[#allocation57_spill] sm:$0xff] %v5551_v1  ;;  %8541 = vst [vmem:[#allocation58_spill] sm:$0xff] %v5555_v51  ;;  %v2827_v45 = vadd.f32 %v5607_v18, %v5611_v11  ;;  %v2832_v55 = vadd.f32 %v5591_v17, %v5595_v15  ;;  %v2837_v43 = vadd.f32 %v5575_v4, %v5579_v48  ;;  %v8548_v13 = vld [vmem:[#allocation6_spill] sm:$0xff]  ;;  %v8549_v59 = vld [vmem:[#allocation7_spill] sm:$0xff]  ;;  %s7474_s19 = sshll.u32 %s5615_s18, 6  ;;  %s4954_s20 = smul.u32 96, %s5615_s18  ;;  %s5615_s18 = sphi %s7308_s18, %s2781_s18   ;;  %v5611_v11 = vphi %v8460_v11, %v8586_v11   ;;  %v5607_v18 = vphi %v8462_v18, %v8585_v18   ;;  %v5603_v36 = vphi %v8464_v36, %v8584_v36   ;;  %v5599_v8 = vphi %v8466_v8, %v8583_v8   ;;  %v5595_v15 = vphi %v8468_v15, %v8582_v15   ;;  %v5591_v17 = vphi %v7043_v17, %v8581_v17   ;;  %v5587_v62 = vphi %v8471_v62, %v8580_v62   ;;  %v5583_v42 = vphi %v8473_v42, %v8579_v42   ;;  %v5579_v48 = vphi %v8475_v48, %v8578_v48   ;;  %v5575_v4 = vphi %v8477_v4, %v8577_v4   ;;  %v5571_v35 = vphi %v8479_v35, %v8576_v35   ;;  %v5567_v10 = vphi %v8481_v10, %v8575_v10   ;;  %v5563_v14 = vphi %v8483_v14, %v8574_v14   ;;  %v5559_v50 = vphi %v8485_v50, %v8573_v50   ;;  %v5555_v51 = vphi %v8487_v51, %v8572_v51   ;;  %v5551_v1 = vphi %v8489_v1, %v8571_v1  }
 0xa0e   : > { %8542 = vst [vmem:[#allocation59_spill] sm:$0xff] %v5559_v50  ;;  %8543 = vst [vmem:[#allocation60_spill] sm:$0xff] %v5563_v14  ;;  %v2842_v61 = vadd.f32 %v5559_v50, %v5563_v14  ;;  %v8550_v57 = vld [vmem:[#allocation8_spill] sm:$0xff]  ;;  %s7483_s5 = scalar_lea.vmem %s8318_s7, %s7474_s19  ;;  %s7499_s24 = scalar_lea.vmem %s8317_s6, %s7474_s19 }
 0xa0f   : > { %8544 = vst [vmem:[#allocation61_spill] sm:$0xff] %v5567_v10  ;;  %8545 = vst [vmem:[#allocation62_spill] sm:$0xff] %v5571_v35  ;;  %v2828_v3 = vadd.f32 %v5603_v36, %v2827_v45  ;;  %v2833_v19 = vadd.f32 %v5587_v62, %v2832_v55  ;;  %v2838_v46 = vadd.f32 %v5571_v35, %v2837_v43  ;;  %s7488_s2 = scalar_lea.vmem %s8325_s14, %s4954_s20  ;;  %s7506_s26 = scalar_lea.vmem %s8319_s8, %s7474_s19 }
 0xa10   : > { %8546 = vst [vmem:[#allocation63_spill] sm:$0xff] %v5575_v4  ;;  %8547 = vst [vmem:[#allocation64_spill] sm:$0xff] %v5579_v48  ;;  %v2843_v27 = vadd.f32 %v5555_v51, %v2842_v61  ;;  %s5625_s27 = smov 2   ;;  %s5626_s28 = smov 126  }
 0xa11   : > { %v2829_v53 = vadd.f32 %v5599_v8, %v2828_v3  ;;  %v2834_v37 = vadd.f32 %v5583_v42, %v2833_v19  ;;  %v2839_v44 = vadd.f32 %v5567_v10, %v2838_v46  ;;  %s2781_s18 = sadd.s32 1, %s5615_s18  }
 0xa12   : > { %v2844_v25 = vadd.f32 %v5551_v1, %v2843_v27  ;;  %p8183_p1 = scmp.ge.s32.totalorder %s2781_s18, 4  }
 0xa13   : > { %2830 = vadd.xlane.f32.xlu0 %v2829_v53  ;;  %2840 = vadd.xlane.f32.xlu1 %v2839_v44 }
 0xa17   : > { %2835 = vadd.xlane.f32.xlu0 %v2834_v37  ;;  %2845 = vadd.xlane.f32.xlu1 %v2844_v25 }
 0xaa0   : > { %v2831_v22 = vpop.xlane.xlu0 %2830  ;;  %v2841_v60 = vpop.xlane.xlu1 %2840 }
 0xaa1   : > { %v2847_v38 = vmul.f32 0.00390625, %v2831_v22  ;;  %v2849_v29 = vmul.f32 0.00390625, %v2841_v60 }
 0xaa3   : > { %v2851_v21 = vsub.f32 %v5611_v11, %v2847_v38  ;;  %v2852_v7 = vsub.f32 %v5607_v18, %v2847_v38  ;;  %v2853_v16 = vsub.f32 %v5603_v36, %v2847_v38  ;;  %v2854_v26 = vsub.f32 %v5599_v8, %v2847_v38 }
 0xaa4   : > { %v2836_v58 = vpop.xlane.xlu0 %2835  ;;  %v2859_v55 = vsub.f32 %v5579_v48, %v2849_v29  ;;  %v2860_v53 = vsub.f32 %v5575_v4, %v2849_v29  ;;  %v2846_v61 = vpop.xlane.xlu1 %2845  ;;  %v2861_v27 = vsub.f32 %v5571_v35, %v2849_v29  ;;  %v2862_v22 = vsub.f32 %v5567_v10, %v2849_v29 }
 0xaa5   : > { %v7382_v40 = vmul.f32 %v2851_v21, %v8548_v13  ;;  %v7385_v63 = vmul.f32 %v2852_v7, %v5767_v41  ;;  %v2848_v0 = vmul.f32 0.00390625, %v2836_v58  ;;  %v7388_v28 = vmul.f32 %v2853_v16, %v8549_v59 }
 0xaa6   : > { %v7391_v47 = vmul.f32 %v2854_v26, %v8550_v57  ;;  %v2850_v25 = vmul.f32 0.00390625, %v2846_v61  ;;  %v7414_v38 = vmul.f32 %v2859_v55, %v8548_v13  ;;  %v7417_v21 = vmul.f32 %v2860_v53, %v5767_v41 }
 0xaa7   : > { %v2855_v2 = vsub.f32 %v5595_v15, %v2848_v0  ;;  %v2856_v6 = vsub.f32 %v5591_v17, %v2848_v0  ;;  %v2883_v45 = vmul.f32 %v7382_v40, %v7382_v40  ;;  %v2884_v3 = vmul.f32 %v7385_v63, %v7385_v63 }
 0xaa8   : > { %v2885_v19 = vmul.f32 %v7388_v28, %v7388_v28  ;;  %v2886_v43 = vmul.f32 %v7391_v47, %v7391_v47  ;;  %v7420_v16 = vmul.f32 %v2861_v27, %v8549_v59  ;;  %v2857_v26 = vsub.f32 %v5587_v62, %v2848_v0 }
 0xaa9   : > { %v7406_v37 = vmul.f32 %v2855_v2, %v8548_v13  ;;  %v7409_v46 = vmul.f32 %v2856_v6, %v5767_v41  ;;  %v2899_v44 = vadd.f32 %v2884_v3, %v2883_v45  ;;  %v2858_v58 = vsub.f32 %v5583_v42, %v2848_v0 }
 0xaaa   : > { %v2863_v60 = vsub.f32 %v5563_v14, %v2850_v25  ;;  %v2864_v2 = vsub.f32 %v5559_v50, %v2850_v25  ;;  %v7427_v29 = vmul.f32 %v2862_v22, %v8550_v57  ;;  %v2891_v6 = vmul.f32 %v7414_v38, %v7414_v38 }
 0xaab   : > { %v2900_v7 = vadd.f32 %v2899_v44, %v2885_v19  ;;  %v2892_v3 = vmul.f32 %v7417_v21, %v7417_v21  ;;  %v2893_v55 = vmul.f32 %v7420_v16, %v7420_v16  ;;  %v7436_v53 = vmul.f32 %v2857_v26, %v8549_v59 }
 0xaac   : > { %v7439_v0 = vmul.f32 %v2858_v58, %v8550_v57  ;;  %v2887_v19 = vmul.f32 %v7406_v37, %v7406_v37  ;;  %v2888_v61 = vmul.f32 %v7409_v46, %v7409_v46  ;;  %v2865_v27 = vsub.f32 %v5555_v51, %v2850_v25 }
 0xaad   : > { %v2901_v45 = vadd.f32 %v2900_v7, %v2886_v43  ;;  %v2894_v43 = vmul.f32 %v7427_v29, %v7427_v29  ;;  %v2909_v44 = vadd.f32 %v2892_v3, %v2891_v6  ;;  %v2866_v22 = vsub.f32 %v5551_v1, %v2850_v25 }
 0xaae   : > { %v2889_v7 = vmul.f32 %v7436_v53, %v7436_v53  ;;  %v2904_v26 = vadd.f32 %v2888_v61, %v2887_v19  ;;  %v7452_v58 = vmul.f32 %v2863_v60, %v8548_v13  ;;  %v7455_v32 = vmul.f32 %v2864_v2, %v5767_v41 }
 0xaaf   : > { %2902 = vadd.xlane.f32.xlu0 %v2901_v45  ;;  %v2910_v54 = vadd.f32 %v2909_v44, %v2893_v55  ;;  %v7458_v45 = vmul.f32 %v2865_v27, %v8549_v59  ;;  %v7461_v6 = vmul.f32 %v2866_v22, %v8550_v57  ;;  %v2890_v25 = vmul.f32 %v7439_v0, %v7439_v0 }
 0xab0   : > { %v2905_v3 = vadd.f32 %v2904_v26, %v2889_v7  ;;  %v2895_v60 = vmul.f32 %v7452_v58, %v7452_v58  ;;  %v2896_v2 = vmul.f32 %v7455_v32, %v7455_v32  ;;  %v8373_v7 = vmov 0  }
 0xab1   : > { %v2911_v19 = vadd.f32 %v2910_v54, %v2894_v43  ;;  %v2897_v55 = vmul.f32 %v7458_v45, %v7458_v45  ;;  %v2898_v44 = vmul.f32 %v7461_v6, %v7461_v6  ;;  %5288 = vset.pattern.permute.xlu1 %v8373_v7  ;;  %5287 = vset.pattern.permute.xlu0 %v8373_v7  ;;  %v4868_v54 = vld [vmem:[%s7483_s5 + $0x108] sm:$0xff]  ;;  %v4869_v43 = vld [vmem:[%s7483_s5 + $0x110] sm:$0xff] }
 0xab2   : > { %v2906_v61 = vadd.f32 %v2905_v3, %v2890_v25  ;;  %v2914_v27 = vadd.f32 %v2896_v2, %v2895_v60  ;;  %3143 = vmatprep.mubr.bf16.mxu0 %v8373_v7  ;;  %3236 = vmatprep.mubr.bf16.mxu1 %v8373_v7 }
 0xab3   : > { %2912 = vadd.xlane.f32.xlu0 %v2911_v19 }
 0xab4   : > { %2907 = vadd.xlane.f32.xlu1 %v2906_v61  ;;  %v2915_v22 = vadd.f32 %v2914_v27, %v2897_v55 }
 0xab6   : > { %v2916_v33 = vadd.f32 %v2915_v22, %v2898_v44 }
 0xab8   : > { %2917 = vadd.xlane.f32.xlu1 %v2916_v33  ;;  %v4867_v33 = vld [vmem:[%s7483_s5 + $0x100] sm:$0xff] }
 0xac9   : > { %2973 = vperm.xlu1 %5288, %v4867_v33   ;;  %v4858_v33 = vld [vmem:[%s7499_s24 + $0x100] sm:$0xff] }
 0xacd   : > { %2978 = vperm.xlu1 %5288, %v4868_v54  }
 0xad1   : > { %2983 = vperm.xlu1 %5288, %v4869_v43  }
 0xb3c   : > { %v2903_v26 = vpop.xlane.xlu0 %2902 }
 0xb3d   : > { %v2919_v25 = vmul.f32 0.00390625, %v2903_v26 }
 0xb3f   : > { %v2923_v3 = vadd.f32 1e-05, %v2919_v25  ;;  %v4877_v25 = vld [vmem:[%s7506_s26 + $0x108] sm:$0xff] }
 0xb40   : > { %v2913_v60 = vpop.xlane.xlu0 %2912 }
 0xb41   : > { %5301 = vrsqrt.f32 %v2923_v3  ;;  %v2921_v2 = vmul.f32 0.00390625, %v2913_v60  ;;  %v2908_v19 = vpop.xlane.xlu1 %2907  ;;  %v4859_v3 = vld [vmem:[%s7499_s24 + $0x108] sm:$0xff] }
 0xb42   : > { %v2920_v55 = vmul.f32 0.00390625, %v2908_v19  ;;  %v4879_v19 = vld [vmem:[%s7506_s26 + $0x118] sm:$0xff] }
 0xb43   : > { %v2925_v61 = vadd.f32 1e-05, %v2921_v2 }
 0xb44   : > { %v2924_v44 = vadd.f32 1e-05, %v2920_v55 }
 0xb45   : > { %v2918_v27 = vpop.xlane.xlu1 %2917 }
 0xb46   : > { %5303 = vrsqrt.f32 %v2924_v44  ;;  %v2922_v22 = vmul.f32 0.00390625, %v2918_v27 }
 0xb47   : > { %5305 = vrsqrt.f32 %v2925_v61  ;;  %v4860_v61 = vld [vmem:[%s7499_s24 + $0x110] sm:$0xff] }
 0xb48   : > { %v2926_v54 = vadd.f32 1e-05, %v2922_v22  ;;  %v4861_v22 = vld [vmem:[%s7499_s24 + $0x118] sm:$0xff] }
 0xb4a   : > { %5307 = vrsqrt.f32 %v2926_v54  ;;  %v4870_v54 = vld [vmem:[%s7483_s5 + $0x118] sm:$0xff] }
 0xb4b   : > { %v5302_v43 = vpop.eup %5301 }
 0xb4c   : > { %v2931_v26 = vmul.f32 %v5302_v43, %v4858_v33  ;;  %v4876_v43 = vld [vmem:[%s7506_s26 + $0x100] sm:$0xff] }
 0xb4e   : > { %2937 = vperm.xlu0 %5287, %v2931_v26   ;;  %v4878_v26 = vld [vmem:[%s7506_s26 + $0x110] sm:$0xff] }
 0xb50   : > { %v5304_v60 = vpop.eup %5303 }
 0xb51   : > { %v2932_v2 = vmul.f32 %v5304_v60, %v4859_v3  ;;  %v5306_v55 = vpop.eup %5305 }
 0xb52   : > { %3506 = vperm.xlu0 %5287, %v4877_v25   ;;  %v2933_v44 = vmul.f32 %v5306_v55, %v4860_v61  ;;  %v2974_v25 = vpop.permute.xlu1 %2973 }
 0xb53   : > { %2942 = vperm.xlu1 %5288, %v2932_v2  }
 0xb54   : > { %v5308_v27 = vpop.eup %5307 }
 0xb55   : > { %v2934_v33 = vmul.f32 %v5308_v27, %v4861_v22 }
 0xb56   : > { %3516 = vperm.xlu0 %5287, %v4879_v19   ;;  %v2979_v3 = vpop.permute.xlu1 %2978 }
 0xb57   : > { %2947 = vperm.xlu1 %5288, %v2933_v44  }
 0xb5a   : > { %v2984_v61 = vpop.permute.xlu1 %2983 }
 0xb5b   : > { %2952 = vperm.xlu1 %5288, %v2934_v33  }
 0xb5f   : > { %2988 = vperm.xlu1 %5288, %v4870_v54  }
 0xb63   : > { %3501 = vperm.xlu1 %5288, %v4876_v43  }
 0xb67   : > { %3511 = vperm.xlu1 %5288, %v4878_v26  }
 0xbcd   : > { %v2938_v60 = vpop.permute.xlu0 %2937 }
 0xbce   : > { %v2955_v7 = vmul.f32 %v2938_v60, %v7382_v40  ;;  %v2957_v2 = vmul.f32 %v2938_v60, %v7388_v28  ;;  %v2956_v19 = vmul.f32 %v2938_v60, %v7385_v63  ;;  %v2958_v55 = vmul.f32 %v2938_v60, %v7391_v47 }
 0xbd0   : > { %v2992_v44 = vadd.f32 %v2974_v25, %v2956_v19  ;;  %v2994_v27 = vadd.f32 %v2974_v25, %v2958_v55  ;;  %v2991_v22 = vadd.f32 %v2974_v25, %v2955_v7  ;;  %v2993_v33 = vadd.f32 %v2974_v25, %v2957_v2 }
 0xbd2   : > { %v2943_v54 = vpop.permute.xlu1 %2942  ;;  %v3008_v43 = vmax.f32 %v2992_v44, 0.0  ;;  %v3010_v31 = vmax.f32 %v2994_v27, 0.0  ;;  %v3007_v23 = vmax.f32 %v2991_v22, 0.0  ;;  %v3009_v63 = vmax.f32 %v2993_v33, 0.0 }
 0xbd3   : > { %v2959_v26 = vmul.f32 %v2943_v54, %v7406_v37  ;;  %v2961_v30 = vmul.f32 %v2943_v54, %v7436_v53  ;;  %v2960_v40 = vmul.f32 %v2943_v54, %v7409_v46  ;;  %v2962_v28 = vmul.f32 %v2943_v54, %v7439_v0 }
 0xbd4   : > { %v3024_v7 = vmul.f32 %v3008_v43, %v5767_v41  ;;  %v3026_v25 = vmul.f32 %v3010_v31, %v8550_v57  ;;  %v3023_v33 = vmul.f32 %v3007_v23, %v8548_v13 }
 0xbd5   : > { %v2996_v52 = vadd.f32 %v2979_v3, %v2960_v40  ;;  %v2998_v47 = vadd.f32 %v2979_v3, %v2962_v28  ;;  %v2995_v60 = vadd.f32 %v2979_v3, %v2959_v26  ;;  %v2997_v19 = vadd.f32 %v2979_v3, %v2961_v30 }
 0xbd6   : > { %v2948_v55 = vpop.permute.xlu1 %2947  ;;  %v3025_v30 = vmul.f32 %v3009_v63, %v8549_v59 }
 0xbd7   : > { %v2963_v2 = vmul.f32 %v2948_v55, %v7414_v38  ;;  %v2964_v37 = vmul.f32 %v2948_v55, %v7417_v21  ;;  %v2965_v53 = vmul.f32 %v2948_v55, %v7420_v16  ;;  %v2966_v46 = vmul.f32 %v2948_v55, %v7427_v29 }
 0xbd8   : > { %v3012_v0 = vmax.f32 %v2996_v52, 0.0  ;;  %v3014_v44 = vmax.f32 %v2998_v47, 0.0  ;;  %v3011_v27 = vmax.f32 %v2995_v60, 0.0  ;;  %v3013_v22 = vmax.f32 %v2997_v19, 0.0 }
 0xbd9   : > { %v3000_v3 = vadd.f32 %v2984_v61, %v2964_v37  ;;  %v2999_v54 = vadd.f32 %v2984_v61, %v2963_v2  ;;  %v3002_v29 = vadd.f32 %v2984_v61, %v2966_v46  ;;  %v3001_v52 = vadd.f32 %v2984_v61, %v2965_v53 }
 0xbda   : > { %v2953_v43 = vpop.permute.xlu1 %2952  ;;  %v3028_v31 = vmul.f32 %v3012_v0, %v5767_v41  ;;  %v3030_v38 = vmul.f32 %v3014_v44, %v8550_v57  ;;  %v3027_v21 = vmul.f32 %v3011_v27, %v8548_v13  ;;  %v3029_v16 = vmul.f32 %v3013_v22, %v8549_v59 }
 0xbdb   : > { %v2967_v23 = vmul.f32 %v2953_v43, %v7452_v58  ;;  %v2968_v63 = vmul.f32 %v2953_v43, %v7455_v32  ;;  %v2969_v60 = vmul.f32 %v2953_v43, %v7458_v45  ;;  %v2970_v19 = vmul.f32 %v2953_v43, %v7461_v6 }
 0xbdc   : > { %v3056_v26 = vpack.c.bf16 %v3028_v31, %v3024_v7  ;;  %v3058_v40 = vpack.c.bf16 %v3030_v38, %v3026_v25  ;;  %v3055_v28 = vpack.c.bf16 %v3027_v21, %v3023_v33  ;;  %v3057_v47 = vpack.c.bf16 %v3029_v16, %v3025_v30 }
 0xbdd   : > { %v3016_v2 = vmax.f32 %v3000_v3, 0.0  ;;  %v3015_v37 = vmax.f32 %v2999_v54, 0.0  ;;  %v3017_v53 = vmax.f32 %v3001_v52, 0.0  ;;  %v3018_v0 = vmax.f32 %v3002_v29, 0.0  ;;  %v5289_v29 = vld [vmem:[%s7488_s2] sm:$0xff]  }
 0xbde   : > { %3111 = vmatprep.subr.bf16.mxu0 %v3056_v26  ;;  %3204 = vmatprep.subr.bf16.mxu1 %v3058_v40  ;;  %v2989_v55 = vpop.permute.xlu1 %2988  ;;  %v8551_v52 = vmov 0   ;;  %v5290_v26 = vld [vmem:[%s7488_s2 + $0x8] sm:$0xff]   ;;  %v5291_v40 = vld [vmem:[%s7488_s2 + $0x10] sm:$0xff]  }
 0xbdf   : > { %3112 = vmatpush1.bf16.msra.mxu0 %v3055_v28  ;;  %3205 = vmatpush1.bf16.msra.mxu1 %v3057_v47  ;;  %v3003_v61 = vadd.f32 %v2989_v55, %v2967_v23  ;;  %v3004_v7 = vadd.f32 %v2989_v55, %v2968_v63  ;;  %v3005_v25 = vadd.f32 %v2989_v55, %v2969_v60  ;;  %v5292_v28 = vld [vmem:[%s7488_s2 + $0x18] sm:$0xff]   ;;  %v5293_v47 = vld [vmem:[%s7488_s2 + $0x20] sm:$0xff]   ;;  %v5294_v23 = vld [vmem:[%s7488_s2 + $0x28] sm:$0xff]  }
 0xbe0   : > { %v3006_v46 = vadd.f32 %v2989_v55, %v2970_v19  ;;  %v3032_v6 = vmul.f32 %v3016_v2, %v5767_v41  ;;  %v3031_v27 = vmul.f32 %v3015_v37, %v8548_v13  ;;  %v3033_v30 = vmul.f32 %v3017_v53, %v8549_v59 }
 0xbe1   : > { %v3019_v58 = vmax.f32 %v3003_v61, 0.0  ;;  %v3020_v44 = vmax.f32 %v3004_v7, 0.0  ;;  %v3021_v32 = vmax.f32 %v3005_v25, 0.0  ;;  %v3034_v54 = vmul.f32 %v3018_v0, %v8550_v57 }
 0xbe2   : > { %v3022_v45 = vmax.f32 %v3006_v46, 0.0 }
 0xbe3   : > { %v3036_v22 = vmul.f32 %v3020_v44, %v5767_v41  ;;  %v3035_v33 = vmul.f32 %v3019_v58, %v8548_v13  ;;  %v3037_v3 = vmul.f32 %v3021_v32, %v8549_v59 }
 0xbe4   : > { %v3038_v43 = vmul.f32 %v3022_v45, %v8550_v57 }
 0xbe5   : > { %v3060_v31 = vpack.c.bf16 %v3036_v22, %v3032_v6  ;;  %v3059_v38 = vpack.c.bf16 %v3035_v33, %v3031_v27  ;;  %v3061_v21 = vpack.c.bf16 %v3037_v3, %v3033_v30 }
 0xbe6   : > { %v3062_v16 = vpack.c.bf16 %v3038_v43, %v3034_v54 }
 0xbe7   : > { %3113 = vmatprep.subr.bf16.mxu0 %v3060_v31 }
 0xbe8   : > { %3206 = vmatprep.subr.bf16.mxu1 %v3062_v16  ;;  %3114 = vmatpush1.bf16.msra.mxu0 %v3059_v38 }
 0xbe9   : > { %3207 = vmatpush1.bf16.msra.mxu1 %v3061_v21 }
 0xbeb   : > { %4893 = vmatmul.mubr.msk.bf16.vlgmr.msra.gmra.mrb[0].mxu0 %vm319_vm2, %v5289_v29 }
 0xbec   : > { %4899 = vmatmul.mubr.msk.bf16.vlgmr.msra.gmra.mrb[0].mxu1 %vm319_vm2, %v5289_v29  ;;  %3153 = vmatprep.mubr.bf16.mxu0 %v8551_v52 }
 0xbed   : > { %3246 = vmatprep.mubr.bf16.mxu1 %v8551_v52 }
 0xbf3   : > { %4894 = vmatmul.mubr.msk.bf16.gmra.mrb[4].mxu0 %vm319_vm2, %v5290_v26 }
 0xbf4   : > { %4900 = vmatmul.mubr.msk.bf16.gmra.mrb[4].mxu1 %vm319_vm2, %v5290_v26  ;;  %3163 = vmatprep.mubr.bf16.mxu0 %v8551_v52 }
 0xbf5   : > { %3256 = vmatprep.mubr.bf16.mxu1 %v8551_v52 }
 0xbfb   : > { %4895 = vmatmul.mubr.msk.bf16.gmra.mrb[8].mxu0 %vm319_vm2, %v5291_v40 }
 0xbfc   : > { %4901 = vmatmul.mubr.msk.bf16.gmra.mrb[8].mxu1 %vm319_vm2, %v5291_v40  ;;  %3173 = vmatprep.mubr.bf16.mxu0 %v8551_v52 }
 0xbfd   : > { %3266 = vmatprep.mubr.bf16.mxu1 %v8551_v52 }
 0xc03   : > { %4896 = vmatmul.mubr.msk.bf16.gmra.mrb[12].mxu0 %vm319_vm2, %v5292_v28 }
 0xc04   : > { %4902 = vmatmul.mubr.msk.bf16.gmra.mrb[12].mxu1 %vm319_vm2, %v5292_v28  ;;  %3183 = vmatprep.mubr.bf16.mxu0 %v8551_v52 }
 0xc05   : > { %3276 = vmatprep.mubr.bf16.mxu1 %v8551_v52 }
 0xc0b   : > { %4897 = vmatmul.mubr.msk.bf16.gmra.mrb[16].mxu0 %vm319_vm2, %v5293_v47 }
 0xc0c   : > { %4903 = vmatmul.mubr.msk.bf16.gmra.mrb[16].mxu1 %vm319_vm2, %v5293_v47  ;;  %3193 = vmatprep.mubr.bf16.mxu0 %v8551_v52 }
 0xc0d   : > { %3286 = vmatprep.mubr.bf16.mxu1 %v8551_v52 }
 0xc13   : > { %4898 = vmatmul.mubr.msk.bf16.gmra.mrb[20].mxu0 %vm319_vm2, %v5294_v23 }
 0xc14   : > { %4904 = vmatmul.mubr.msk.bf16.gmra.mrb[20].mxu1 %vm319_vm2, %v5294_v23  ;;  %3867 = vmatprep.mubr.bf16.mxu0 %v8551_v52 }
 0xc15   : > { %3960 = vmatprep.mubr.bf16.mxu1 %v8551_v52 }
 0xcbe   : > { %v3145_v63 = vpop.f32.mrb[0].mxu0 }
 0xcbf   : > { %v3238_v60 = vpop.f32.mrb[0].mxu1  ;;  %3325 = vrot.lane.b32.xlu1 %v3145_v63, %s5625_s27  ;;  %v3147_v19 = vpop.f32.mrb[1].mxu0 }
 0xcc0   : > { %v3240_v55 = vpop.f32.mrb[1].mxu1  ;;  %3327 = vrot.lane.b32.xlu0 %v3147_v19, %s5625_s27  ;;  %v3149_v2 = vpop.f32.mrb[2].mxu0 }
 0xcc1   : > { %v3151_v37 = vpop.f32.mrb[3].mxu0  ;;  %v3242_v61 = vpop.f32.mrb[2].mxu1 }
 0xcc2   : > { %v3244_v7 = vpop.f32.mrb[3].mxu1 }
 0xcc3   : > { %3329 = vrot.lane.b32.xlu1 %v3238_v60, %s5625_s27 }
 0xcc4   : > { %3335 = vrot.lane.b32.xlu0 %v3242_v61, %s5625_s27 }
 0xcc6   : > { %v3155_v25 = vpop.f32.mrb[4].mxu0 }
 0xcc7   : > { %v3248_v53 = vpop.f32.mrb[4].mxu1  ;;  %3301 = vrot.lane.b32.xlu1 %v3240_v55, %s5625_s27  ;;  %v3157_v46 = vpop.f32.mrb[5].mxu0 }
 0xcc8   : > { %v3250_v0 = vpop.f32.mrb[5].mxu1  ;;  %3303 = vrot.lane.b32.xlu0 %v3244_v7, %s5625_s27  ;;  %v3159_v58 = vpop.f32.mrb[6].mxu0 }
 0xcc9   : > { %v3161_v44 = vpop.f32.mrb[7].mxu0  ;;  %v3252_v32 = vpop.f32.mrb[6].mxu1 }
 0xcca   : > { %v3254_v45 = vpop.f32.mrb[7].mxu1 }
 0xccb   : > { %3331 = vrot.lane.b32.xlu1 %v3149_v2, %s5625_s27 }
 0xccc   : > { %3333 = vrot.lane.b32.xlu0 %v3151_v37, %s5625_s27 }
 0xcce   : > { %v7586_v6 = vpop.f32.mrb[8].mxu0 }
 0xccf   : > { %v7588_v27 = vpop.f32.mrb[8].mxu1  ;;  %3337 = vrot.lane.b32.xlu1 %v3155_v25, %s5625_s27  ;;  %v7591_v22 = vpop.f32.mrb[9].mxu0 }
 0xcd0   : > { %v7593_v33 = vpop.f32.mrb[9].mxu1  ;;  %3339 = vrot.lane.b32.xlu0 %v3157_v46, %s5625_s27  ;;  %v7596_v30 = vpop.f32.mrb[10].mxu0 }
 0xcd1   : > { %v7598_v3 = vpop.f32.mrb[11].mxu0  ;;  %v7600_v54 = vpop.f32.mrb[10].mxu1 }
 0xcd2   : > { %v7602_v43 = vpop.f32.mrb[11].mxu1 }
 0xcd3   : > { %3341 = vrot.lane.b32.xlu1 %v3248_v53, %s5625_s27 }
 0xcd4   : > { %3347 = vrot.lane.b32.xlu0 %v3252_v32, %s5625_s27  ;;  %v3502_v32 = vpop.permute.xlu1 %3501 }
 0xcd6   : > { %v7606_v31 = vpop.f32.mrb[12].mxu0 }
 0xcd7   : > { %v7608_v38 = vpop.f32.mrb[12].mxu1  ;;  %3305 = vrot.lane.b32.xlu1 %v3250_v0, %s5625_s27  ;;  %v7611_v21 = vpop.f32.mrb[13].mxu0 }
 0xcd8   : > { %v7613_v16 = vpop.f32.mrb[13].mxu1  ;;  %3307 = vrot.lane.b32.xlu0 %v3254_v45, %s5625_s27  ;;  %v7616_v29 = vpop.f32.mrb[14].mxu0 }
 0xcd9   : > { %v7618_v26 = vpop.f32.mrb[15].mxu0  ;;  %v7620_v40 = vpop.f32.mrb[14].mxu1 }
 0xcda   : > { %v7622_v28 = vpop.f32.mrb[15].mxu1  ;;  %v7642_v45 = vpop.permute.xlu0 %3506 }
 0xcdb   : > { %3343 = vrot.lane.b32.xlu1 %v3159_v58, %s5625_s27 }
 0xcdc   : > { %3345 = vrot.lane.b32.xlu0 %v3161_v44, %s5625_s27 }
 0xcde   : > { %v3185_v47 = vpop.f32.mrb[16].mxu0 }
 0xcdf   : > { %v3278_v23 = vpop.f32.mrb[16].mxu1  ;;  %3414 = vrot.lane.b32.xlu1 %v3185_v47, %s5626_s28  ;;  %v3187_v63 = vpop.f32.mrb[17].mxu0 }
 0xce0   : > { %v3280_v60 = vpop.f32.mrb[17].mxu1  ;;  %3416 = vrot.lane.b32.xlu0 %v3187_v63, %s5626_s28  ;;  %v3189_v19 = vpop.f32.mrb[18].mxu0 }
 0xce1   : > { %v3191_v55 = vpop.f32.mrb[19].mxu0  ;;  %v3282_v2 = vpop.f32.mrb[18].mxu1 }
 0xce2   : > { %v3284_v37 = vpop.f32.mrb[19].mxu1  ;;  %v7644_v47 = vpop.permute.xlu1 %3511 }
 0xce3   : > { %3418 = vrot.lane.b32.xlu1 %v3278_v23, %s5626_s28  ;;  %v7646_v23 = vpop.permute.xlu0 %3516 }
 0xce4   : > { %3422 = vrot.lane.b32.xlu0 %v3189_v19, %s5626_s28 }
 0xce6   : > { %v3195_v61 = vpop.f32.mrb[20].mxu0 }
 0xce7   : > { %3420 = vrot.lane.b32.xlu1 %v3280_v60, %s5626_s28  ;;  %v3197_v7 = vpop.f32.mrb[21].mxu0  ;;  %v3288_v25 = vpop.f32.mrb[20].mxu1 }
 0xce8   : > { %3426 = vrot.lane.b32.xlu0 %v3282_v2, %s5626_s28  ;;  %v3199_v53 = vpop.f32.mrb[22].mxu0  ;;  %v3290_v46 = vpop.f32.mrb[21].mxu1 }
 0xce9   : > { %v3201_v0 = vpop.f32.mrb[23].mxu0  ;;  %v3292_v58 = vpop.f32.mrb[22].mxu1 }
 0xcea   : > { %v3294_v44 = vpop.f32.mrb[23].mxu1 }
 0xceb   : > { %3424 = vrot.lane.b32.xlu1 %v3191_v55, %s5626_s28 }
 0xcec   : > { %3428 = vrot.lane.b32.xlu0 %v3284_v37, %s5626_s28 }
 0xcef   : > { %3430 = vrot.lane.b32.xlu1 %v3195_v61, %s5626_s28 }
 0xcf0   : > { %3432 = vrot.lane.b32.xlu0 %v3197_v7, %s5626_s28 }
 0xcf3   : > { %3434 = vrot.lane.b32.xlu1 %v3288_v25, %s5626_s28 }
 0xcf4   : > { %3438 = vrot.lane.b32.xlu0 %v3199_v53, %s5626_s28 }
 0xcf7   : > { %3440 = vrot.lane.b32.xlu1 %v3201_v0, %s5626_s28 }
 0xcf8   : > { %3442 = vrot.lane.b32.xlu0 %v3292_v58, %s5626_s28 }
 0xcfb   : > { %3436 = vrot.lane.b32.xlu1 %v3290_v46, %s5626_s28 }
 0xcfc   : > { %3444 = vrot.lane.b32.xlu0 %v3294_v44, %s5626_s28 }
 0xd31   : > { %v3326_v63 = vpop.permute.xlu1 %3325 }
 0xd32   : > { %v3328_v60 = vpop.permute.xlu0 %3327 }
 0xd33   : > { %v3350_v20 = vsel %vm1124_vm3, %v3326_v63, %v3328_v60 }
 0xd34   : > { %v3383_v1 = vadd.f32 %v3350_v20, %v7591_v22 }
 0xd35   : > { %v3330_v19 = vpop.permute.xlu1 %3329 }
 0xd36   : > { %v3336_v55 = vpop.permute.xlu0 %3335  ;;  %v3351_v51 = vsel %vm1124_vm3, %v3328_v60, %v3330_v19 }
 0xd37   : > { %v3384_v48 = vadd.f32 %v3351_v51, %v7588_v27 }
 0xd39   : > { %v3302_v2 = vpop.permute.xlu1 %3301 }
 0xd3a   : > { %v3304_v37 = vpop.permute.xlu0 %3303  ;;  %v3378_v49 = vsel %vm1124_vm3, %v3302_v2, %v3326_v63  ;;  %v3352_v14 = vsel %vm1124_vm3, %v3330_v19, %v3302_v2 }
 0xd3b   : > { %v3382_v24 = vadd.f32 %v3378_v49, %v7586_v6  ;;  %v3385_v49 = vadd.f32 %v3352_v14, %v7593_v33  ;;  %v3355_v6 = vsel %vm1124_vm3, %v3336_v55, %v3304_v37 }
 0xd3d   : > { %v3332_v61 = vpop.permute.xlu1 %3331 }
 0xd3e   : > { %v3334_v7 = vpop.permute.xlu0 %3333 }
 0xd3f   : > { %v3353_v22 = vsel %vm1124_vm3, %v3332_v61, %v3334_v7  ;;  %v3354_v60 = vsel %vm1124_vm3, %v3334_v7, %v3336_v55 }
 0xd40   : > { %v3387_v33 = vadd.f32 %v3353_v22, %v7598_v3  ;;  %v3388_v55 = vadd.f32 %v3354_v60, %v7600_v54 }
 0xd41   : > { %v7648_v25 = vpop.permute.xlu1 %3337 }
 0xd42   : > { %v7650_v53 = vpop.permute.xlu0 %3339 }
 0xd45   : > { %v7652_v46 = vpop.permute.xlu1 %3341 }
 0xd46   : > { %v7654_v0 = vpop.permute.xlu0 %3347 }
 0xd49   : > { %v7656_v58 = vpop.permute.xlu1 %3305 }
 0xd4a   : > { %v7658_v44 = vpop.permute.xlu0 %3307 }
 0xd4d   : > { %v7660_v56 = vpop.permute.xlu1 %3343 }
 0xd4e   : > { %v7662_v34 = vpop.permute.xlu0 %3345 }
 0xd51   : > { %v3415_v39 = vpop.permute.xlu1 %3414 }
 0xd52   : > { %v3417_v12 = vpop.permute.xlu0 %3416 }
 0xd53   : > { %v3447_v5 = vsel %vm1423_vm6, %v3415_v39, %v3417_v12 }
 0xd54   : > { %v3483_v9 = vadd.f32 %v3447_v5, %v3382_v24  ;;  %v3379_v5 = vsel %vm1124_vm3, %v3304_v37, %v3332_v61  ;;  %v3380_v37 = vsel %vm1124_vm3, %v7656_v58, %v7648_v25 }
 0xd55   : > { %v3419_v50 = vpop.permute.xlu1 %3418  ;;  %v3386_v27 = vadd.f32 %v3379_v5, %v7596_v30 }
 0xd56   : > { %v3448_v10 = vsel %vm1423_vm6, %v3417_v12, %v3419_v50  ;;  %v3423_v35 = vpop.permute.xlu0 %3422  ;;  %v3519_v63 = vadd.f32 %v3502_v32, %v3483_v9  ;;  %v3389_v9 = vadd.f32 %v3355_v6, %v7602_v43 }
 0xd57   : > { %v3484_v4 = vadd.f32 %v3448_v10, %v3383_v1 }
 0xd59   : > { %v3520_v24 = vadd.f32 %v3502_v32, %v3484_v4  ;;  %v3421_v20 = vpop.permute.xlu1 %3420  ;;  %v7686_v4 = vmul.f32 %v3519_v63, %v8548_v13 }
 0xd5a   : > { %v3449_v19 = vsel %vm1423_vm6, %v3419_v50, %v3421_v20  ;;  %v3479_v12 = vsel %vm1423_vm6, %v3421_v20, %v3415_v39  ;;  %v3427_v10 = vpop.permute.xlu0 %3426 }
 0xd5b   : > { %v7681_v51 = vmul.f32 %v3520_v24, %v5767_v41  ;;  %v3485_v1 = vadd.f32 %v3449_v19, %v3384_v48  ;;  %v3486_v14 = vadd.f32 %v3479_v12, %v3385_v49  ;;  %v3356_v19 = vsel %vm1124_vm3, %v7648_v25, %v7650_v53 }
 0xd5c   : > { %v3390_v12 = vadd.f32 %v3380_v37, %v7606_v31  ;;  %v3391_v31 = vadd.f32 %v3356_v19, %v7611_v21 }
 0xd5d   : > { %v3521_v50 = vadd.f32 %v3502_v32, %v3485_v1  ;;  %v3425_v2 = vpop.permute.xlu1 %3424  ;;  %v3522_v39 = vadd.f32 %v3502_v32, %v3486_v14  ;;  %v3551_v30 = vadd.f32 %v7681_v51, %v7686_v4 }
 0xd5e   : > { %v3450_v48 = vsel %vm1423_vm6, %v3423_v35, %v3425_v2  ;;  %v3451_v43 = vsel %vm1423_vm6, %v3425_v2, %v3427_v10  ;;  %v3429_v61 = vpop.permute.xlu0 %3428 }
 0xd5f   : > { %v7698_v7 = vmul.f32 %v3521_v50, %v8549_v59  ;;  %v3487_v3 = vadd.f32 %v3450_v48, %v3386_v27  ;;  %v3488_v54 = vadd.f32 %v3451_v43, %v3387_v33  ;;  %v3452_v63 = vsel %vm1423_vm6, %v3427_v10, %v3429_v61 }
 0xd60   : > { %v3480_v32 = vsel %vm1423_vm6, %v3429_v61, %v3423_v35  ;;  %v3489_v49 = vadd.f32 %v3452_v63, %v3388_v55  ;;  %v7703_v6 = vmul.f32 %v3522_v39, %v8550_v57  ;;  %v3381_v39 = vsel %vm1124_vm3, %v7658_v44, %v7660_v56 }
 0xd61   : > { %v3523_v5 = vadd.f32 %v7642_v45, %v3487_v3  ;;  %v3524_v24 = vadd.f32 %v7642_v45, %v3488_v54  ;;  %v3490_v20 = vadd.f32 %v3480_v32, %v3389_v9  ;;  %v3431_v22 = vpop.permute.xlu1 %3430  ;;  %v3552_v60 = vadd.f32 %v3551_v30, %v7698_v7 }
 0xd62   : > { %v3525_v35 = vadd.f32 %v7642_v45, %v3489_v49  ;;  %v3433_v10 = vpop.permute.xlu0 %3432  ;;  %v3357_v3 = vsel %vm1124_vm3, %v7650_v53, %v7652_v46  ;;  %v3394_v54 = vadd.f32 %v3381_v39, %v7616_v29  ;;  %v3360_v29 = vsel %vm1124_vm3, %v7662_v34, %v7654_v0 }
 0xd63   : > { %v7714_v1 = vmul.f32 %v3523_v5, %v8548_v13  ;;  %v7717_v14 = vmul.f32 %v3524_v24, %v5767_v41  ;;  %v3453_v9 = vsel %vm1423_vm6, %v3431_v22, %v3433_v10  ;;  %v3553_v27 = vadd.f32 %v3552_v60, %v7703_v6 }
 0xd64   : > { %v7722_v33 = vmul.f32 %v3525_v35, %v8549_v59  ;;  %v3491_v55 = vadd.f32 %v3453_v9, %v3390_v12  ;;  %v3526_v25 = vadd.f32 %v7642_v45, %v3490_v20  ;;  %v3359_v45 = vsel %vm1124_vm3, %v7660_v56, %v7662_v34 }
 0xd65   : > { %3554 = vadd.xlane.f32.xlu1 %v3553_v27  ;;  %v3435_v50 = vpop.permute.xlu1 %3434  ;;  %v3556_v2 = vadd.f32 %v7717_v14, %v7714_v1  ;;  %v3358_v56 = vsel %vm1124_vm3, %v7652_v46, %v7656_v58  ;;  %v3361_v5 = vsel %vm1124_vm3, %v7654_v0, %v7658_v44  ;;  %v3395_v24 = vadd.f32 %v3359_v45, %v7618_v26 }
 0xd66   : > { %v3527_v37 = vadd.f32 %v7644_v47, %v3491_v55  ;;  %v3454_v48 = vsel %vm1423_vm6, %v3433_v10, %v3435_v50  ;;  %v3439_v43 = vpop.permute.xlu0 %3438  ;;  %v7737_v21 = vmul.f32 %v3526_v25, %v8550_v57  ;;  %v3392_v46 = vadd.f32 %v3357_v3, %v7608_v38 }
 0xd67   : > { %v3492_v61 = vadd.f32 %v3454_v48, %v3391_v31  ;;  %v3557_v30 = vadd.f32 %v3556_v2, %v7722_v33  ;;  %v3393_v58 = vadd.f32 %v3358_v56, %v7613_v16  ;;  %v3397_v44 = vadd.f32 %v3361_v5, %v7622_v28 }
 0xd68   : > { %v3396_v10 = vadd.f32 %v3360_v29, %v7620_v40 }
 0xd69   : > { %v3528_v63 = vadd.f32 %v7644_v47, %v3492_v61  ;;  %v3441_v32 = vpop.permute.xlu1 %3440  ;;  %v3558_v49 = vadd.f32 %v3557_v30, %v7737_v21 }
 0xd6a   : > { %v3456_v20 = vsel %vm1423_vm6, %v3439_v43, %v3441_v32  ;;  %v3443_v53 = vpop.permute.xlu0 %3442 }
 0xd6b   : > { %v3495_v60 = vadd.f32 %v3456_v20, %v3394_v54  ;;  %v3457_v19 = vsel %vm1423_vm6, %v3441_v32, %v3443_v53  ;;  %3559 = vadd.xlane.f32.xlu0 %v3558_v49  ;;  %v7767_v55 = vmul.f32 %v3528_v63, %v5767_v41 }
 0xd6c   : > { %v3496_v12 = vadd.f32 %v3457_v19, %v3395_v24 }
 0xd6d   : > { %v3531_v26 = vadd.f32 %v7646_v23, %v3495_v60  ;;  %v3437_v35 = vpop.permute.xlu1 %3436 }
 0xd6e   : > { %v3532_v9 = vadd.f32 %v7646_v23, %v3496_v12  ;;  %v3455_v34 = vsel %vm1423_vm6, %v3435_v50, %v3437_v35  ;;  %v3481_v0 = vsel %vm1423_vm6, %v3437_v35, %v3431_v22  ;;  %v3445_v27 = vpop.permute.xlu0 %3444  ;;  %v7778_v50 = vmul.f32 %v3527_v37, %v8548_v13 }
 0xd6f   : > { %v3493_v38 = vadd.f32 %v3455_v34, %v3392_v46  ;;  %v3494_v25 = vadd.f32 %v3481_v0, %v3393_v58  ;;  %v3458_v16 = vsel %vm1423_vm6, %v3443_v53, %v3445_v27  ;;  %v7771_v28 = vmul.f32 %v3531_v26, %v8548_v13 }
 0xd70   : > { %v7774_v31 = vmul.f32 %v3532_v9, %v5767_v41  ;;  %v3482_v40 = vsel %vm1423_vm6, %v3445_v27, %v3439_v43  ;;  %v3497_v2 = vadd.f32 %v3458_v16, %v3396_v10  ;;  %v3561_v30 = vadd.f32 %v7767_v55, %v7778_v50 }
 0xd71   : > { %v3529_v22 = vadd.f32 %v7644_v47, %v3493_v38  ;;  %v3498_v39 = vadd.f32 %v3482_v40, %v3397_v44  ;;  %v3530_v48 = vadd.f32 %v7644_v47, %v3494_v25 }
 0xd72   : > { %v3533_v45 = vadd.f32 %v7646_v23, %v3497_v2  ;;  %v3566_v37 = vadd.f32 %v7774_v31, %v7771_v28 }
 0xd73   : > { %v7784_v61 = vmul.f32 %v3529_v22, %v8549_v59  ;;  %v3534_v3 = vadd.f32 %v7646_v23, %v3498_v39  ;;  %v7795_v54 = vmul.f32 %v3530_v48, %v8550_v57 }
 0xd74   : > { %v7790_v43 = vmul.f32 %v3533_v45, %v8549_v59 }
 0xd75   : > { %v3562_v47 = vadd.f32 %v3561_v30, %v7784_v61  ;;  %v7799_v63 = vmul.f32 %v3534_v3, %v8550_v57 }
 0xd76   : > { %v3567_v32 = vadd.f32 %v3566_v37, %v7790_v43 }
 0xd77   : > { %v3563_v49 = vadd.f32 %v3562_v47, %v7795_v54 }
 0xd78   : > { %v3568_v23 = vadd.f32 %v3567_v32, %v7799_v63 }
 0xd79   : > { %3564 = vadd.xlane.f32.xlu0 %v3563_v49 }
 0xd7a   : > { %3569 = vadd.xlane.f32.xlu1 %v3568_v23 }
 0xdf2   : > { %v3555_v56 = vpop.xlane.xlu1 %3554 }
 0xdf3   : > { %v3571_v5 = vmul.f32 0.00390625, %v3555_v56 }
 0xdf5   : > { %v3575_v24 = vsub.f32 %v7686_v4, %v3571_v5  ;;  %v3576_v20 = vsub.f32 %v7681_v51, %v3571_v5  ;;  %v3577_v53 = vsub.f32 %v7698_v7, %v3571_v5  ;;  %v3578_v29 = vsub.f32 %v7703_v6, %v3571_v5 }
 0xdf7   : > { %v7809_v60 = vmul.f32 %v3575_v24, %v8548_v13  ;;  %v7812_v19 = vmul.f32 %v3576_v20, %v5767_v41  ;;  %v7815_v12 = vmul.f32 %v3577_v53, %v8549_v59  ;;  %v7818_v58 = vmul.f32 %v3578_v29, %v8550_v57 }
 0xdf8   : > { %v3560_v46 = vpop.xlane.xlu0 %3559 }
 0xdf9   : > { %v3572_v4 = vmul.f32 0.00390625, %v3560_v46  ;;  %v3607_v51 = vmul.f32 %v7809_v60, %v7809_v60  ;;  %v3608_v7 = vmul.f32 %v7812_v19, %v7812_v19  ;;  %v3609_v6 = vmul.f32 %v7815_v12, %v7815_v12 }
 0xdfa   : > { %v3610_v9 = vmul.f32 %v7818_v58, %v7818_v58 }
 0xdfb   : > { %v3579_v44 = vsub.f32 %v7714_v1, %v3572_v4  ;;  %v3580_v26 = vsub.f32 %v7717_v14, %v3572_v4  ;;  %v3623_v35 = vadd.f32 %v3608_v7, %v3607_v51  ;;  %v3581_v10 = vsub.f32 %v7722_v33, %v3572_v4 }
 0xdfc   : > { %v3582_v34 = vsub.f32 %v7737_v21, %v3572_v4 }
 0xdfd   : > { %v7833_v0 = vmul.f32 %v3579_v44, %v8548_v13  ;;  %v7836_v27 = vmul.f32 %v3580_v26, %v5767_v41  ;;  %v3624_v38 = vadd.f32 %v3623_v35, %v3609_v6  ;;  %v7839_v25 = vmul.f32 %v3581_v10, %v8549_v59 }
 0xdfe   : > { %v7842_v14 = vmul.f32 %v3582_v34, %v8550_v57 }
 0xdff   : > { %v3625_v1 = vadd.f32 %v3624_v38, %v3610_v9  ;;  %v3611_v33 = vmul.f32 %v7833_v0, %v7833_v0  ;;  %v3612_v21 = vmul.f32 %v7836_v27, %v7836_v27  ;;  %v3613_v16 = vmul.f32 %v7839_v25, %v7839_v25  ;;  %v4871_v38 = vld [vmem:[%s7483_s5 + $0x120] sm:$0xff] }
 0xe00   : > { %v3614_v2 = vmul.f32 %v7842_v14, %v7842_v14 }
 0xe01   : > { %3626 = vadd.xlane.f32.xlu0 %v3625_v1  ;;  %v3628_v40 = vadd.f32 %v3612_v21, %v3611_v33  ;;  %v4872_v1 = vld [vmem:[%s7483_s5 + $0x128] sm:$0xff] }
 0xe03   : > { %v3629_v22 = vadd.f32 %v3628_v40, %v3613_v16 }
 0xe05   : > { %v3630_v39 = vadd.f32 %v3629_v22, %v3614_v2 }
 0xe06   : > { %v3565_v48 = vpop.xlane.xlu0 %3564 }
 0xe07   : > { %v3573_v45 = vmul.f32 0.00390625, %v3565_v48  ;;  %3631 = vadd.xlane.f32.xlu1 %v3630_v39  ;;  %v3570_v30 = vpop.xlane.xlu1 %3569  ;;  %v4862_v39 = vld [vmem:[%s7499_s24 + $0x120] sm:$0xff] }
 0xe08   : > { %v3574_v3 = vmul.f32 0.00390625, %v3570_v30  ;;  %v4863_v30 = vld [vmem:[%s7499_s24 + $0x128] sm:$0xff] }
 0xe09   : > { %v3583_v37 = vsub.f32 %v7778_v50, %v3573_v45  ;;  %v3584_v47 = vsub.f32 %v7767_v55, %v3573_v45  ;;  %v3585_v32 = vsub.f32 %v7784_v61, %v3573_v45  ;;  %v3586_v49 = vsub.f32 %v7795_v54, %v3573_v45 }
 0xe0a   : > { %v3587_v23 = vsub.f32 %v7771_v28, %v3574_v3  ;;  %v3588_v56 = vsub.f32 %v7774_v31, %v3574_v3  ;;  %v3589_v5 = vsub.f32 %v7790_v43, %v3574_v3  ;;  %v3590_v24 = vsub.f32 %v7799_v63, %v3574_v3 }
 0xe0b   : > { %v7861_v20 = vmul.f32 %v3583_v37, %v8548_v13  ;;  %v7864_v53 = vmul.f32 %v3584_v47, %v5767_v41  ;;  %v7867_v55 = vmul.f32 %v3585_v32, %v8549_v59  ;;  %v7879_v61 = vmul.f32 %v3586_v49, %v8550_v57 }
 0xe0c   : > { %v7870_v50 = vmul.f32 %v3587_v23, %v8548_v13  ;;  %v7873_v28 = vmul.f32 %v3588_v56, %v5767_v41  ;;  %v7876_v31 = vmul.f32 %v3589_v5, %v8549_v59  ;;  %v7886_v63 = vmul.f32 %v3590_v24, %v8550_v57  ;;  %v4864_v24 = vld [vmem:[%s7499_s24 + $0x130] sm:$0xff] }
 0xe0d   : > { %v3615_v43 = vmul.f32 %v7861_v20, %v7861_v20  ;;  %v3616_v54 = vmul.f32 %v7864_v53, %v7864_v53  ;;  %v3617_v4 = vmul.f32 %v7867_v55, %v7867_v55  ;;  %v3618_v44 = vmul.f32 %v7879_v61, %v7879_v61 }
 0xe0e   : > { %v3619_v29 = vmul.f32 %v7870_v50, %v7870_v50  ;;  %v3620_v46 = vmul.f32 %v7873_v28, %v7873_v28  ;;  %v3621_v7 = vmul.f32 %v7876_v31, %v7876_v31  ;;  %v3622_v35 = vmul.f32 %v7886_v63, %v7886_v63 }
 0xe0f   : > { %v3633_v51 = vadd.f32 %v3616_v54, %v3615_v43  ;;  %v4865_v43 = vld [vmem:[%s7499_s24 + $0x138] sm:$0xff] }
 0xe10   : > { %v3638_v6 = vadd.f32 %v3620_v46, %v3619_v29 }
 0xe11   : > { %v3634_v26 = vadd.f32 %v3633_v51, %v3617_v4  ;;  %v4873_v51 = vld [vmem:[%s7483_s5 + $0x130] sm:$0xff] }
 0xe12   : > { %v3639_v10 = vadd.f32 %v3638_v6, %v3621_v7  ;;  %v4874_v7 = vld [vmem:[%s7483_s5 + $0x138] sm:$0xff]  ;;  %v4880_v6 = vld [vmem:[%s7506_s26 + $0x120] sm:$0xff] }
 0xe13   : > { %v3635_v9 = vadd.f32 %v3634_v26, %v3618_v44  ;;  %v4881_v44 = vld [vmem:[%s7506_s26 + $0x128] sm:$0xff]  ;;  %v4882_v26 = vld [vmem:[%s7506_s26 + $0x130] sm:$0xff] }
 0xe14   : > { %v3640_v34 = vadd.f32 %v3639_v10, %v3622_v35  ;;  %v4883_v35 = vld [vmem:[%s7506_s26 + $0x138] sm:$0xff] }
 0xe15   : > { %3636 = vadd.xlane.f32.xlu0 %v3635_v9 }
 0xe16   : > { %3641 = vadd.xlane.f32.xlu1 %v3640_v34 }
 0xe27   : > { %3697 = vperm.xlu1 %5288, %v4871_v38  }
 0xe2b   : > { %3702 = vperm.xlu0 %5287, %v4872_v1  }
 0xe8e   : > { %v3627_v33 = vpop.xlane.xlu0 %3626 }
 0xe8f   : > { %v3643_v21 = vmul.f32 0.00390625, %v3627_v33 }
 0xe91   : > { %v3647_v16 = vadd.f32 1e-05, %v3643_v21 }
 0xe93   : > { %5309 = vrsqrt.f32 %v3647_v16 }
 0xe94   : > { %v3632_v40 = vpop.xlane.xlu1 %3631 }
 0xe95   : > { %v3644_v2 = vmul.f32 0.00390625, %v3632_v40 }
 0xe97   : > { %v3648_v22 = vadd.f32 1e-05, %v3644_v2 }
 0xe99   : > { %5311 = vrsqrt.f32 %v3648_v22 }
 0xe9d   : > { %v5310_v48 = vpop.eup %5309 }
 0xe9e   : > { %v3655_v45 = vmul.f32 %v5310_v48, %v4862_v39 }
 0xea0   : > { %3661 = vperm.xlu0 %5287, %v3655_v45  }
 0xea2   : > { %v3637_v3 = vpop.xlane.xlu0 %3636 }
 0xea3   : > { %v5312_v37 = vpop.eup %5311  ;;  %v3645_v47 = vmul.f32 0.00390625, %v3637_v3  ;;  %v3642_v32 = vpop.xlane.xlu1 %3641 }
 0xea4   : > { %v3646_v49 = vmul.f32 0.00390625, %v3642_v32  ;;  %v3656_v23 = vmul.f32 %v5312_v37, %v4863_v30 }
 0xea5   : > { %v3649_v56 = vadd.f32 1e-05, %v3645_v47 }
 0xea6   : > { %v3650_v5 = vadd.f32 1e-05, %v3646_v49  ;;  %3666 = vperm.xlu1 %5288, %v3656_v23  }
 0xea7   : > { %5313 = vrsqrt.f32 %v3649_v56  ;;  %v3698_v1 = vpop.permute.xlu1 %3697 }
 0xea8   : > { %5315 = vrsqrt.f32 %v3650_v5 }
 0xeaa   : > { %v3703_v10 = vpop.permute.xlu0 %3702 }
 0xeb1   : > { %v5314_v54 = vpop.eup %5313 }
 0xeb2   : > { %v5316_v29 = vpop.eup %5315  ;;  %v3657_v46 = vmul.f32 %v5314_v54, %v4864_v24 }
 0xeb3   : > { %v3658_v4 = vmul.f32 %v5316_v29, %v4865_v43 }
 0xeb4   : > { %3671 = vperm.xlu1 %5288, %v3657_v46  }
 0xeb5   : > { %3676 = vperm.xlu0 %5287, %v3658_v4  }
 0xeb8   : > { %3707 = vperm.xlu1 %5288, %v4873_v51  }
 0xeb9   : > { %3712 = vperm.xlu0 %5287, %v4874_v7  }
 0xebc   : > { %4223 = vperm.xlu1 %5288, %v4880_v6  }
 0xebd   : > { %4228 = vperm.xlu0 %5287, %v4881_v44  }
 0xec0   : > { %4233 = vperm.xlu1 %5288, %v4882_v26  }
 0xec1   : > { %4238 = vperm.xlu0 %5287, %v4883_v35  }
 0xf1f   : > { %v3662_v9 = vpop.permute.xlu0 %3661 }
 0xf20   : > { %v3679_v34 = vmul.f32 %v3662_v9, %v7809_v60  ;;  %v3680_v38 = vmul.f32 %v3662_v9, %v7812_v19  ;;  %v3681_v33 = vmul.f32 %v3662_v9, %v7815_v12  ;;  %v3682_v21 = vmul.f32 %v3662_v9, %v7818_v58 }
 0xf22   : > { %v3715_v16 = vadd.f32 %v3698_v1, %v3679_v34  ;;  %v3716_v40 = vadd.f32 %v3698_v1, %v3680_v38  ;;  %v3717_v2 = vadd.f32 %v3698_v1, %v3681_v33  ;;  %v3718_v39 = vadd.f32 %v3698_v1, %v3682_v21 }
 0xf24   : > { %v3731_v3 = vmax.f32 %v3715_v16, 0.0  ;;  %v3732_v47 = vmax.f32 %v3716_v40, 0.0  ;;  %v3733_v12 = vmax.f32 %v3717_v2, 0.0  ;;  %v3734_v49 = vmax.f32 %v3718_v39, 0.0 }
 0xf25   : > { %v3667_v22 = vpop.permute.xlu1 %3666 }
 0xf26   : > { %v3683_v48 = vmul.f32 %v3667_v22, %v7833_v0  ;;  %v3684_v45 = vmul.f32 %v3667_v22, %v7836_v27  ;;  %v3685_v30 = vmul.f32 %v3667_v22, %v7839_v25  ;;  %v3686_v60 = vmul.f32 %v3667_v22, %v7842_v14 }
 0xf27   : > { %v3747_v0 = vmul.f32 %v3731_v3, %v8548_v13  ;;  %v3748_v25 = vmul.f32 %v3732_v47, %v5767_v41  ;;  %v3749_v43 = vmul.f32 %v3733_v12, %v8549_v59  ;;  %v3750_v29 = vmul.f32 %v3734_v49, %v8550_v57 }
 0xf28   : > { %v3719_v19 = vadd.f32 %v3703_v10, %v3683_v48  ;;  %v3720_v37 = vadd.f32 %v3703_v10, %v3684_v45  ;;  %v3721_v32 = vadd.f32 %v3703_v10, %v3685_v30  ;;  %v3722_v58 = vadd.f32 %v3703_v10, %v3686_v60 }
 0xf2a   : > { %v3735_v23 = vmax.f32 %v3719_v19, 0.0  ;;  %v3736_v56 = vmax.f32 %v3720_v37, 0.0  ;;  %v3737_v5 = vmax.f32 %v3721_v32, 0.0  ;;  %v3738_v24 = vmax.f32 %v3722_v58, 0.0 }
 0xf2c   : > { %v3751_v27 = vmul.f32 %v3735_v23, %v8548_v13  ;;  %v3752_v14 = vmul.f32 %v3736_v56, %v5767_v41  ;;  %v3753_v54 = vmul.f32 %v3737_v5, %v8549_v59  ;;  %v3754_v46 = vmul.f32 %v3738_v24, %v8550_v57 }
 0xf2e   : > { %v3780_v4 = vpack.c.bf16 %v3752_v14, %v3748_v25  ;;  %v3779_v51 = vpack.c.bf16 %v3751_v27, %v3747_v0  ;;  %v3782_v7 = vpack.c.bf16 %v3754_v46, %v3750_v29  ;;  %v3781_v6 = vpack.c.bf16 %v3753_v54, %v3749_v43  ;;  %v5295_v27 = vld [vmem:[%s7488_s2 + $0x30] sm:$0xff]   ;;  %v5296_v25 = vld [vmem:[%s7488_s2 + $0x38] sm:$0xff]   ;;  %v5297_v14 = vld [vmem:[%s7488_s2 + $0x40] sm:$0xff]  }
 0xf2f   : > { %v5298_v43 = vld [vmem:[%s7488_s2 + $0x48] sm:$0xff]   ;;  %v5299_v54 = vld [vmem:[%s7488_s2 + $0x50] sm:$0xff]   ;;  %v5300_v29 = vld [vmem:[%s7488_s2 + $0x58] sm:$0xff]  }
 0xf30   : > { %3835 = vmatprep.subr.bf16.mxu0 %v3780_v4  ;;  %3928 = vmatprep.subr.bf16.mxu1 %v3782_v7 }
 0xf31   : > { %3836 = vmatpush1.bf16.msra.mxu0 %v3779_v51  ;;  %3929 = vmatpush1.bf16.msra.mxu1 %v3781_v6 }
 0xf33   : > { %v3672_v44 = vpop.permute.xlu1 %3671 }
 0xf34   : > { %v3677_v26 = vpop.permute.xlu0 %3676  ;;  %v3687_v35 = vmul.f32 %v3672_v44, %v7861_v20  ;;  %v3688_v10 = vmul.f32 %v3672_v44, %v7864_v53  ;;  %v3689_v9 = vmul.f32 %v3672_v44, %v7867_v55  ;;  %v3690_v34 = vmul.f32 %v3672_v44, %v7879_v61 }
 0xf35   : > { %v3691_v38 = vmul.f32 %v3677_v26, %v7870_v50  ;;  %v3692_v1 = vmul.f32 %v3677_v26, %v7873_v28  ;;  %v3693_v33 = vmul.f32 %v3677_v26, %v7876_v31  ;;  %v3694_v21 = vmul.f32 %v3677_v26, %v7886_v63 }
 0xf37   : > { %v3708_v16 = vpop.permute.xlu1 %3707 }
 0xf38   : > { %v3723_v40 = vadd.f32 %v3708_v16, %v3687_v35  ;;  %v3724_v2 = vadd.f32 %v3708_v16, %v3688_v10  ;;  %v3725_v22 = vadd.f32 %v3708_v16, %v3689_v9  ;;  %v3726_v39 = vadd.f32 %v3708_v16, %v3690_v34  ;;  %v3713_v20 = vpop.permute.xlu0 %3712 }
 0xf39   : > { %v3727_v48 = vadd.f32 %v3713_v20, %v3691_v38  ;;  %v3728_v53 = vadd.f32 %v3713_v20, %v3692_v1  ;;  %v3729_v45 = vadd.f32 %v3713_v20, %v3693_v33  ;;  %v3730_v55 = vadd.f32 %v3713_v20, %v3694_v21 }
 0xf3a   : > { %v3739_v30 = vmax.f32 %v3723_v40, 0.0  ;;  %v3740_v61 = vmax.f32 %v3724_v2, 0.0  ;;  %v3741_v60 = vmax.f32 %v3725_v22, 0.0  ;;  %v3742_v50 = vmax.f32 %v3726_v39, 0.0 }
 0xf3b   : > { %v3743_v3 = vmax.f32 %v3727_v48, 0.0  ;;  %v3744_v28 = vmax.f32 %v3728_v53, 0.0  ;;  %v3745_v19 = vmax.f32 %v3729_v45, 0.0  ;;  %v3746_v31 = vmax.f32 %v3730_v55, 0.0 }
 0xf3c   : > { %v3755_v63 = vmul.f32 %v3739_v30, %v8548_v13  ;;  %v3757_v37 = vmul.f32 %v3741_v60, %v8549_v59  ;;  %v3756_v47 = vmul.f32 %v3740_v61, %v5767_v41  ;;  %v3758_v12 = vmul.f32 %v3742_v50, %v8550_v57 }
 0xf3d   : > { %v3759_v32 = vmul.f32 %v3743_v3, %v8548_v13  ;;  %v3761_v58 = vmul.f32 %v3745_v19, %v8549_v59  ;;  %v3760_v49 = vmul.f32 %v3744_v28, %v5767_v41  ;;  %v3762_v23 = vmul.f32 %v3746_v31, %v8550_v57 }
 0xf3f   : > { %v3784_v56 = vpack.c.bf16 %v3760_v49, %v3756_v47  ;;  %v3786_v5 = vpack.c.bf16 %v3762_v23, %v3758_v12  ;;  %v3783_v24 = vpack.c.bf16 %v3759_v32, %v3755_v63  ;;  %v3785_v0 = vpack.c.bf16 %v3761_v58, %v3757_v37 }
 0xf41   : > { %3837 = vmatprep.subr.bf16.mxu0 %v3784_v56  ;;  %3930 = vmatprep.subr.bf16.mxu1 %v3786_v5 }
 0xf42   : > { %3838 = vmatpush1.bf16.msra.mxu0 %v3783_v24  ;;  %3931 = vmatpush1.bf16.msra.mxu1 %v3785_v0 }
 0xf45   : > { %4925 = vmatmul.mubr.msk.bf16.vlgmr.msra.gmra.mrb[24].mxu0 %vm319_vm2, %v5295_v27  ;;  %4931 = vmatmul.mubr.msk.bf16.vlgmr.msra.gmra.mrb[24].mxu1 %vm319_vm2, %v5295_v27 }
 0xf46   : > { %3877 = vmatprep.mubr.bf16.mxu0 %v8551_v52  ;;  %3970 = vmatprep.mubr.bf16.mxu1 %v8551_v52 }
 0xf4d   : > { %4926 = vmatmul.mubr.msk.bf16.gmra.mrb[28].mxu0 %vm319_vm2, %v5296_v25  ;;  %4932 = vmatmul.mubr.msk.bf16.gmra.mrb[28].mxu1 %vm319_vm2, %v5296_v25 }
 0xf4e   : > { %3887 = vmatprep.mubr.bf16.mxu0 %v8551_v52  ;;  %3980 = vmatprep.mubr.bf16.mxu1 %v8551_v52 }
 0xf55   : > { %4927 = vmatmul.mubr.msk.bf16.gmra.mrb[32].mxu0 %vm319_vm2, %v5297_v14  ;;  %4933 = vmatmul.mubr.msk.bf16.gmra.mrb[32].mxu1 %vm319_vm2, %v5297_v14  ;;  %v4224_v14 = vpop.permute.xlu1 %4223 }
 0xf56   : > { %3897 = vmatprep.mubr.bf16.mxu0 %v8551_v52  ;;  %3990 = vmatprep.mubr.bf16.mxu1 %v8551_v52 }
 0xf5d   : > { %4928 = vmatmul.mubr.msk.bf16.gmra.mrb[36].mxu0 %vm319_vm2, %v5298_v43  ;;  %4934 = vmatmul.mubr.msk.bf16.gmra.mrb[36].mxu1 %vm319_vm2, %v5298_v43  ;;  %v8036_v43 = vpop.permute.xlu0 %4228 }
 0xf5e   : > { %3907 = vmatprep.mubr.bf16.mxu0 %v8551_v52  ;;  %4000 = vmatprep.mubr.bf16.mxu1 %v8551_v52 }
 0xf65   : > { %4929 = vmatmul.mubr.msk.bf16.gmra.mrb[40].mxu0 %vm319_vm2, %v5299_v54  ;;  %4935 = vmatmul.mubr.msk.bf16.gmra.mrb[40].mxu1 %vm319_vm2, %v5299_v54  ;;  %v8038_v54 = vpop.permute.xlu1 %4233 }
 0xf66   : > { %3917 = vmatprep.mubr.bf16.mxu0 %v8551_v52  ;;  %4010 = vmatprep.mubr.bf16.mxu1 %v8551_v52 }
 0xf6d   : > { %4930 = vmatmul.mubr.msk.bf16.gmra.mrb[44].mxu0 %vm319_vm2, %v5300_v29  ;;  %4936 = vmatmul.mubr.msk.bf16.gmra.mrb[44].mxu1 %vm319_vm2, %v5300_v29  ;;  %v8040_v29 = vpop.permute.xlu0 %4238 }
0x1018   : > { %v3869_v46 = vpop.f32.mrb[24].mxu0  ;;  %v3962_v4 = vpop.f32.mrb[24].mxu1 }
0x1019   : > { %4049 = vrot.lane.b32.xlu1 %v3869_v46, %s5625_s27  ;;  %v3871_v51 = vpop.f32.mrb[25].mxu0  ;;  %v3964_v7 = vpop.f32.mrb[25].mxu1 }
0x101a   : > { %4051 = vrot.lane.b32.xlu0 %v3871_v51, %s5625_s27  ;;  %v3873_v6 = vpop.f32.mrb[26].mxu0  ;;  %v3966_v44 = vpop.f32.mrb[26].mxu1 }
0x101b   : > { %v3875_v26 = vpop.f32.mrb[27].mxu0  ;;  %v3968_v35 = vpop.f32.mrb[27].mxu1 }
0x101d   : > { %4053 = vrot.lane.b32.xlu1 %v3962_v4, %s5625_s27 }
0x101e   : > { %4055 = vrot.lane.b32.xlu0 %v3873_v6, %s5625_s27 }
0x1020   : > { %v3879_v52 = vpop.f32.mrb[28].mxu0  ;;  %v3972_v10 = vpop.f32.mrb[28].mxu1 }
0x1021   : > { %4025 = vrot.lane.b32.xlu1 %v3964_v7, %s5625_s27  ;;  %v3881_v9 = vpop.f32.mrb[29].mxu0  ;;  %v3974_v34 = vpop.f32.mrb[29].mxu1 }
0x1022   : > { %4059 = vrot.lane.b32.xlu0 %v3966_v44, %s5625_s27  ;;  %v3883_v38 = vpop.f32.mrb[30].mxu0  ;;  %v3976_v1 = vpop.f32.mrb[30].mxu1 }
0x1023   : > { %v3885_v33 = vpop.f32.mrb[31].mxu0  ;;  %v3978_v21 = vpop.f32.mrb[31].mxu1 }
0x1025   : > { %4057 = vrot.lane.b32.xlu1 %v3875_v26, %s5625_s27 }
0x1026   : > { %4027 = vrot.lane.b32.xlu0 %v3968_v35, %s5625_s27 }
0x1028   : > { %v7980_v16 = vpop.f32.mrb[32].mxu0  ;;  %v7982_v40 = vpop.f32.mrb[32].mxu1 }
0x1029   : > { %4061 = vrot.lane.b32.xlu1 %v3879_v52, %s5625_s27  ;;  %v7985_v2 = vpop.f32.mrb[33].mxu0  ;;  %v7987_v22 = vpop.f32.mrb[33].mxu1 }
0x102a   : > { %4063 = vrot.lane.b32.xlu0 %v3881_v9, %s5625_s27  ;;  %v7990_v39 = vpop.f32.mrb[34].mxu0  ;;  %v7992_v20 = vpop.f32.mrb[34].mxu1 }
0x102b   : > { %v7994_v48 = vpop.f32.mrb[35].mxu0  ;;  %v7996_v53 = vpop.f32.mrb[35].mxu1 }
0x102d   : > { %4065 = vrot.lane.b32.xlu1 %v3972_v10, %s5625_s27 }
0x102e   : > { %4067 = vrot.lane.b32.xlu0 %v3883_v38, %s5625_s27 }
0x1030   : > { %v8000_v45 = vpop.f32.mrb[36].mxu0  ;;  %v8002_v55 = vpop.f32.mrb[36].mxu1 }
0x1031   : > { %4029 = vrot.lane.b32.xlu1 %v3974_v34, %s5625_s27  ;;  %v8005_v30 = vpop.f32.mrb[37].mxu0  ;;  %v8007_v61 = vpop.f32.mrb[37].mxu1 }
0x1032   : > { %4071 = vrot.lane.b32.xlu0 %v3976_v1, %s5625_s27  ;;  %v8010_v60 = vpop.f32.mrb[38].mxu0  ;;  %v8012_v50 = vpop.f32.mrb[38].mxu1 }
0x1033   : > { %v8014_v3 = vpop.f32.mrb[39].mxu0  ;;  %v8016_v28 = vpop.f32.mrb[39].mxu1 }
0x1035   : > { %4069 = vrot.lane.b32.xlu1 %v3885_v33, %s5625_s27 }
0x1036   : > { %4031 = vrot.lane.b32.xlu0 %v3978_v21, %s5625_s27 }
0x1038   : > { %v3909_v19 = vpop.f32.mrb[40].mxu0  ;;  %v4002_v31 = vpop.f32.mrb[40].mxu1 }
0x1039   : > { %4137 = vrot.lane.b32.xlu1 %v3909_v19, %s5626_s28  ;;  %v3911_v63 = vpop.f32.mrb[41].mxu0  ;;  %v4004_v37 = vpop.f32.mrb[41].mxu1 }
0x103a   : > { %4139 = vrot.lane.b32.xlu0 %v3911_v63, %s5626_s28  ;;  %v3913_v47 = vpop.f32.mrb[42].mxu0  ;;  %v4006_v12 = vpop.f32.mrb[42].mxu1 }
0x103b   : > { %v3915_v32 = vpop.f32.mrb[43].mxu0  ;;  %v4008_v58 = vpop.f32.mrb[43].mxu1 }
0x103d   : > { %4141 = vrot.lane.b32.xlu1 %v4002_v31, %s5626_s28 }
0x103e   : > { %4143 = vrot.lane.b32.xlu0 %v4004_v37, %s5626_s28 }
0x1040   : > { %v3919_v49 = vpop.f32.mrb[44].mxu0  ;;  %v4012_v23 = vpop.f32.mrb[44].mxu1 }
0x1041   : > { %4145 = vrot.lane.b32.xlu1 %v3913_v47, %s5626_s28  ;;  %v3921_v56 = vpop.f32.mrb[45].mxu0  ;;  %v4014_v5 = vpop.f32.mrb[45].mxu1 }
0x1042   : > { %4147 = vrot.lane.b32.xlu0 %v3915_v32, %s5626_s28  ;;  %v3923_v24 = vpop.f32.mrb[46].mxu0  ;;  %v4016_v0 = vpop.f32.mrb[46].mxu1 }
0x1043   : > { %v3925_v27 = vpop.f32.mrb[47].mxu0  ;;  %v4018_v25 = vpop.f32.mrb[47].mxu1 }
0x1045   : > { %4149 = vrot.lane.b32.xlu1 %v4006_v12, %s5626_s28 }
0x1046   : > { %4151 = vrot.lane.b32.xlu0 %v4008_v58, %s5626_s28 }
0x1049   : > { %4153 = vrot.lane.b32.xlu1 %v3919_v49, %s5626_s28 }
0x104a   : > { %4155 = vrot.lane.b32.xlu0 %v3921_v56, %s5626_s28 }
0x104d   : > { %4157 = vrot.lane.b32.xlu1 %v4012_v23, %s5626_s28 }
0x104e   : > { %4159 = vrot.lane.b32.xlu0 %v4014_v5, %s5626_s28 }
0x1051   : > { %4161 = vrot.lane.b32.xlu1 %v3923_v24, %s5626_s28 }
0x1052   : > { %4163 = vrot.lane.b32.xlu0 %v3925_v27, %s5626_s28 }
0x1055   : > { %4165 = vrot.lane.b32.xlu1 %v4016_v0, %s5626_s28 }
0x1056   : > { %4167 = vrot.lane.b32.xlu0 %v4018_v25, %s5626_s28 }
0x108b   : > { %v4050_v46 = vpop.permute.xlu1 %4049 }
0x108c   : > { %v4052_v4 = vpop.permute.xlu0 %4051 }
0x108d   : > { %v4073_v63 = vsel %vm1124_vm3, %v4050_v46, %v4052_v4 }
0x108e   : > { %v4106_v23 = vadd.f32 %v4073_v63, %v7985_v2 }
0x108f   : > { %v4054_v51 = vpop.permute.xlu1 %4053 }
0x1090   : > { %v4056_v7 = vpop.permute.xlu0 %4055  ;;  %v4074_v12 = vsel %vm1124_vm3, %v4052_v4, %v4054_v51 }
0x1091   : > { %v4107_v5 = vadd.f32 %v4074_v12, %v7982_v40 }
0x1093   : > { %v4026_v6 = vpop.permute.xlu1 %4025 }
0x1094   : > { %v4060_v44 = vpop.permute.xlu0 %4059  ;;  %v4101_v19 = vsel %vm1124_vm3, %v4026_v6, %v4050_v46  ;;  %v4075_v32 = vsel %vm1124_vm3, %v4054_v51, %v4026_v6 }
0x1095   : > { %v4105_v37 = vadd.f32 %v4101_v19, %v7980_v16  ;;  %v4108_v24 = vadd.f32 %v4075_v32, %v7987_v22 }
0x1097   : > { %v4058_v26 = vpop.permute.xlu1 %4057 }
0x1098   : > { %v4028_v35 = vpop.permute.xlu0 %4027  ;;  %v4076_v63 = vsel %vm1124_vm3, %v4056_v7, %v4058_v26  ;;  %v4077_v40 = vsel %vm1124_vm3, %v4058_v26, %v4060_v44 }
0x1099   : > { %v4102_v16 = vsel %vm1124_vm3, %v4028_v35, %v4056_v7  ;;  %v4078_v22 = vsel %vm1124_vm3, %v4060_v44, %v4028_v35  ;;  %v4110_v44 = vadd.f32 %v4076_v63, %v7994_v48  ;;  %v4111_v35 = vadd.f32 %v4077_v40, %v7992_v20 }
0x109a   : > { %v4109_v12 = vadd.f32 %v4102_v16, %v7990_v39  ;;  %v4112_v39 = vadd.f32 %v4078_v22, %v7996_v53 }
0x109b   : > { %v8042_v52 = vpop.permute.xlu1 %4061 }
0x109c   : > { %v8044_v10 = vpop.permute.xlu0 %4063 }
0x109f   : > { %v8046_v9 = vpop.permute.xlu1 %4065 }
0x10a0   : > { %v8048_v34 = vpop.permute.xlu0 %4067 }
0x10a3   : > { %v4030_v38 = vpop.permute.xlu1 %4029 }
0x10a4   : > { %v8050_v1 = vpop.permute.xlu0 %4071  ;;  %v4103_v20 = vsel %vm1124_vm3, %v4030_v38, %v8042_v52 }
0x10a5   : > { %v4113_v63 = vadd.f32 %v4103_v20, %v8000_v45 }
0x10a7   : > { %v8052_v33 = vpop.permute.xlu1 %4069 }
0x10a8   : > { %v8054_v21 = vpop.permute.xlu0 %4031 }
0x10ab   : > { %v4138_v31 = vpop.permute.xlu1 %4137 }
0x10ac   : > { %v4140_v47 = vpop.permute.xlu0 %4139 }
0x10ad   : > { %v4169_v58 = vsel %vm1423_vm6, %v4138_v31, %v4140_v47 }
0x10ae   : > { %v4205_v49 = vadd.f32 %v4169_v58, %v4105_v37 }
0x10af   : > { %v4142_v56 = vpop.permute.xlu1 %4141 }
0x10b0   : > { %v4241_v0 = vadd.f32 %v4224_v14, %v4205_v49  ;;  %v4170_v27 = vsel %vm1423_vm6, %v4140_v47, %v4142_v56  ;;  %v4144_v25 = vpop.permute.xlu0 %4143 }
0x10b1   : > { %v4206_v46 = vadd.f32 %v4170_v27, %v4106_v23  ;;  %v4171_v4 = vsel %vm1423_vm6, %v4142_v56, %v4144_v25  ;;  %v4201_v51 = vsel %vm1423_vm6, %v4144_v25, %v4138_v31 }
0x10b2   : > { %v4257_v6 = vmul.f32 %v4241_v0, %v8548_v13  ;;  %v4207_v19 = vadd.f32 %v4171_v4, %v4107_v5  ;;  %v4208_v2 = vadd.f32 %v4201_v51, %v4108_v24  ;;  %v4080_v51 = vsel %vm1124_vm3, %v8044_v10, %v8046_v9 }
0x10b3   : > { %v4242_v37 = vadd.f32 %v4224_v14, %v4206_v46  ;;  %v4146_v47 = vpop.permute.xlu1 %4145  ;;  %v4115_v45 = vadd.f32 %v4080_v51, %v8002_v55  ;;  %v4104_v55 = vsel %vm1124_vm3, %v8054_v21, %v8048_v34 }
0x10b4   : > { %v8075_v11 = vadd.f32 %v5611_v11, %v4257_v6   ;;  %v4243_v58 = vadd.f32 %v4224_v14, %v4207_v19  ;;  %v4244_v49 = vadd.f32 %v4224_v14, %v4208_v2  ;;  %v4148_v31 = vpop.permute.xlu0 %4147  ;;  %v4081_v6 = vsel %vm1124_vm3, %v8046_v9, %v4030_v38 }
0x10b5   : > { %v4258_v23 = vmul.f32 %v4242_v37, %v5767_v41  ;;  %v4172_v56 = vsel %vm1423_vm6, %v4146_v47, %v4148_v31 }
0x10b6   : > { %v8552_v32 = vmov %v8075_v11  ;;  %v4259_v7 = vmul.f32 %v4243_v58, %v8549_v59  ;;  %v4260_v26 = vmul.f32 %v4244_v49, %v8550_v57  ;;  %v4209_v5 = vadd.f32 %v4172_v56, %v4109_v12 }
0x10b7   : > { %v8085_v18 = vadd.f32 %v5607_v18, %v4258_v23   ;;  %v4150_v11 = vpop.permute.xlu1 %4149 }
0x10b8   : > { %v8088_v36 = vadd.f32 %v5603_v36, %v4259_v7   ;;  %v8091_v8 = vadd.f32 %v5599_v8, %v4260_v26   ;;  %v4245_v14 = vadd.f32 %v8036_v43, %v4209_v5  ;;  %v4173_v25 = vsel %vm1423_vm6, %v4148_v31, %v4150_v11  ;;  %v4152_v16 = vpop.permute.xlu0 %4151 }
0x10b9   : > { %v8553_v24 = vmov %v8085_v18  ;;  %v4210_v48 = vadd.f32 %v4173_v25, %v4110_v44  ;;  %v4174_v53 = vsel %vm1423_vm6, %v4150_v11, %v4152_v16  ;;  %v4202_v18 = vsel %vm1423_vm6, %v4152_v16, %v4146_v47  ;;  %v8560_v16 = vld [vmem:[#allocation64_spill] sm:$0xff] }
0x10ba   : > { %v8554_v0 = vmov %v8088_v36  ;;  %v8555_v27 = vmov %v8091_v8  ;;  %v4261_v46 = vmul.f32 %v4245_v14, %v8548_v13  ;;  %v4211_v4 = vadd.f32 %v4174_v53, %v4111_v35 }
0x10bb   : > { %v4212_v36 = vadd.f32 %v4202_v18, %v4112_v39  ;;  %v4079_v8 = vsel %vm1124_vm3, %v8042_v52, %v8044_v10  ;;  %v4246_v19 = vadd.f32 %v8036_v43, %v4210_v48  ;;  %v4154_v2 = vpop.permute.xlu1 %4153  ;;  %v4083_v35 = vsel %vm1124_vm3, %v8052_v33, %v8050_v1 }
0x10bc   : > { %v8111_v15 = vadd.f32 %v5595_v15, %v4261_v46   ;;  %v4247_v22 = vadd.f32 %v8036_v43, %v4211_v4  ;;  %v4156_v52 = vpop.permute.xlu0 %4155  ;;  %v4114_v58 = vadd.f32 %v4079_v8, %v8005_v30  ;;  %v4084_v39 = vsel %vm1124_vm3, %v8050_v1, %v8054_v21  ;;  %v8562_v8 = vld [vmem:[#allocation63_spill] sm:$0xff] }
0x10bd   : > { %v4248_v37 = vadd.f32 %v8036_v43, %v4212_v36  ;;  %v4262_v47 = vmul.f32 %v4246_v19, %v5767_v41  ;;  %v4175_v10 = vsel %vm1423_vm6, %v4154_v2, %v4156_v52  ;;  %v4117_v25 = vadd.f32 %v4104_v55, %v8010_v60 }
0x10be   : > { %v8556_v40 = vmov %v8111_v15  ;;  %v4263_v12 = vmul.f32 %v4247_v22, %v8549_v59  ;;  %v4213_v38 = vadd.f32 %v4175_v10, %v4113_v63  ;;  %v4116_v15 = vadd.f32 %v4081_v6, %v8007_v61 }
0x10bf   : > { %v4264_v9 = vmul.f32 %v4248_v37, %v8550_v57  ;;  %v8123_v17 = vadd.f32 %v5591_v17, %v4262_v47   ;;  %v4158_v43 = vpop.permute.xlu1 %4157  ;;  %v4119_v60 = vadd.f32 %v4083_v35, %v8012_v50 }
0x10c0   : > { %v8126_v62 = vadd.f32 %v5587_v62, %v4263_v12   ;;  %v4249_v56 = vadd.f32 %v8038_v54, %v4213_v38  ;;  %v4176_v7 = vsel %vm1423_vm6, %v4156_v52, %v4158_v43  ;;  %v4160_v26 = vpop.permute.xlu0 %4159  ;;  %v8566_v38 = vld [vmem:[#allocation60_spill] sm:$0xff] }
0x10c1   : > { %v8557_v49 = vmov %v8123_v17  ;;  %v8129_v42 = vadd.f32 %v5583_v42, %v4264_v9   ;;  %v4214_v30 = vadd.f32 %v4176_v7, %v4114_v58  ;;  %v4177_v61 = vsel %vm1423_vm6, %v4158_v43, %v4160_v26 }
0x10c2   : > { %v8558_v31 = vmov %v8126_v62  ;;  %v4203_v17 = vsel %vm1423_vm6, %v4160_v26, %v4154_v2  ;;  %v4265_v5 = vmul.f32 %v4249_v56, %v8548_v13  ;;  %v4215_v62 = vadd.f32 %v4177_v61, %v4115_v45  ;;  %v8565_v2 = vld [vmem:[#allocation61_spill] sm:$0xff]  ;;  %v8567_v26 = vld [vmem:[#allocation59_spill] sm:$0xff] }
0x10c3   : > { %v8559_v23 = vmov %v8129_v42  ;;  %v4216_v44 = vadd.f32 %v4203_v17, %v4116_v15  ;;  %v4082_v42 = vsel %vm1124_vm3, %v8048_v34, %v8052_v33  ;;  %v4250_v11 = vadd.f32 %v8038_v54, %v4214_v30  ;;  %v4162_v14 = vpop.permute.xlu1 %4161  ;;  %v8568_v30 = vld [vmem:[#allocation58_spill] sm:$0xff]  ;;  %v8569_v61 = vld [vmem:[#allocation57_spill] sm:$0xff] }
0x10c4   : > { %v8151_v48 = vadd.f32 %v8560_v16, %v4265_v5   ;;  %v4251_v53 = vadd.f32 %v8038_v54, %v4215_v62  ;;  %v4164_v18 = vpop.permute.xlu0 %4163  ;;  %v4118_v36 = vadd.f32 %v4082_v42, %v8014_v3  ;;  %v8579_v42 = vmov %v8559_v23  ;;  %v8589_v16 = vld [vmem:[#allocation10_spill] sm:$0xff] (%p8183_p1) }
0x10c5   : > { %v4252_v34 = vadd.f32 %v8038_v54, %v4216_v44  ;;  %v4266_v46 = vmul.f32 %v4250_v11, %v5767_v41  ;;  %v4178_v33 = vsel %vm1423_vm6, %v4162_v14, %v4164_v18  ;;  %v8563_v54 = vld [vmem:[#allocation62_spill] sm:$0xff]  ;;  %v8580_v62 = vmov %v8558_v31 }
0x10c6   : > { %v8561_v20 = vmov %v8151_v48  ;;  %v4267_v4 = vmul.f32 %v4251_v53, %v8549_v59  ;;  %v4217_v21 = vadd.f32 %v4178_v33, %v4117_v25  ;;  %v4120_v48 = vadd.f32 %v4084_v39, %v8016_v28  ;;  %v8591_v33 = vld [vmem:[#allocation12_spill] sm:$0xff] (%p8183_p1) }
0x10c7   : > { %v4268_v1 = vmul.f32 %v4252_v34, %v8550_v57  ;;  %v4282_v6 = vadd.f32 %v8562_v8, %v4266_v46   ;;  %v4166_v51 = vpop.permute.xlu1 %4165  ;;  %v8581_v17 = vmov %v8557_v49  ;;  %v8583_v8 = vmov %v8555_v27 }
0x10c8   : > { %v8164_v35 = vadd.f32 %v8563_v54, %v4267_v4   ;;  %v4253_v22 = vadd.f32 %v8040_v29, %v4217_v21  ;;  %v4179_v37 = vsel %vm1423_vm6, %v4164_v18, %v4166_v51  ;;  %v4168_v52 = vpop.permute.xlu0 %4167  ;;  %v8585_v18 = vmov %v8553_v24 }
0x10c9   : > { %v4284_v63 = vadd.f32 %v8565_v2, %v4268_v1   ;;  %v4218_v47 = vadd.f32 %v4179_v37, %v4118_v36  ;;  %v4180_v3 = vsel %vm1423_vm6, %v4166_v51, %v4168_v52  ;;  %v4204_v50 = vsel %vm1423_vm6, %v4168_v52, %v4162_v14  ;;  %v8590_v18 = vld [vmem:[#allocation11_spill] sm:$0xff] (%p8183_p1) }
0x10ca   : > { %v8564_v19 = vmov %v8164_v35  ;;  %v4269_v28 = vmul.f32 %v4253_v22, %v8548_v13  ;;  %v4219_v10 = vadd.f32 %v4180_v3, %v4119_v60  ;;  %v4220_v12 = vadd.f32 %v4204_v50, %v4120_v48 }
0x10cb   : > { %v4254_v9 = vadd.f32 %v8040_v29, %v4218_v47  ;;  %v8576_v35 = vmov %v8564_v19  ;;  %v8577_v4 = vmov %v4282_v6  ;;  %v8578_v48 = vmov %v8561_v20 }
0x10cc   : > { %v4285_v58 = vadd.f32 %v8566_v38, %v4269_v28   ;;  %v4255_v45 = vadd.f32 %v8040_v29, %v4219_v10  ;;  %v4256_v15 = vadd.f32 %v8040_v29, %v4220_v12  ;;  %v8575_v10 = vmov %v4284_v63  ;;  %2780 = sbr.rel (!%p8183_p1) target bundleno = 2573 (0xa0d), region = 117  ;;  %v8588_v35 = vld [vmem:[#allocation9_spill] sm:$0xff] (%p8183_p1)  ;;  %v8593_v48 = vld [vmem:[#allocation14_spill] sm:$0xff] (%p8183_p1) }
0x10cd   : > { %v4270_v43 = vmul.f32 %v4254_v9, %v5767_v41  ;;  %v8584_v36 = vmov %v8554_v0  ;;  %v8586_v11 = vmov %v8552_v32  ;;  %v4294_v29 = vpack.c.bf16 (%p8183_p1), %v8556_v40, %v8552_v32  ;;  %v4947_v32 = vld [vmem:[%s8321_s10 + $0x20] sm:$0xff] (%p8183_p1) }
0x10ce   : > { %v4271_v56 = vmul.f32 %v4255_v45, %v8549_v59  ;;  %v4272_v7 = vmul.f32 %v4256_v15, %v8550_v57  ;;  %v8574_v14 = vmov %v4285_v58  ;;  %v8582_v15 = vmov %v8556_v40  ;;  %v4948_v40 = vld [vmem:[%s8321_s10 + $0x28] sm:$0xff] (%p8183_p1) }
0x10cf   : > { %v4286_v55 = vadd.f32 %v8567_v26, %v4270_v43   ;;  %v4295_v59 = vpack.c.bf16 (%p8183_p1), %v8557_v49, %v8553_v24  ;;  %v4297_v57 = vpack.c.bf16 (%p8183_p1), %v8559_v23, %v8555_v27  ;;  %v4296_v44 = vpack.c.bf16 (%p8183_p1), %v8558_v31, %v8554_v0  ;;  %v4949_v0 = vld [vmem:[%s8321_s10 + $0x30] sm:$0xff] (%p8183_p1)  ;;  %v4950_v49 = vld [vmem:[%s8321_s10 + $0x38] sm:$0xff] (%p8183_p1)  ;;  %v4490_v31 = vld [vmem:[%s8323_s12] sm:$0x3] (%p8183_p1) }
0x10d0   : > { %v4287_v13 = vadd.f32 %v8568_v30, %v4271_v56   ;;  %v4288_v5 = vadd.f32 %v8569_v61, %v4272_v7   ;;  %v8587_v39 = vmov (%p8183_p1), 0   ;;  %v4298_v41 = vpack.c.bf16 (%p8183_p1), %v4285_v58, %v8561_v20  ;;  %v5319_v27 = vld [vmem:[%s8320_s9 + $0x10] sm:$0xff] (%p8183_p1)   ;;  %v5320_v23 = vld [vmem:[%s8320_s9 + $0x18] sm:$0xff] (%p8183_p1)   ;;  %v8592_v36 = vld [vmem:[#allocation13_spill] sm:$0xff] (%p8183_p1) }
0x10d1   : > { %v8573_v50 = vmov %v4286_v55  ;;  %4350 = vmatprep.mubr.bf16.mxu0 (%p8183_p1), %v8587_v39  ;;  %v4299_v11 = vpack.c.bf16 (%p8183_p1), %v4286_v55, %v4282_v6  ;;  %4403 = vmatprep.mubr.bf16.mxu1 (%p8183_p1), %v8587_v39  ;;  %v8596_v7 = vld [vmem:[#allocation17_spill] sm:$0xff] (%p8183_p1)  ;;  %v8597_v55 = vld [vmem:[#allocation18_spill] sm:$0xff] (%p8183_p1) }
0x10d2   : > { %v8571_v1 = vmov %v4288_v5  ;;  %v8572_v51 = vmov %v4287_v13  ;;  %v4301_v25 = vpack.c.bf16 (%p8183_p1), %v4288_v5, %v4284_v63  ;;  %4318 = vmatprep.subr.bf16.mxu0 (%p8183_p1), %v4295_v59  ;;  %4371 = vmatprep.subr.bf16.mxu1 (%p8183_p1), %v4297_v57  ;;  %v4300_v24 = vpack.c.bf16 (%p8183_p1), %v4287_v13, %v8564_v19  ;;  %v8594_v19 = vld [vmem:[#allocation15_spill] sm:$0xff] (%p8183_p1)  ;;  %v8595_v63 = vld [vmem:[#allocation16_spill] sm:$0xff] (%p8183_p1) }
0x10d3   :  { %4319 = vmatpush1.bf16.msra.mxu0 %v4294_v29  ;;  %4372 = vmatpush1.bf16.msra.mxu1 %v4296_v44  ;;  %v8598_v5 = vld [vmem:[#allocation19_spill] sm:$0xff]  ;;  %v8599_v57 = vld [vmem:[#allocation20_spill] sm:$0xff] }
0x10d4   :  { %4320 = vmatprep.subr.bf16.mxu0 %v4299_v11  ;;  %4373 = vmatprep.subr.bf16.mxu1 %v4301_v25  ;;  %v8600_v11 = vld [vmem:[#allocation21_spill] sm:$0xff] }
0x10d5   :  { %5317 = vset.pattern.permute.xlu0 %v8587_v39  ;;  %5318 = vset.pattern.permute.xlu1 %v8587_v39 }
0x10d6   :  { %4447 = vperm.xlu0 %5317, %v4947_v32   ;;  %4457 = vperm.xlu1 %5318, %v4949_v0  }
0x10d7   :  { %4321 = vmatpush1.bf16.msra.mxu0 %v4298_v41  ;;  %4374 = vmatpush1.bf16.msra.mxu1 %v4300_v24  ;;  %v8601_v41 = vld [vmem:[#allocation22_spill] sm:$0xff] }
0x10da   :  { %4943 = vmatmul.mubr.msk.bf16.vlgmr.msra.gmra.mrb[0].mxu0 %vm319_vm2, %v5319_v27  ;;  %4945 = vmatmul.mubr.msk.bf16.vlgmr.msra.gmra.mrb[0].mxu1 %vm319_vm2, %v5319_v27 }
0x10db   :  { %4360 = vmatprep.mubr.bf16.mxu0 %v8587_v39  ;;  %4413 = vmatprep.mubr.bf16.mxu1 %v8587_v39 }
0x10dc   :  { %4452 = vperm.xlu0 %5317, %v4948_v40   ;;  %4462 = vperm.xlu1 %5318, %v4950_v49   ;;  %v8602_v40 = vld [vmem:[#allocation23_spill] sm:$0xff] }
0x10e0   :  { %4493 = vperm.xlu0 %5317, %v4490_v31   ;;  %v8603_v31 = vld [vmem:[#allocation24_spill] sm:$0xff] }
0x10e2   :  { %4944 = vmatmul.mubr.msk.bf16.gmra.mrb[4].mxu0 %vm319_vm2, %v5320_v23  ;;  %4946 = vmatmul.mubr.msk.bf16.gmra.mrb[4].mxu1 %vm319_vm2, %v5320_v23 }
0x10e3   :  { %4531 = vmatprep.mubr.bf16.mxu0 %v8587_v39  ;;  %4572 = vmatprep.mubr.bf16.mxu1 %v8587_v39 }
0x1155   :  { %v4448_v17 = vpop.permute.xlu0 %4447  ;;  %v4458_v9 = vpop.permute.xlu1 %4457 }
0x115b   :  { %v4453_v54 = vpop.permute.xlu0 %4452  ;;  %v4463_v27 = vpop.permute.xlu1 %4462 }
0x11ad   :  { %v4352_v62 = vpop.f32.mrb[0].mxu0  ;;  %v4405_v42 = vpop.f32.mrb[0].mxu1 }
0x11ae   :  { %v4424_v14 = vadd.f32 %v4352_v62, %v8588_v35  ;;  %v4426_v20 = vadd.f32 %v4405_v42, %v8589_v16  ;;  %v4354_v53 = vpop.f32.mrb[1].mxu0  ;;  %v4407_v34 = vpop.f32.mrb[1].mxu1 }
0x11af   :  { %v4425_v46 = vadd.f32 %v4354_v53, %v8590_v18  ;;  %v4427_v4 = vadd.f32 %v4407_v34, %v8591_v33  ;;  %v4356_v1 = vpop.f32.mrb[2].mxu0  ;;  %v4409_v21 = vpop.f32.mrb[2].mxu1 }
0x11b0   :  { %v4428_v60 = vadd.f32 %v4356_v1, %v8592_v36  ;;  %v4430_v8 = vadd.f32 %v4409_v21, %v8593_v48  ;;  %v4358_v6 = vpop.f32.mrb[3].mxu0  ;;  %v4411_v51 = vpop.f32.mrb[3].mxu1  ;;  %v4465_v37 = vadd.f32 %v4448_v17, %v4424_v14  ;;  %v4467_v52 = vadd.f32 %v4448_v17, %v4426_v20 }
0x11b1   :  { %v4429_v2 = vadd.f32 %v4358_v6, %v8594_v19  ;;  %v4431_v22 = vadd.f32 %v4411_v51, %v8595_v63  ;;  %v4466_v50 = vadd.f32 %v4448_v17, %v4425_v46  ;;  %v4468_v28 = vadd.f32 %v4448_v17, %v4427_v4  ;;  %v4481_v4 = vld [vmem:[%s8322_s11] sm:$0x1]  ;;  %v4494_v1 = vpop.permute.xlu0 %4493  ;;  %s5627_s11 = smov [#allocation2]  }
0x11b2   :  { %v4469_v47 = vadd.f32 %v4453_v54, %v4428_v60  ;;  %v4471_v3 = vadd.f32 %v4453_v54, %v4430_v8  ;;  %s4610_s12 = sshll.u32 %s5627_s11, 4  ;;  %s4611_s12 = int_to_ptr.vmem [resolvable:$true] %s4610_s12 }
0x11b3   :  { %v4470_v10 = vadd.f32 %v4453_v54, %v4429_v2  ;;  %v4472_v12 = vadd.f32 %v4453_v54, %v4431_v22  ;;  %s5321_s22 = scalar_lea.vmem %s4611_s12, 128  ;;  %p5326_p3 = scmp.lt.s32.totalorder %s4611_s12, %s4611_s12 }
0x11b4   :  { %v4482_v38 = vpack.c.bf16 %v4469_v47, %v4465_v37  ;;  %v4484_v58 = vpack.c.bf16 %v4471_v3, %v4467_v52  ;;  %v8604_v47 = vld [vmem:[#allocation5_spill] sm:$0xff]  ;;  %p5322_p2 = scmp.ne.s32.totalorder %s4611_s12, %s5321_s22  ;;  %p5327_p4 = scmp.lt.s32.totalorder %s5321_s22, %s5321_s22 }
0x11b5   :  { %v4362_v45 = vpop.f32.mrb[4].mxu0  ;;  %v4415_v15 = vpop.f32.mrb[4].mxu1  ;;  %v4483_v43 = vpack.c.bf16 %v4470_v10, %v4466_v50  ;;  %v4485_v56 = vpack.c.bf16 %v4472_v12, %v4468_v28 }
0x11b6   :  { %v4432_v26 = vadd.f32 %v4362_v45, %v8596_v7  ;;  %v4434_v30 = vadd.f32 %v4415_v15, %v8597_v55  ;;  %v4364_v13 = vpop.f32.mrb[5].mxu0  ;;  %v4417_v61 = vpop.f32.mrb[5].mxu1  ;;  %p5328_p5 = por %p5327_p4, %p5326_p3 }
0x11b7   :  { %v4433_v59 = vadd.f32 %v4364_v13, %v8598_v5  ;;  %v4435_v29 = vadd.f32 %v4417_v61, %v8599_v57  ;;  %v4366_v44 = vpop.f32.mrb[6].mxu0  ;;  %v4419_v39 = vpop.f32.mrb[6].mxu1  ;;  %4499 = vmatprep.subr.bf16.mxu0 %v4483_v43  ;;  %4540 = vmatprep.subr.bf16.mxu1 %v4485_v56 }
0x11b8   :  { %v4436_v25 = vadd.f32 %v4366_v44, %v8600_v11  ;;  %v4438_v24 = vadd.f32 %v4419_v39, %v8601_v41  ;;  %v4368_v32 = vpop.f32.mrb[7].mxu0  ;;  %v4421_v0 = vpop.f32.mrb[7].mxu1  ;;  %4500 = vmatpush1.bf16.msra.mxu0 %v4482_v38  ;;  %4541 = vmatpush1.bf16.msra.mxu1 %v4484_v58  ;;  %v4473_v17 = vadd.f32 %v4458_v9, %v4432_v26  ;;  %p5329_p6 = pnand %p5328_p5, %p5322_p2 }
0x11b9   :  { %v4437_v49 = vadd.f32 %v4368_v32, %v8602_v40  ;;  %v4439_v23 = vadd.f32 %v4421_v0, %v8603_v31  ;;  %v4475_v62 = vadd.f32 %v4458_v9, %v4434_v30  ;;  %v4474_v14 = vadd.f32 %v4458_v9, %v4433_v59 }
0x11ba   :  { %v4477_v42 = vadd.f32 %v4463_v27, %v4436_v25  ;;  %v4479_v35 = vadd.f32 %v4463_v27, %v4438_v24  ;;  %v4476_v16 = vadd.f32 %v4458_v9, %v4435_v29 }
0x11bb   :  { %v4478_v20 = vadd.f32 %v4463_v27, %v4437_v49  ;;  %v4480_v53 = vadd.f32 %v4463_v27, %v4439_v23 }
0x11bc   :  { %v4486_v34 = vpack.c.bf16 %v4477_v42, %v4473_v17  ;;  %v4488_v18 = vpack.c.bf16 %v4479_v35, %v4475_v62 }
0x11bd   :  { %v4487_v46 = vpack.c.bf16 %v4478_v20, %v4474_v14  ;;  %v4489_v33 = vpack.c.bf16 %v4480_v53, %v4476_v16 }
0x11bf   :  { %4501 = vmatprep.subr.bf16.mxu0 %v4487_v46  ;;  %4542 = vmatprep.subr.bf16.mxu1 %v4489_v33 }
0x11c0   :  { %4502 = vmatpush1.bf16.msra.mxu0 %v4486_v34  ;;  %4543 = vmatpush1.bf16.msra.mxu1 %v4488_v18 }
0x11c3   :  { %4951 = vmatmul.mubr.msk.bf16.vlgmr.msra.gmra.mrb[8].mxu0 %vm319_vm2, %v4481_v4  ;;  %4952 = vmatmul.mubr.msk.bf16.vlgmr.msra.gmra.mrb[8].mxu1 %vm319_vm2, %v4481_v4 }
0x1296   :  { %v4533_v21 = vpop.f32.mrb[8].mxu0  ;;  %v4574_v36 = vpop.f32.mrb[8].mxu1 }
0x1297   :  { %v4534_v60 = vadd.f32 %v4533_v21, %v4494_v1  ;;  %v4575_v48 = vadd.f32 %v4574_v36, %v4494_v1  ;;  %v4535_v8 = vpop.f32.mrb[9].mxu0  ;;  %v4576_v6 = vpop.f32.mrb[9].mxu1 }
0x1298   :  { %v4536_v51 = vadd.f32 %v4535_v8, %v4494_v1  ;;  %v4577_v54 = vadd.f32 %v4576_v6, %v4494_v1  ;;  %v4537_v19 = vpop.f32.mrb[10].mxu0  ;;  %v4578_v2 = vpop.f32.mrb[10].mxu1 }
0x1299   :  { %v4538_v63 = vpop.f32.mrb[11].mxu0  ;;  %v4579_v22 = vpop.f32.mrb[11].mxu1 }
0x129a   :  { %v4585_v37 = vcombine.low %v4534_v60, %v4536_v51  ;;  %v4586_v52 = vcombine.low %v4575_v48, %v4577_v54 }
0x129c   :  { %v4593_v3 = vrot.slane %v4585_v37, %v8604_v47  ;;  %v4600_v50 = vrot.slane %v4586_v52, %v8604_v47 }
0x129e   :  { %v4601_v28 = vcombine.low %v4593_v3, %v4600_v50 }
0x12a0   :  { %4603 = vst [vmem:[#allocation2] sm:$0xff] %v4601_v28 }
0x12a1   :  { %5332 = shalt.err (!%p5329_p6)
}
0x12a2   :  { %s5333_s23 = scalar_lea.hbm %s8326_s15, 128 }
0x12a3   :  { %p5334_p7 = scmp.ne.s32.totalorder %s8326_s15, %s5333_s23  ;;  %p5337_p8 = scmp.lt.u32.totalorder %s5333_s23, %s8326_s15 }
0x12a5   :  { %p5339_p9 = pnand %p5337_p8, %p5334_p7 }
0x12a7   :  { %5342 = shalt.err (!%p5339_p9)
}
0x12a8   :  { %4613 = dma.vmem_to_hbm [thread:$0]  %s4611_s12, 128, %s8326_s15, [#allocation3]  }
0x12a9   :  { %5479 = dma.done.wait [#allocation3], 128  }
0x12aa   :  { %5480 = vsyncadd [#allocation3], 4294967168 }
0x12ab   :  { %4617 = vsyncpa [#allocation3], 1 }

</bundles_post_ra>
